<compile_context>
chip_gen: v5e
topology: v5e:2x2
jax: 0.10.0
libtpu: 0.0.40
codegen_flags: <defaults>
</compile_context>

<pallas_src>
import math

import jax
import jax.numpy as jnp
from jax import lax
from jax.experimental import pallas as pl
from jax.experimental.pallas import tpu as pltpu

# ----------------------------- synthetic `const` ------------------------------
VOCAB_SIZE = 20
EMBEDDING_DIM = 32
PADDING_INDEX = 0

CHAR_VOCAB_SIZE = 30
CHAR_EMBEDDING_DIM = 16
CHAR_HIDDEN_DIM = 16

CONTEXT_HIDDEN_DIM = 32            # bidirectional => 16 per direction
NUM_POS_TAGS = 8
NUM_CHUNK_TAGS = 4
POS_PADDING_IDX = NUM_POS_TAGS
CHUNK_PADDING_IDX = NUM_CHUNK_TAGS
NUM_TAGS = 9                       # len(const.TAG_LIST) - 1
NUM_TAGS_PAD = 16                  # tag dim padded for aligned tiles

T = 8                              # padded sentence length
B = 2                              # real batch size
BP = 8                             # batch padded to one sublane tile
L = 6                              # max word length (characters)

OTHER_DIM = EMBEDDING_DIM + NUM_POS_TAGS + NUM_CHUNK_TAGS   # 44 (word|pos|chunk)
CTX_CHAR_ROW = 48                  # 8-aligned start of char-feature rows in ctx_wx_pack
CTX_BIAS_ROW = CTX_CHAR_ROW + CHAR_HIDDEN_DIM               # 64
CRF_START_ROW = NUM_TAGS_PAD       # 16
CRF_END_ROW = 24                   # 8-aligned row for the end scores
NEG = -1.0e30                      # "minus infinity" for padded tags (finite on purpose)


# --------------------------------- the kernel ----------------------------------
def bilstm_crf_kernel(char_x_ref, char_mask_ref, other_ref, mask_ref, tags_ref,
                      char_w_ref, ctx_wx_ref, whh_ref, h2t_ref, crf_ref,
                      out_ref,
                      xp_c_scr, xpf_scr, xpb_scr, outf_scr, outb_scr, em_scr):
    f32 = jnp.float32
    CE, CH = CHAR_EMBEDDING_DIM, CHAR_HIDDEN_DIM
    HC = CONTEXT_HIDDEN_DIM // 2
    Kp = NUM_TAGS_PAD
    N = other_ref.shape[0]                  # T * BP
    Ts = N // BP
    Lc = char_x_ref.shape[0] // N           # chars per word

    # ---------------- character LSTM (fused gates, hoisted input projection) ---
    wih_c = char_w_ref[0:CE, :]             # (CE, 4*CH)
    whh_c = char_w_ref[CE:CE + CH, :]       # (CH, 4*CH)
    b_c = char_w_ref[CE + CH:CE + CH + 1, :]

    # one batched matmul for every character step, off the recurrent chain
    xp_c_scr[...] = jnp.dot(char_x_ref[...], wih_c,
                            preferred_element_type=f32) + b_c

    def char_step(l, carry):
        h, c = carry
        row = pl.multiple_of(l * N, N)
        pre = xp_c_scr[pl.ds(row, N), :] + jnp.dot(h, whh_c,
                                                   preferred_element_type=f32)
        ig = jax.nn.sigmoid(pre[:, 0:CH])
        fg = jax.nn.sigmoid(pre[:, CH:2 * CH])
        gg = jnp.tanh(pre[:, 2 * CH:3 * CH])
        og = jax.nn.sigmoid(pre[:, 3 * CH:4 * CH])
        c_new = fg * c + ig * gg
        h_new = og * jnp.tanh(c_new)
        m = char_mask_ref[pl.ds(row, N), :]           # (N, 1) in {0, 1}
        h = h + m * (h_new - h)                       # masked carry (3 VPU ops)
        c = c + m * (c_new - c)
        return h, c

    zeros_nc = jnp.zeros((N, CH), f32)
    char_feat, _ = lax.fori_loop(0, Lc, char_step, (zeros_nc, zeros_nc))  # (N, CH)

    # -------- context BiLSTM: one 128-wide hoisted input projection (fwd|bwd) ---
    W_other = ctx_wx_ref[0:OTHER_DIM, :]                       # (44, 128)
    W_charf = ctx_wx_ref[CTX_CHAR_ROW:CTX_CHAR_ROW + CH, :]    # (16, 128)
    b_fb = ctx_wx_ref[CTX_BIAS_ROW:CTX_BIAS_ROW + 1, :]        # (1, 128)
    xp_fb = (jnp.dot(other_ref[...], W_other, preferred_element_type=f32)
             + jnp.dot(char_feat, W_charf, preferred_element_type=f32)
             + b_fb)                                           # (N, 128)
    xpf_scr[...] = xp_fb[:, 0:4 * HC]
    xpb_scr[...] = xp_fb[:, 4 * HC:8 * HC]

    whh_f = whh_ref[0:HC, :]
    whh_b = whh_ref[HC:2 * HC, :]

    def make_dir_step(whh_d, xp_scr, out_scr, reverse):
        def step(idx, carry):
            h, c = carry
            t = (Ts - 1 - idx) if reverse else idx
            row = pl.multiple_of(t * BP, BP)
            pre = xp_scr[pl.ds(row, BP), :] + jnp.dot(h, whh_d,
                                                      preferred_element_type=f32)
            ig = jax.nn.sigmoid(pre[:, 0:HC])
            fg = jax.nn.sigmoid(pre[:, HC:2 * HC])
            gg = jnp.tanh(pre[:, 2 * HC:3 * HC])
            og = jax.nn.sigmoid(pre[:, 3 * HC:4 * HC])
            c_new = fg * c + ig * gg
            h_new = og * jnp.tanh(c_new)
            m = mask_ref[pl.ds(row, BP), :]
            h = h + m * (h_new - h)
            c = c + m * (c_new - c)
            out_scr[pl.ds(row, BP), :] = m * h_new    # pad_packed => zeros at pads
            return h, c
        return step

    zeros_bh = jnp.zeros((BP, HC), f32)
    lax.fori_loop(0, Ts, make_dir_step(whh_f, xpf_scr, outf_scr, False),
                  (zeros_bh, zeros_bh))
    lax.fori_loop(0, Ts, make_dir_step(whh_b, xpb_scr, outb_scr, True),
                  (zeros_bh, zeros_bh))

    # -------------------- hidden2tag projection (emissions) --------------------
    h2t_wf = h2t_ref[0:HC, :]
    h2t_wb = h2t_ref[HC:2 * HC, :]
    h2t_b = h2t_ref[2 * HC:2 * HC + 1, :]
    em_scr[...] = (jnp.dot(outf_scr[...], h2t_wf, preferred_element_type=f32)
                   + jnp.dot(outb_scr[...], h2t_wb, preferred_element_type=f32)
                   + h2t_b)                                    # (N, Kp)

    # ------------------------ CRF log-likelihood (sum) -------------------------
    trans = crf_ref[0:Kp, :]                                   # (Kp, Kp)
    start = crf_ref[CRF_START_ROW:CRF_START_ROW + 1, :]        # (1, Kp)
    end = crf_ref[CRF_END_ROW:CRF_END_ROW + 1, :]              # (1, Kp)
    iota_k = lax.broadcasted_iota(jnp.int32, (BP, Kp), 1)      # hoisted once

    em0 = em_scr[0:BP, :]
    oh0 = (iota_k == tags_ref[0:BP, :]).astype(f32)
    num0 = jnp.sum((start + em0) * oh0, axis=1, keepdims=True)  # (BP, 1)
    alpha0 = start + em0                                        # (BP, Kp)

    def crf_step(t, carry):
        alpha, num, last_oh, prev_oh = carry
        row = pl.multiple_of(t * BP, BP)
        m = mask_ref[pl.ds(row, BP), :]                         # (BP, 1)
        em_t = em_scr[pl.ds(row, BP), :]
        oh_t = (iota_k == tags_ref[pl.ds(row, BP), :]).astype(f32)

        # gold-path (numerator): transition "gather" on the VPU, no MXU push
        trow = jnp.sum(prev_oh[:, :, None] * trans[None, :, :], axis=1)  # (BP, Kp)
        num = num + m * jnp.sum((trow + em_t) * oh_t, axis=1, keepdims=True)

        # forward algorithm (denominator)
        bscore = alpha[:, :, None] + trans[None, :, :] + em_t[:, None, :]
        mx = jnp.max(bscore, axis=1, keepdims=True)
        nxt = jnp.squeeze(mx, 1) + jnp.log(jnp.sum(jnp.exp(bscore - mx), axis=1))
        alpha = alpha + m * (nxt - alpha)
        last_oh = last_oh + m * (oh_t - last_oh)
        return alpha, num, last_oh, oh_t

    alpha, num, last_oh, _ = lax.fori_loop(1, Ts, crf_step,
                                           (alpha0, num0, oh0, oh0))

    num = num + jnp.sum(end * last_oh, axis=1, keepdims=True)
    alpha = alpha + end
    mx = jnp.max(alpha, axis=1, keepdims=True)
    denom = mx + jnp.log(jnp.sum(jnp.exp(alpha - mx), axis=1, keepdims=True))

    # zero out the fake (batch-padding) rows; assumes real sentences have len>=1,
    # exactly like torchcrf.
    batch_valid = mask_ref[0:BP, :]
    out_ref[...] = jnp.sum((num - denom) * batch_valid, keepdims=True)


# ------------------------------ pallas_call wrapper -----------------------------
def _vmem():
    return pl.BlockSpec(memory_space=pltpu.MemorySpace.VMEM)


def run_bilstm_crf(char_x2d, char_mask2d, other2d, mask2d, tags2d, params):
    N = other2d.shape[0]
    LN = char_x2d.shape[0]
    HC = CONTEXT_HIDDEN_DIM // 2
    return pl.pallas_call(
        bilstm_crf_kernel,
        out_shape=jax.ShapeDtypeStruct((1, 1), jnp.float32),
        in_specs=[_vmem() for _ in range(10)],
        out_specs=_vmem(),
        scratch_shapes=[
            pltpu.VMEM((LN, 4 * CHAR_HIDDEN_DIM), jnp.float32),  # char input proj
            pltpu.VMEM((N, 4 * HC), jnp.float32),                # ctx fwd input proj
            pltpu.VMEM((N, 4 * HC), jnp.float32),                # ctx bwd input proj
            pltpu.VMEM((N, HC), jnp.float32),                    # fwd hidden outputs
            pltpu.VMEM((N, HC), jnp.float32),                    # bwd hidden outputs
            pltpu.VMEM((N, NUM_TAGS_PAD), jnp.float32),          # emissions
        ],
    )(char_x2d, char_mask2d, other2d, mask2d, tags2d,
      params['char_pack'], params['ctx_wx_pack'], params['whh_pack'],
      params['h2t_pack'], params['crf_pack'])


# ------------------------------- parameter setup --------------------------------
def _fused_lstm_params(key, in_dim, hidden):
    """PyTorch-style init, repacked for a single fused-gate matmul (cols = i|f|g|o)."""
    bound = 1.0 / math.sqrt(hidden)
    k1, k2, k3, k4 = jax.random.split(key, 4)
    w_ih = jax.random.uniform(k1, (4 * hidden, in_dim), jnp.float32, -bound, bound)
    w_hh = jax.random.uniform(k2, (4 * hidden, hidden), jnp.float32, -bound, bound)
    b_ih = jax.random.uniform(k3, (4 * hidden,), jnp.float32, -bound, bound)
    b_hh = jax.random.uniform(k4, (4 * hidden,), jnp.float32, -bound, bound)
    return w_ih.T, w_hh.T, (b_ih + b_hh).reshape(1, 4 * hidden)


def _permute_ctx_rows(w):
    # nn.LSTM input feature order is [word(0:32), char(32:48), pos(48:56), chunk(56:60)].
    # Reorder rows to [word, pos, chunk, char] to match other2d + char_feat split.
    E, CH, P, C = EMBEDDING_DIM, CHAR_HIDDEN_DIM, NUM_POS_TAGS, NUM_CHUNK_TAGS
    return jnp.concatenate(
        [w[0:E], w[E + CH:E + CH + P], w[E + CH + P:E + CH + P + C], w[E:E + CH]],
        axis=0)


def init_params(key):
    ks = jax.random.split(key, 12)
    p = {}
    p['word_emb'] = jax.random.normal(ks[0], (VOCAB_SIZE, EMBEDDING_DIM), jnp.float32)
    p['char_emb'] = jax.random.normal(ks[1], (CHAR_VOCAB_SIZE, CHAR_EMBEDDING_DIM), jnp.float32)
    # frozen one-hot POS / chunk embeddings (last row = padding zeros)
    p['pos_emb'] = jnp.concatenate(
        [jnp.eye(NUM_POS_TAGS, dtype=jnp.float32),
         jnp.zeros((1, NUM_POS_TAGS), jnp.float32)], axis=0)
    p['chunk_emb'] = jnp.concatenate(
        [jnp.eye(NUM_CHUNK_TAGS, dtype=jnp.float32),
         jnp.zeros((1, NUM_CHUNK_TAGS), jnp.float32)], axis=0)

    # character LSTM, packed [Wih; Whh; bias]
    wih_c, whh_c, b_c = _fused_lstm_params(ks[2], CHAR_EMBEDDING_DIM, CHAR_HIDDEN_DIM)
    p['char_pack'] = jnp.concatenate([wih_c, whh_c, b_c], axis=0)          # (33, 64)

    # context BiLSTM: fwd/bwd input projections concatenated to 128 output lanes
    ctx_in = EMBEDDING_DIM + CHAR_HIDDEN_DIM + NUM_POS_TAGS + NUM_CHUNK_TAGS   # 60
    half = CONTEXT_HIDDEN_DIM // 2
    wih_f, whh_f, b_f = _fused_lstm_params(ks[3], ctx_in, half)
    wih_b, whh_b, b_b = _fused_lstm_params(ks[4], ctx_in, half)
    wx = jnp.concatenate([_permute_ctx_rows(wih_f), _permute_ctx_rows(wih_b)], axis=1)
    b_fb = jnp.concatenate([b_f, b_b], axis=1)                              # (1, 128)
    pad_rows = jnp.zeros((CTX_CHAR_ROW - OTHER_DIM, 8 * half), jnp.float32)
    p['ctx_wx_pack'] = jnp.concatenate(
        [wx[0:OTHER_DIM], pad_rows, wx[OTHER_DIM:OTHER_DIM + CHAR_HIDDEN_DIM], b_fb],
        axis=0)                                                             # (65, 128)
    p['whh_pack'] = jnp.concatenate([whh_f, whh_b], axis=0)                 # (32, 64)

    # hidden2tag (get_linear_layer init), tag dim padded to NUM_TAGS_PAD with zeros
    std_w = math.sqrt(2.0 / (NUM_TAGS + CONTEXT_HIDDEN_DIM))
    std_b = math.sqrt(1.0 / NUM_TAGS)
    w = std_w * jax.random.normal(ks[5], (NUM_TAGS, CONTEXT_HIDDEN_DIM), jnp.float32)
    b = std_b * jax.random.normal(ks[6], (NUM_TAGS,), jnp.float32)
    w_pad = jnp.zeros((CONTEXT_HIDDEN_DIM, NUM_TAGS_PAD), jnp.float32).at[:, :NUM_TAGS].set(w.T)
    b_pad = jnp.zeros((1, NUM_TAGS_PAD), jnp.float32).at[0, :NUM_TAGS].set(b)
    p['h2t_pack'] = jnp.concatenate([w_pad, b_pad], axis=0)                 # (33, 16)

    # CRF params (torchcrf init: uniform(-0.1, 0.1)); padded tags get NEG scores
    start = jax.random.uniform(ks[7], (NUM_TAGS,), jnp.float32, -0.1, 0.1)
    end = jax.random.uniform(ks[8], (NUM_TAGS,), jnp.float32, -0.1, 0.1)
    trans = jax.random.uniform(ks[9], (NUM_TAGS, NUM_TAGS), jnp.float32, -0.1, 0.1)
    trans_p = jnp.full((NUM_TAGS_PAD, NUM_TAGS_PAD), NEG, jnp.float32
                       ).at[:NUM_TAGS, :NUM_TAGS].set(trans)
    start_p = jnp.full((1, NUM_TAGS_PAD), NEG, jnp.float32).at[0, :NUM_TAGS].set(start)
    end_p = jnp.zeros((1, NUM_TAGS_PAD), jnp.float32).at[0, :NUM_TAGS].set(end)
    pad7 = jnp.zeros((CRF_END_ROW - CRF_START_ROW - 1, NUM_TAGS_PAD), jnp.float32)
    p['crf_pack'] = jnp.concatenate([trans_p, start_p, pad7, end_p], axis=0)  # (25, 16)
    return p


# ----------------------------------- forward ------------------------------------
@jax.jit
def bilstm_crf_forward(params, seq, pos, chunk, chars, word_lens, tags):
    Ts, Bs = seq.shape
    pad = BP - Bs
    seq_p = jnp.pad(seq, ((0, 0), (0, pad)), constant_values=PADDING_INDEX)
    pos_p = jnp.pad(pos, ((0, 0), (0, pad)), constant_values=POS_PADDING_IDX)
    chunk_p = jnp.pad(chunk, ((0, 0), (0, pad)), constant_values=CHUNK_PADDING_IDX)
    chars_p = jnp.pad(chars, ((0, 0), (0, pad), (0, 0)))
    wl_p = jnp.pad(word_lens, ((0, 0), (0, pad)))
    tags_p = jnp.pad(tags, ((0, 0), (0, pad)))

    N = Ts * BP
    mask2d = (seq_p != PADDING_INDEX).astype(jnp.float32).reshape(N, 1)

    # embedding gathers stay in XLA (no clean Pallas equivalent for table lookups)
    word_embs = jnp.take(params['word_emb'], seq_p, axis=0).reshape(N, EMBEDDING_DIM)
    pos_embs = jnp.take(params['pos_emb'], pos_p, axis=0).reshape(N, NUM_POS_TAGS)
    chunk_embs = jnp.take(params['chunk_emb'], chunk_p, axis=0).reshape(N, NUM_CHUNK_TAGS)
    other2d = jnp.concatenate([word_embs, pos_embs, chunk_embs], axis=1)    # (N, 44)

    chars_flat = chars_p.transpose(2, 0, 1).reshape(L * N)                  # char-step major
    char_x2d = jnp.take(params['char_emb'], chars_flat, axis=0)             # (L*N, CE)
    wl_flat = wl_p.reshape(N)
    char_mask2d = (jnp.arange(L)[:, None] < wl_flat[None, :]
                   ).astype(jnp.float32).reshape(L * N, 1)
    tags2d = tags_p.reshape(N, 1).astype(jnp.int32)

    # dropout: eval-mode identity
    llh = run_bilstm_crf(char_x2d, char_mask2d, other2d, mask2d, tags2d, params)
    return llh[0, 0]   # CRF log-likelihood, reduction='sum'


# ------------------------------------- main --------------------------------------
if __name__ == "__main__":
    key = jax.random.PRNGKey(0)
    kparams, kdata = jax.random.split(key)
    params = init_params(kparams)

    ks = jax.random.split(kdata, 8)
    sent_lens = jnp.array([T, 6], dtype=jnp.int32)                          # (B,)
    valid = (jnp.arange(T)[:, None] < sent_lens[None, :])                   # (T, B)

    seq = jnp.where(valid, jax.random.randint(ks[0], (T, B), 1, VOCAB_SIZE),
                    PADDING_INDEX).astype(jnp.int32)
    pos = jnp.where(valid, jax.random.randint(ks[1], (T, B), 0, NUM_POS_TAGS),
                    POS_PADDING_IDX).astype(jnp.int32)
    chunk = jnp.where(valid, jax.random.randint(ks[2], (T, B), 0, NUM_CHUNK_TAGS),
                      CHUNK_PADDING_IDX).astype(jnp.int32)
    word_lens = jnp.where(valid, jax.random.randint(ks[3], (T, B), 1, L + 1),
                          0).astype(jnp.int32)
    char_valid = jnp.arange(L)[None, None, :] < word_lens[:, :, None]
    chars = jnp.where(char_valid,
                      jax.random.randint(ks[4], (T, B, L), 1, CHAR_VOCAB_SIZE),
                      0).astype(jnp.int32)
    tags = jax.random.randint(ks[5], (T, B), 0, NUM_TAGS).astype(jnp.int32)

    out = bilstm_crf_forward(params, seq, pos, chunk, chars, word_lens, tags)
    out = jax.block_until_ready(out)
    assert jnp.isfinite(out)
    print("KERNEL_OK")
</pallas_src>

<mosaic_0001>
module attributes {stable_mosaic.version = 11 : i64} {
  func.func @bilstm_crf_kernel(%arg0: memref<384x16xf32, #tpu.memory_space<vmem>>, %arg1: memref<384x1xf32, #tpu.memory_space<vmem>>, %arg2: memref<64x44xf32, #tpu.memory_space<vmem>>, %arg3: memref<64x1xf32, #tpu.memory_space<vmem>>, %arg4: memref<64x1xi32, #tpu.memory_space<vmem>>, %arg5: memref<33x64xf32, #tpu.memory_space<vmem>>, %arg6: memref<65x128xf32, #tpu.memory_space<vmem>>, %arg7: memref<32x64xf32, #tpu.memory_space<vmem>>, %arg8: memref<33x16xf32, #tpu.memory_space<vmem>>, %arg9: memref<25x16xf32, #tpu.memory_space<vmem>>, %arg10: memref<1x1xf32, #tpu.memory_space<vmem>>, %arg11: memref<384x64xf32, #tpu.memory_space<vmem>>, %arg12: memref<64x64xf32, #tpu.memory_space<vmem>>, %arg13: memref<64x64xf32, #tpu.memory_space<vmem>>, %arg14: memref<64x16xf32, #tpu.memory_space<vmem>>, %arg15: memref<64x16xf32, #tpu.memory_space<vmem>>, %arg16: memref<64x16xf32, #tpu.memory_space<vmem>>) attributes {dimension_semantics = [], scalar_prefetch = 0 : i64, scratch_operands = 6 : i64, tpu.core_type = #tpu.core_type<tc>} {
    %c0 = arith.constant 0 : index
    %c0_0 = arith.constant 0 : index
    %0 = vector.load %arg5[%c0, %c0_0] : memref<33x64xf32, #tpu.memory_space<vmem>>, vector<16x64xf32>
    %c16 = arith.constant 16 : index
    %c0_1 = arith.constant 0 : index
    %1 = vector.load %arg5[%c16, %c0_1] : memref<33x64xf32, #tpu.memory_space<vmem>>, vector<16x64xf32>
    %c32 = arith.constant 32 : index
    %c0_2 = arith.constant 0 : index
    %2 = vector.load %arg5[%c32, %c0_2] : memref<33x64xf32, #tpu.memory_space<vmem>>, vector<1x64xf32>
    %c0_3 = arith.constant 0 : index
    %c0_4 = arith.constant 0 : index
    %3 = vector.load %arg0[%c0_3, %c0_4] : memref<384x16xf32, #tpu.memory_space<vmem>>, vector<384x16xf32>
    %cst = arith.constant dense<0.000000e+00> : vector<384x64xf32>
    %4 = tpu.matmul %3, %0, %cst {dimension_numbers = #tpu.dot_dimension_numbers<[1], [0], [0], [1], [0, 0, 1, 1], [], []>} : vector<384x16xf32>, vector<16x64xf32>, vector<384x64xf32> -> vector<384x64xf32>
    %5 = vector.broadcast %2 : vector<1x64xf32> to vector<384x64xf32>
    %6 = arith.addf %4, %5 : vector<384x64xf32>
    %c0_5 = arith.constant 0 : index
    %c0_6 = arith.constant 0 : index
    %7 = vector.load %arg11[%c0_5, %c0_6] : memref<384x64xf32, #tpu.memory_space<vmem>>, vector<384x64xf32>
    tpu.vector_store %arg11[%c0_5, %c0_6], %6 {strides = array<i32>} : memref<384x64xf32, #tpu.memory_space<vmem>>, vector<384x64xf32>,
    %cst_7 = arith.constant 0.000000e+00 : f32
    %8 = vector.broadcast %cst_7 : f32 to vector<64x16xf32>
    %c0_i32 = arith.constant 0 : i32
    %c6_i32 = arith.constant 6 : i32
    %9 = arith.addi %c0_i32, %c6_i32 : i32
    %c1_i32 = arith.constant 1 : i32
    %10:2 = scf.for %arg17 = %c0_i32 to %9 step %c1_i32 iter_args(%arg18 = %8, %arg19 = %8) -> (vector<64x16xf32>, vector<64x16xf32>)  : i32 {
      %c64_i32 = arith.constant 64 : i32
      %86 = arith.muli %arg17, %c64_i32 : i32
      %87 = tpu.assume_multiple %86, 64 : i32
      %88 = arith.index_cast %87 : i32 to index
      %c0_68 = arith.constant 0 : index
      %89 = vector.load %arg11[%88, %c0_68] : memref<384x64xf32, #tpu.memory_space<vmem>>, vector<64x64xf32>
      %cst_69 = arith.constant dense<0.000000e+00> : vector<64x64xf32>
      %90 = tpu.matmul %arg18, %1, %cst_69 {dimension_numbers = #tpu.dot_dimension_numbers<[1], [0], [0], [1], [0, 0, 1, 1], [], []>} : vector<64x16xf32>, vector<16x64xf32>, vector<64x64xf32> -> vector<64x64xf32>
      %91 = arith.addf %89, %90 : vector<64x64xf32>
      %92 = vector.extract_strided_slice %91 {offsets = [0, 0], sizes = [64, 16], strides = [1, 1]} : vector<64x64xf32> to vector<64x16xf32>
      %93 = arith.negf %92 : vector<64x16xf32>
      %94 = math.exp %93 : vector<64x16xf32>
      %cst_70 = arith.constant 1.000000e+00 : f32
      %95 = vector.broadcast %cst_70 : f32 to vector<64x16xf32>
      %96 = arith.addf %95, %94 : vector<64x16xf32>
      %97 = arith.divf %95, %96 : vector<64x16xf32>
      %98 = vector.extract_strided_slice %91 {offsets = [0, 16], sizes = [64, 16], strides = [1, 1]} : vector<64x64xf32> to vector<64x16xf32>
      %99 = arith.negf %98 : vector<64x16xf32>
      %100 = math.exp %99 : vector<64x16xf32>
      %cst_71 = arith.constant 1.000000e+00 : f32
      %101 = vector.broadcast %cst_71 : f32 to vector<64x16xf32>
      %102 = arith.addf %101, %100 : vector<64x16xf32>
      %103 = arith.divf %101, %102 : vector<64x16xf32>
      %104 = vector.extract_strided_slice %91 {offsets = [0, 32], sizes = [64, 16], strides = [1, 1]} : vector<64x64xf32> to vector<64x16xf32>
      %105 = math.tanh %104 : vector<64x16xf32>
      %106 = vector.extract_strided_slice %91 {offsets = [0, 48], sizes = [64, 16], strides = [1, 1]} : vector<64x64xf32> to vector<64x16xf32>
      %107 = arith.negf %106 : vector<64x16xf32>
      %108 = math.exp %107 : vector<64x16xf32>
      %cst_72 = arith.constant 1.000000e+00 : f32
      %109 = vector.broadcast %cst_72 : f32 to vector<64x16xf32>
      %110 = arith.addf %109, %108 : vector<64x16xf32>
      %111 = arith.divf %109, %110 : vector<64x16xf32>
      %112 = arith.mulf %103, %arg19 : vector<64x16xf32>
      %113 = arith.mulf %97, %105 : vector<64x16xf32>
      %114 = arith.addf %112, %113 : vector<64x16xf32>
      %115 = math.tanh %114 : vector<64x16xf32>
      %116 = arith.mulf %111, %115 : vector<64x16xf32>
      %117 = arith.index_cast %87 : i32 to index
      %c0_73 = arith.constant 0 : index
      %118 = vector.load %arg1[%117, %c0_73] : memref<384x1xf32, #tpu.memory_space<vmem>>, vector<64x1xf32>
      %119 = arith.subf %116, %arg18 : vector<64x16xf32>
      %120 = vector.broadcast %118 : vector<64x1xf32> to vector<64x16xf32>
      %121 = arith.mulf %120, %119 : vector<64x16xf32>
      %122 = arith.addf %arg18, %121 : vector<64x16xf32>
      %123 = arith.subf %114, %arg19 : vector<64x16xf32>
      %124 = vector.broadcast %118 : vector<64x1xf32> to vector<64x16xf32>
      %125 = arith.mulf %124, %123 : vector<64x16xf32>
      %126 = arith.addf %arg19, %125 : vector<64x16xf32>
      scf.yield %122, %126 : vector<64x16xf32>, vector<64x16xf32>
    }
    %c6_i32_8 = arith.constant 6 : i32
    %c0_9 = arith.constant 0 : index
    %c0_10 = arith.constant 0 : index
    %11 = vector.load %arg6[%c0_9, %c0_10] : memref<65x128xf32, #tpu.memory_space<vmem>>, vector<44x128xf32>
    %c48 = arith.constant 48 : index
    %c0_11 = arith.constant 0 : index
    %12 = vector.load %arg6[%c48, %c0_11] : memref<65x128xf32, #tpu.memory_space<vmem>>, vector<16x128xf32>
    %c64 = arith.constant 64 : index
    %c0_12 = arith.constant 0 : index
    %13 = vector.load %arg6[%c64, %c0_12] : memref<65x128xf32, #tpu.memory_space<vmem>>, vector<1x128xf32>
    %c0_13 = arith.constant 0 : index
    %c0_14 = arith.constant 0 : index
    %14 = vector.load %arg2[%c0_13, %c0_14] : memref<64x44xf32, #tpu.memory_space<vmem>>, vector<64x44xf32>
    %cst_15 = arith.constant dense<0.000000e+00> : vector<64x128xf32>
    %15 = tpu.matmul %14, %11, %cst_15 {dimension_numbers = #tpu.dot_dimension_numbers<[1], [0], [0], [1], [0, 0, 1, 1], [], []>} : vector<64x44xf32>, vector<44x128xf32>, vector<64x128xf32> -> vector<64x128xf32>
    %cst_16 = arith.constant dense<0.000000e+00> : vector<64x128xf32>
    %16 = tpu.matmul %10#0, %12, %cst_16 {dimension_numbers = #tpu.dot_dimension_numbers<[1], [0], [0], [1], [0, 0, 1, 1], [], []>} : vector<64x16xf32>, vector<16x128xf32>, vector<64x128xf32> -> vector<64x128xf32>
    %17 = arith.addf %15, %16 : vector<64x128xf32>
    %18 = vector.broadcast %13 : vector<1x128xf32> to vector<64x128xf32>
    %19 = arith.addf %17, %18 : vector<64x128xf32>
    %20 = vector.extract_strided_slice %19 {offsets = [0, 0], sizes = [64, 64], strides = [1, 1]} : vector<64x128xf32> to vector<64x64xf32>
    %c0_17 = arith.constant 0 : index
    %c0_18 = arith.constant 0 : index
    %21 = vector.load %arg12[%c0_17, %c0_18] : memref<64x64xf32, #tpu.memory_space<vmem>>, vector<64x64xf32>
    tpu.vector_store %arg12[%c0_17, %c0_18], %20 {strides = array<i32>} : memref<64x64xf32, #tpu.memory_space<vmem>>, vector<64x64xf32>,
    %22 = vector.extract_strided_slice %19 {offsets = [0, 64], sizes = [64, 64], strides = [1, 1]} : vector<64x128xf32> to vector<64x64xf32>
    %c0_19 = arith.constant 0 : index
    %c0_20 = arith.constant 0 : index
    %23 = vector.load %arg13[%c0_19, %c0_20] : memref<64x64xf32, #tpu.memory_space<vmem>>, vector<64x64xf32>
    tpu.vector_store %arg13[%c0_19, %c0_20], %22 {strides = array<i32>} : memref<64x64xf32, #tpu.memory_space<vmem>>, vector<64x64xf32>,
    %c0_21 = arith.constant 0 : index
    %c0_22 = arith.constant 0 : index
    %24 = vector.load %arg7[%c0_21, %c0_22] : memref<32x64xf32, #tpu.memory_space<vmem>>, vector<16x64xf32>
    %c16_23 = arith.constant 16 : index
    %c0_24 = arith.constant 0 : index
    %25 = vector.load %arg7[%c16_23, %c0_24] : memref<32x64xf32, #tpu.memory_space<vmem>>, vector<16x64xf32>
    %cst_25 = arith.constant 0.000000e+00 : f32
    %26 = vector.broadcast %cst_25 : f32 to vector<8x16xf32>
    %c0_i32_26 = arith.constant 0 : i32
    %c8_i32 = arith.constant 8 : i32
    %27 = arith.addi %c0_i32_26, %c8_i32 : i32
    %c1_i32_27 = arith.constant 1 : i32
    %28:2 = scf.for %arg17 = %c0_i32_26 to %27 step %c1_i32_27 iter_args(%arg18 = %26, %arg19 = %26) -> (vector<8x16xf32>, vector<8x16xf32>)  : i32 {
      %c8_i32_68 = arith.constant 8 : i32
      %86 = arith.muli %arg17, %c8_i32_68 : i32
      %87 = tpu.assume_multiple %86, 8 : i32
      %88 = arith.index_cast %87 : i32 to index
      %c0_69 = arith.constant 0 : index
      %89 = vector.load %arg12[%88, %c0_69] : memref<64x64xf32, #tpu.memory_space<vmem>>, vector<8x64xf32>
      %cst_70 = arith.constant dense<0.000000e+00> : vector<8x64xf32>
      %90 = tpu.matmul %arg18, %24, %cst_70 {dimension_numbers = #tpu.dot_dimension_numbers<[1], [0], [0], [1], [0, 0, 1, 1], [], []>} : vector<8x16xf32>, vector<16x64xf32>, vector<8x64xf32> -> vector<8x64xf32>
      %91 = arith.addf %89, %90 : vector<8x64xf32>
      %92 = vector.extract_strided_slice %91 {offsets = [0, 0], sizes = [8, 16], strides = [1, 1]} : vector<8x64xf32> to vector<8x16xf32>
      %93 = arith.negf %92 : vector<8x16xf32>
      %94 = math.exp %93 : vector<8x16xf32>
      %cst_71 = arith.constant 1.000000e+00 : f32
      %95 = vector.broadcast %cst_71 : f32 to vector<8x16xf32>
      %96 = arith.addf %95, %94 : vector<8x16xf32>
      %97 = arith.divf %95, %96 : vector<8x16xf32>
      %98 = vector.extract_strided_slice %91 {offsets = [0, 16], sizes = [8, 16], strides = [1, 1]} : vector<8x64xf32> to vector<8x16xf32>
      %99 = arith.negf %98 : vector<8x16xf32>
      %100 = math.exp %99 : vector<8x16xf32>
      %cst_72 = arith.constant 1.000000e+00 : f32
      %101 = vector.broadcast %cst_72 : f32 to vector<8x16xf32>
      %102 = arith.addf %101, %100 : vector<8x16xf32>
      %103 = arith.divf %101, %102 : vector<8x16xf32>
      %104 = vector.extract_strided_slice %91 {offsets = [0, 32], sizes = [8, 16], strides = [1, 1]} : vector<8x64xf32> to vector<8x16xf32>
      %105 = math.tanh %104 : vector<8x16xf32>
      %106 = vector.extract_strided_slice %91 {offsets = [0, 48], sizes = [8, 16], strides = [1, 1]} : vector<8x64xf32> to vector<8x16xf32>
      %107 = arith.negf %106 : vector<8x16xf32>
      %108 = math.exp %107 : vector<8x16xf32>
      %cst_73 = arith.constant 1.000000e+00 : f32
      %109 = vector.broadcast %cst_73 : f32 to vector<8x16xf32>
      %110 = arith.addf %109, %108 : vector<8x16xf32>
      %111 = arith.divf %109, %110 : vector<8x16xf32>
      %112 = arith.mulf %103, %arg19 : vector<8x16xf32>
      %113 = arith.mulf %97, %105 : vector<8x16xf32>
      %114 = arith.addf %112, %113 : vector<8x16xf32>
      %115 = math.tanh %114 : vector<8x16xf32>
      %116 = arith.mulf %111, %115 : vector<8x16xf32>
      %117 = arith.index_cast %87 : i32 to index
      %c0_74 = arith.constant 0 : index
      %118 = vector.load %arg3[%117, %c0_74] : memref<64x1xf32, #tpu.memory_space<vmem>>, vector<8x1xf32>
      %119 = arith.subf %116, %arg18 : vector<8x16xf32>
      %120 = vector.broadcast %118 : vector<8x1xf32> to vector<8x16xf32>
      %121 = arith.mulf %120, %119 : vector<8x16xf32>
      %122 = arith.addf %arg18, %121 : vector<8x16xf32>
      %123 = arith.subf %114, %arg19 : vector<8x16xf32>
      %124 = vector.broadcast %118 : vector<8x1xf32> to vector<8x16xf32>
      %125 = arith.mulf %124, %123 : vector<8x16xf32>
      %126 = arith.addf %arg19, %125 : vector<8x16xf32>
      %127 = vector.broadcast %118 : vector<8x1xf32> to vector<8x16xf32>
      %128 = arith.mulf %127, %116 : vector<8x16xf32>
      %129 = arith.index_cast %87 : i32 to index
      %c0_75 = arith.constant 0 : index
      %130 = vector.load %arg14[%129, %c0_75] : memref<64x16xf32, #tpu.memory_space<vmem>>, vector<8x16xf32>
      tpu.vector_store %arg14[%129, %c0_75], %128 {strides = array<i32>} : memref<64x16xf32, #tpu.memory_space<vmem>>, vector<8x16xf32>,
      scf.yield %122, %126 : vector<8x16xf32>, vector<8x16xf32>
    }
    %c8_i32_28 = arith.constant 8 : i32
    %c0_i32_29 = arith.constant 0 : i32
    %c8_i32_30 = arith.constant 8 : i32
    %29 = arith.addi %c0_i32_29, %c8_i32_30 : i32
    %c1_i32_31 = arith.constant 1 : i32
    %30:2 = scf.for %arg17 = %c0_i32_29 to %29 step %c1_i32_31 iter_args(%arg18 = %26, %arg19 = %26) -> (vector<8x16xf32>, vector<8x16xf32>)  : i32 {
      %c7_i32_68 = arith.constant 7 : i32
      %86 = arith.subi %c7_i32_68, %arg17 : i32
      %c8_i32_69 = arith.constant 8 : i32
      %87 = arith.muli %86, %c8_i32_69 : i32
      %88 = tpu.assume_multiple %87, 8 : i32
      %89 = arith.index_cast %88 : i32 to index
      %c0_70 = arith.constant 0 : index
      %90 = vector.load %arg13[%89, %c0_70] : memref<64x64xf32, #tpu.memory_space<vmem>>, vector<8x64xf32>
      %cst_71 = arith.constant dense<0.000000e+00> : vector<8x64xf32>
      %91 = tpu.matmul %arg18, %25, %cst_71 {dimension_numbers = #tpu.dot_dimension_numbers<[1], [0], [0], [1], [0, 0, 1, 1], [], []>} : vector<8x16xf32>, vector<16x64xf32>, vector<8x64xf32> -> vector<8x64xf32>
      %92 = arith.addf %90, %91 : vector<8x64xf32>
      %93 = vector.extract_strided_slice %92 {offsets = [0, 0], sizes = [8, 16], strides = [1, 1]} : vector<8x64xf32> to vector<8x16xf32>
      %94 = arith.negf %93 : vector<8x16xf32>
      %95 = math.exp %94 : vector<8x16xf32>
      %cst_72 = arith.constant 1.000000e+00 : f32
      %96 = vector.broadcast %cst_72 : f32 to vector<8x16xf32>
      %97 = arith.addf %96, %95 : vector<8x16xf32>
      %98 = arith.divf %96, %97 : vector<8x16xf32>
      %99 = vector.extract_strided_slice %92 {offsets = [0, 16], sizes = [8, 16], strides = [1, 1]} : vector<8x64xf32> to vector<8x16xf32>
      %100 = arith.negf %99 : vector<8x16xf32>
      %101 = math.exp %100 : vector<8x16xf32>
      %cst_73 = arith.constant 1.000000e+00 : f32
      %102 = vector.broadcast %cst_73 : f32 to vector<8x16xf32>
      %103 = arith.addf %102, %101 : vector<8x16xf32>
      %104 = arith.divf %102, %103 : vector<8x16xf32>
      %105 = vector.extract_strided_slice %92 {offsets = [0, 32], sizes = [8, 16], strides = [1, 1]} : vector<8x64xf32> to vector<8x16xf32>
      %106 = math.tanh %105 : vector<8x16xf32>
      %107 = vector.extract_strided_slice %92 {offsets = [0, 48], sizes = [8, 16], strides = [1, 1]} : vector<8x64xf32> to vector<8x16xf32>
      %108 = arith.negf %107 : vector<8x16xf32>
      %109 = math.exp %108 : vector<8x16xf32>
      %cst_74 = arith.constant 1.000000e+00 : f32
      %110 = vector.broadcast %cst_74 : f32 to vector<8x16xf32>
      %111 = arith.addf %110, %109 : vector<8x16xf32>
      %112 = arith.divf %110, %111 : vector<8x16xf32>
      %113 = arith.mulf %104, %arg19 : vector<8x16xf32>
      %114 = arith.mulf %98, %106 : vector<8x16xf32>
      %115 = arith.addf %113, %114 : vector<8x16xf32>
      %116 = math.tanh %115 : vector<8x16xf32>
      %117 = arith.mulf %112, %116 : vector<8x16xf32>
      %118 = arith.index_cast %88 : i32 to index
      %c0_75 = arith.constant 0 : index
      %119 = vector.load %arg3[%118, %c0_75] : memref<64x1xf32, #tpu.memory_space<vmem>>, vector<8x1xf32>
      %120 = arith.subf %117, %arg18 : vector<8x16xf32>
      %121 = vector.broadcast %119 : vector<8x1xf32> to vector<8x16xf32>
      %122 = arith.mulf %121, %120 : vector<8x16xf32>
      %123 = arith.addf %arg18, %122 : vector<8x16xf32>
      %124 = arith.subf %115, %arg19 : vector<8x16xf32>
      %125 = vector.broadcast %119 : vector<8x1xf32> to vector<8x16xf32>
      %126 = arith.mulf %125, %124 : vector<8x16xf32>
      %127 = arith.addf %arg19, %126 : vector<8x16xf32>
      %128 = vector.broadcast %119 : vector<8x1xf32> to vector<8x16xf32>
      %129 = arith.mulf %128, %117 : vector<8x16xf32>
      %130 = arith.index_cast %88 : i32 to index
      %c0_76 = arith.constant 0 : index
      %131 = vector.load %arg15[%130, %c0_76] : memref<64x16xf32, #tpu.memory_space<vmem>>, vector<8x16xf32>
      tpu.vector_store %arg15[%130, %c0_76], %129 {strides = array<i32>} : memref<64x16xf32, #tpu.memory_space<vmem>>, vector<8x16xf32>,
      scf.yield %123, %127 : vector<8x16xf32>, vector<8x16xf32>
    }
    %c8_i32_32 = arith.constant 8 : i32
    %c0_33 = arith.constant 0 : index
    %c0_34 = arith.constant 0 : index
    %31 = vector.load %arg8[%c0_33, %c0_34] : memref<33x16xf32, #tpu.memory_space<vmem>>, vector<16x16xf32>
    %c16_35 = arith.constant 16 : index
    %c0_36 = arith.constant 0 : index
    %32 = vector.load %arg8[%c16_35, %c0_36] : memref<33x16xf32, #tpu.memory_space<vmem>>, vector<16x16xf32>
    %c32_37 = arith.constant 32 : index
    %c0_38 = arith.constant 0 : index
    %33 = vector.load %arg8[%c32_37, %c0_38] : memref<33x16xf32, #tpu.memory_space<vmem>>, vector<1x16xf32>
    %c0_39 = arith.constant 0 : index
    %c0_40 = arith.constant 0 : index
    %34 = vector.load %arg14[%c0_39, %c0_40] : memref<64x16xf32, #tpu.memory_space<vmem>>, vector<64x16xf32>
    %cst_41 = arith.constant dense<0.000000e+00> : vector<64x16xf32>
    %35 = tpu.matmul %34, %31, %cst_41 {dimension_numbers = #tpu.dot_dimension_numbers<[1], [0], [0], [1], [0, 0, 1, 1], [], []>} : vector<64x16xf32>, vector<16x16xf32>, vector<64x16xf32> -> vector<64x16xf32>
    %c0_42 = arith.constant 0 : index
    %c0_43 = arith.constant 0 : index
    %36 = vector.load %arg15[%c0_42, %c0_43] : memref<64x16xf32, #tpu.memory_space<vmem>>, vector<64x16xf32>
    %cst_44 = arith.constant dense<0.000000e+00> : vector<64x16xf32>
    %37 = tpu.matmul %36, %32, %cst_44 {dimension_numbers = #tpu.dot_dimension_numbers<[1], [0], [0], [1], [0, 0, 1, 1], [], []>} : vector<64x16xf32>, vector<16x16xf32>, vector<64x16xf32> -> vector<64x16xf32>
    %38 = arith.addf %35, %37 : vector<64x16xf32>
    %39 = vector.broadcast %33 : vector<1x16xf32> to vector<64x16xf32>
    %40 = arith.addf %38, %39 : vector<64x16xf32>
    %c0_45 = arith.constant 0 : index
    %c0_46 = arith.constant 0 : index
    %41 = vector.load %arg16[%c0_45, %c0_46] : memref<64x16xf32, #tpu.memory_space<vmem>>, vector<64x16xf32>
    tpu.vector_store %arg16[%c0_45, %c0_46], %40 {strides = array<i32>} : memref<64x16xf32, #tpu.memory_space<vmem>>, vector<64x16xf32>,
    %c0_47 = arith.constant 0 : index
    %c0_48 = arith.constant 0 : index
    %42 = vector.load %arg9[%c0_47, %c0_48] : memref<25x16xf32, #tpu.memory_space<vmem>>, vector<16x16xf32>
    %c16_49 = arith.constant 16 : index
    %c0_50 = arith.constant 0 : index
    %43 = vector.load %arg9[%c16_49, %c0_50] : memref<25x16xf32, #tpu.memory_space<vmem>>, vector<1x16xf32>
    %c24 = arith.constant 24 : index
    %c0_51 = arith.constant 0 : index
    %44 = vector.load %arg9[%c24, %c0_51] : memref<25x16xf32, #tpu.memory_space<vmem>>, vector<1x16xf32>
    %45 = tpu.iota {dimensions = array<i32: 1>} : vector<8x16xi32>
    %c0_52 = arith.constant 0 : index
    %c0_53 = arith.constant 0 : index
    %46 = vector.load %arg16[%c0_52, %c0_53] : memref<64x16xf32, #tpu.memory_space<vmem>>, vector<8x16xf32>
    %c0_54 = arith.constant 0 : index
    %c0_55 = arith.constant 0 : index
    %47 = vector.load %arg4[%c0_54, %c0_55] : memref<64x1xi32, #tpu.memory_space<vmem>>, vector<8x1xi32>
    %48 = vector.broadcast %47 : vector<8x1xi32> to vector<8x16xi32>
    %49 = arith.cmpi eq, %45, %48 : vector<8x16xi32>
    %50 = arith.extui %49 : vector<8x16xi1> to vector<8x16xi32>
    %51 = arith.sitofp %50 : vector<8x16xi32> to vector<8x16xf32>
    %52 = vector.broadcast %43 : vector<1x16xf32> to vector<8x16xf32>
    %53 = arith.addf %52, %46 : vector<8x16xf32>
    %54 = arith.mulf %53, %51 : vector<8x16xf32>
    %cst_56 = arith.constant dense<0.000000e+00> : vector<8xf32>
    %55 = vector.multi_reduction <add>, %54, %cst_56 [1] : vector<8x16xf32> to vector<8xf32>
    %56 = vector.shape_cast %55 : vector<8xf32> to vector<8x1xf32>
    %57 = vector.broadcast %43 : vector<1x16xf32> to vector<8x16xf32>
    %58 = arith.addf %57, %46 : vector<8x16xf32>
    %c1_i32_57 = arith.constant 1 : i32
    %c7_i32 = arith.constant 7 : i32
    %59 = arith.addi %c1_i32_57, %c7_i32 : i32
    %c1_i32_58 = arith.constant 1 : i32
    %60:4 = scf.for %arg17 = %c1_i32_57 to %59 step %c1_i32_58 iter_args(%arg18 = %58, %arg19 = %56, %arg20 = %51, %arg21 = %51) -> (vector<8x16xf32>, vector<8x1xf32>, vector<8x16xf32>, vector<8x16xf32>)  : i32 {
      %c8_i32_68 = arith.constant 8 : i32
      %86 = arith.muli %arg17, %c8_i32_68 : i32
      %87 = tpu.assume_multiple %86, 8 : i32
      %88 = arith.index_cast %87 : i32 to index
      %c0_69 = arith.constant 0 : index
      %89 = vector.load %arg3[%88, %c0_69] : memref<64x1xf32, #tpu.memory_space<vmem>>, vector<8x1xf32>
      %90 = arith.index_cast %87 : i32 to index
      %c0_70 = arith.constant 0 : index
      %91 = vector.load %arg16[%90, %c0_70] : memref<64x16xf32, #tpu.memory_space<vmem>>, vector<8x16xf32>
      %92 = arith.index_cast %87 : i32 to index
      %c0_71 = arith.constant 0 : index
      %93 = vector.load %arg4[%92, %c0_71] : memref<64x1xi32, #tpu.memory_space<vmem>>, vector<8x1xi32>
      %94 = vector.broadcast %93 : vector<8x1xi32> to vector<8x16xi32>
      %95 = arith.cmpi eq, %45, %94 : vector<8x16xi32>
      %96 = arith.extui %95 : vector<8x16xi1> to vector<8x16xi32>
      %97 = arith.sitofp %96 : vector<8x16xi32> to vector<8x16xf32>
      %98 = vector.shape_cast %arg21 : vector<8x16xf32> to vector<8x16x1xf32>
      %99 = vector.shape_cast %42 : vector<16x16xf32> to vector<1x16x16xf32>
      %100 = vector.broadcast %98 : vector<8x16x1xf32> to vector<8x16x16xf32>
      %101 = vector.broadcast %99 : vector<1x16x16xf32> to vector<8x16x16xf32>
      %102 = arith.mulf %100, %101 : vector<8x16x16xf32>
      %cst_72 = arith.constant dense<0.000000e+00> : vector<8x16xf32>
      %103 = vector.multi_reduction <add>, %102, %cst_72 [1] : vector<8x16x16xf32> to vector<8x16xf32>
      %104 = arith.addf %103, %91 : vector<8x16xf32>
      %105 = arith.mulf %104, %97 : vector<8x16xf32>
      %cst_73 = arith.constant dense<0.000000e+00> : vector<8xf32>
      %106 = vector.multi_reduction <add>, %105, %cst_73 [1] : vector<8x16xf32> to vector<8xf32>
      %107 = vector.shape_cast %106 : vector<8xf32> to vector<8x1xf32>
      %108 = arith.mulf %89, %107 : vector<8x1xf32>
      %109 = arith.addf %arg19, %108 : vector<8x1xf32>
      %110 = vector.shape_cast %arg18 : vector<8x16xf32> to vector<8x16x1xf32>
      %111 = vector.shape_cast %42 : vector<16x16xf32> to vector<1x16x16xf32>
      %112 = vector.broadcast %110 : vector<8x16x1xf32> to vector<8x16x16xf32>
      %113 = vector.broadcast %111 : vector<1x16x16xf32> to vector<8x16x16xf32>
      %114 = arith.addf %112, %113 : vector<8x16x16xf32>
      %115 = vector.shape_cast %91 : vector<8x16xf32> to vector<8x1x16xf32>
      %116 = vector.broadcast %115 : vector<8x1x16xf32> to vector<8x16x16xf32>
      %117 = arith.addf %114, %116 : vector<8x16x16xf32>
      %cst_74 = arith.constant dense<0xFF800000> : vector<8x16xf32>
      %118 = vector.multi_reduction <maximumf>, %117, %cst_74 [1] : vector<8x16x16xf32> to vector<8x16xf32>
      %119 = vector.shape_cast %118 : vector<8x16xf32> to vector<8x1x16xf32>
      %120 = vector.shape_cast %119 : vector<8x1x16xf32> to vector<8x16xf32>
      %121 = vector.broadcast %119 : vector<8x1x16xf32> to vector<8x16x16xf32>
      %122 = arith.subf %117, %121 : vector<8x16x16xf32>
      %123 = math.exp %122 : vector<8x16x16xf32>
      %cst_75 = arith.constant dense<0.000000e+00> : vector<8x16xf32>
      %124 = vector.multi_reduction <add>, %123, %cst_75 [1] : vector<8x16x16xf32> to vector<8x16xf32>
      %125 = math.log %124 : vector<8x16xf32>
      %126 = arith.addf %120, %125 : vector<8x16xf32>
      %127 = arith.subf %126, %arg18 : vector<8x16xf32>
      %128 = vector.broadcast %89 : vector<8x1xf32> to vector<8x16xf32>
      %129 = arith.mulf %128, %127 : vector<8x16xf32>
      %130 = arith.addf %arg18, %129 : vector<8x16xf32>
      %131 = arith.subf %97, %arg20 : vector<8x16xf32>
      %132 = vector.broadcast %89 : vector<8x1xf32> to vector<8x16xf32>
      %133 = arith.mulf %132, %131 : vector<8x16xf32>
      %134 = arith.addf %arg20, %133 : vector<8x16xf32>
      scf.yield %130, %109, %134, %97 : vector<8x16xf32>, vector<8x1xf32>, vector<8x16xf32>, vector<8x16xf32>
    }
    %c7_i32_59 = arith.constant 7 : i32
    %61 = vector.broadcast %44 : vector<1x16xf32> to vector<8x16xf32>
    %62 = arith.mulf %61, %60#2 : vector<8x16xf32>
    %cst_60 = arith.constant dense<0.000000e+00> : vector<8xf32>
    %63 = vector.multi_reduction <add>, %62, %cst_60 [1] : vector<8x16xf32> to vector<8xf32>
    %64 = vector.shape_cast %63 : vector<8xf32> to vector<8x1xf32>
    %65 = arith.addf %60#1, %64 : vector<8x1xf32>
    %66 = vector.broadcast %44 : vector<1x16xf32> to vector<8x16xf32>
    %67 = arith.addf %60#0, %66 : vector<8x16xf32>
    %cst_61 = arith.constant dense<0xFF800000> : vector<8xf32>
    %68 = vector.multi_reduction <maximumf>, %67, %cst_61 [1] : vector<8x16xf32> to vector<8xf32>
    %69 = vector.shape_cast %68 : vector<8xf32> to vector<8x1xf32>
    %70 = vector.broadcast %69 : vector<8x1xf32> to vector<8x16xf32>
    %71 = arith.subf %67, %70 : vector<8x16xf32>
    %72 = math.exp %71 : vector<8x16xf32>
    %cst_62 = arith.constant dense<0.000000e+00> : vector<8xf32>
    %73 = vector.multi_reduction <add>, %72, %cst_62 [1] : vector<8x16xf32> to vector<8xf32>
    %74 = vector.shape_cast %73 : vector<8xf32> to vector<8x1xf32>
    %75 = math.log %74 : vector<8x1xf32>
    %76 = arith.addf %69, %75 : vector<8x1xf32>
    %c0_63 = arith.constant 0 : index
    %c0_64 = arith.constant 0 : index
    %77 = vector.load %arg3[%c0_63, %c0_64] : memref<64x1xf32, #tpu.memory_space<vmem>>, vector<8x1xf32>
    %78 = arith.subf %65, %76 : vector<8x1xf32>
    %79 = arith.mulf %78, %77 : vector<8x1xf32>
    %80 = vector.shape_cast %79 : vector<8x1xf32> to vector<1x8x1xf32>
    %cst_65 = arith.constant dense<0.000000e+00> : vector<1xf32>
    %81 = vector.multi_reduction <add>, %80, %cst_65 [1, 2] : vector<1x8x1xf32> to vector<1xf32>
    %82 = vector.shape_cast %81 : vector<1xf32> to vector<1x1x1xf32>
    %83 = vector.extract %82[0, 0, 0] : f32 from vector<1x1x1xf32>
    %84 = vector.broadcast %83 : f32 to vector<1x1xf32>
    %c0_66 = arith.constant 0 : index
    %c0_67 = arith.constant 0 : index
    %85 = vector.load %arg10[%c0_66, %c0_67] : memref<1x1xf32, #tpu.memory_space<vmem>>, vector<1x1xf32>
    tpu.vector_store %arg10[%c0_66, %c0_67], %84 {strides = array<i32>} : memref<1x1xf32, #tpu.memory_space<vmem>>, vector<1x1xf32>,
    return
  }
}

</mosaic_0001>

<bundles_post_ra>
// kernel: bilstm_crf_forward.1
= control target key start
LH: loop header
LB: loop body
LE: loop exit
PB: predicated region body
PF: predicated region fallthrough
CT: control target
= control target key end

     0   :  { %vm90_vm0 = vcmask 130048   ;;  %s4641_s0 = inlined_call_operand.vmem [shape: f32[384,16], index: 0, kind: input, shape index: {}]   ;;  %s4642_s1 = inlined_call_operand.vmem [shape: f32[384,1], index: 1, kind: input, shape index: {}]   ;;  %s4643_s2 = inlined_call_operand.vmem [shape: f32[64,44], index: 2, kind: input, shape index: {}]   ;;  %s4644_s3 = inlined_call_operand.vmem [shape: f32[64,1], index: 3, kind: input, shape index: {}]   ;;  %s4645_s4 = inlined_call_operand.vmem [shape: s32[64,1], index: 4, kind: input, shape index: {}]   ;;  %s4646_s5 = inlined_call_operand.vmem [shape: f32[33,64], index: 5, kind: input, shape index: {}]   ;;  %s4647_s6 = inlined_call_operand.vmem [shape: f32[65,128], index: 6, kind: input, shape index: {}]   ;;  %s4648_s7 = inlined_call_operand.vmem [shape: f32[32,64], index: 7, kind: input, shape index: {}]   ;;  %s4649_s8 = inlined_call_operand.vmem [shape: f32[33,16], index: 8, kind: input, shape index: {}]   ;;  %s4650_s9 = inlined_call_operand.vmem [shape: f32[25,16], index: 9, kind: input, shape index: {}]   ;;  %s4651_s10 = inlined_call_operand.hbm [shape: f32[1,1], index: 10, kind: output, shape index: {}]  }
   0x1   :  { %v37_v0 = vld [vmem:[%s4646_s5 + $0x8] sm:$0xff]  ;;  %v36_v1 = vld [vmem:[%s4646_s5] sm:$0xff] }
   0x2   :  { %v65_v2 = vld [vmem:[%s4641_s0 + $0xc0] sm:$0xff]  ;;  %2562 = vmatpush.msra.mxu2 %v37_v0  ;;  %2563 = vmatpush.msra.mxu3 %v37_v0 }
   0x3   :  { %v77_v3 = vld [vmem:[%s4641_s0 + $0x120] sm:$0xff] }
   0x4   :  { %15 = vsyncpa [#allocation9], 0  ;;  %v3339_v4 = vld [vmem:[%s4646_s5 + $0x10] sm:$0xff]  ;;  %v3344_v5 = vld [vmem:[%s4646_s5 + $0x18] sm:$0xff]  ;;  %249 = vmatpush.msra.mxu0 %v37_v0  ;;  %2561 = vmatpush.msra.mxu1 %v37_v0  ;;  %vm396_vm1 = vcmask 523264  }
   0x5   :  { %2565 = vmatpush.msra.mxu2 %v36_v1  ;;  %2566 = vmatpush.msra.mxu3 %v36_v1  ;;  %v41_v6 = vld [vmem:[%s4641_s0] sm:$0xff]  ;;  %v66_v8 = vld [vmem:[%s4641_s0 + $0xc8] sm:$0xff]  ;;  %v67_v12 = vld [vmem:[%s4641_s0 + $0xd0] sm:$0xff] }
   0x6   :  { %v53_v7 = vld [vmem:[%s4641_s0 + $0x60] sm:$0xff]  ;;  %2478 = vmatmul.msk.f32.vlgmr.msra.gmra.mxu2 %vm90_vm0, %v65_v2  ;;  %2490 = vmatmul.msk.f32.vlgmr.msra.gmra.mxu3 %vm90_vm0, %v77_v3  ;;  %v78_v9 = vld [vmem:[%s4641_s0 + $0x128] sm:$0xff]  ;;  %v79_v13 = vld [vmem:[%s4641_s0 + $0x130] sm:$0xff] }
   0x7   :  { %250 = vmatpush.msra.mxu0 %v36_v1  ;;  %2564 = vmatpush.msra.mxu1 %v36_v1  ;;  %v42_v10 = vld [vmem:[%s4641_s0 + $0x8] sm:$0xff]  ;;  %v43_v14 = vld [vmem:[%s4641_s0 + $0x10] sm:$0xff]  ;;  %v68_v16 = vld [vmem:[%s4641_s0 + $0xd8] sm:$0xff] }
   0x8   :  { %2454 = vmatmul.msk.f32.vlgmr.msra.gmra.mxu0 %vm90_vm0, %v41_v6  ;;  %2466 = vmatmul.msk.f32.vlgmr.msra.gmra.mxu1 %vm90_vm0, %v53_v7  ;;  %v54_v11 = vld [vmem:[%s4641_s0 + $0x68] sm:$0xff]  ;;  %v55_v15 = vld [vmem:[%s4641_s0 + $0x70] sm:$0xff]  ;;  %v80_v17 = vld [vmem:[%s4641_s0 + $0x138] sm:$0xff] }
   0x9   :  { %v44_v18 = vld [vmem:[%s4641_s0 + $0x18] sm:$0xff]  ;;  %v69_v20 = vld [vmem:[%s4641_s0 + $0xe0] sm:$0xff]  ;;  %v70_v24 = vld [vmem:[%s4641_s0 + $0xe8] sm:$0xff] }
   0xa   :  { %v56_v19 = vld [vmem:[%s4641_s0 + $0x78] sm:$0xff]  ;;  %v81_v21 = vld [vmem:[%s4641_s0 + $0x140] sm:$0xff]  ;;  %v82_v25 = vld [vmem:[%s4641_s0 + $0x148] sm:$0xff] }
   0xb   :  { %v45_v22 = vld [vmem:[%s4641_s0 + $0x20] sm:$0xff]  ;;  %v46_v26 = vld [vmem:[%s4641_s0 + $0x28] sm:$0xff]  ;;  %v71_v28 = vld [vmem:[%s4641_s0 + $0xf0] sm:$0xff] }
   0xc   :  { %v57_v23 = vld [vmem:[%s4641_s0 + $0x80] sm:$0xff]  ;;  %v58_v27 = vld [vmem:[%s4641_s0 + $0x88] sm:$0xff]  ;;  %v83_v29 = vld [vmem:[%s4641_s0 + $0x150] sm:$0xff] }
   0xd   :  { %v47_v30 = vld [vmem:[%s4641_s0 + $0x30] sm:$0xff]  ;;  %v72_v32 = vld [vmem:[%s4641_s0 + $0xf8] sm:$0xff]  ;;  %v73_v36 = vld [vmem:[%s4641_s0 + $0x100] sm:$0xff] }
   0xe   :  { %2479 = vmatmul.msk.f32.gmra.mxu2 %vm90_vm0, %v66_v8  ;;  %2491 = vmatmul.msk.f32.gmra.mxu3 %vm90_vm0, %v78_v9  ;;  %v59_v31 = vld [vmem:[%s4641_s0 + $0x90] sm:$0xff]  ;;  %v84_v33 = vld [vmem:[%s4641_s0 + $0x158] sm:$0xff]  ;;  %v85_v37 = vld [vmem:[%s4641_s0 + $0x160] sm:$0xff] }
   0xf   :  { %v48_v34 = vld [vmem:[%s4641_s0 + $0x38] sm:$0xff]  ;;  %v49_v38 = vld [vmem:[%s4641_s0 + $0x40] sm:$0xff]  ;;  %v74_v40 = vld [vmem:[%s4641_s0 + $0x108] sm:$0xff] }
  0x10   :  { %2455 = vmatmul.msk.f32.gmra.mxu0 %vm90_vm0, %v42_v10  ;;  %2467 = vmatmul.msk.f32.gmra.mxu1 %vm90_vm0, %v54_v11  ;;  %v60_v35 = vld [vmem:[%s4641_s0 + $0x98] sm:$0xff]  ;;  %v61_v39 = vld [vmem:[%s4641_s0 + $0xa0] sm:$0xff]  ;;  %v86_v41 = vld [vmem:[%s4641_s0 + $0x168] sm:$0xff] }
  0x11   :  { %v50_v42 = vld [vmem:[%s4641_s0 + $0x48] sm:$0xff]  ;;  %v75_v44 = vld [vmem:[%s4641_s0 + $0x110] sm:$0xff]  ;;  %v76_v48 = vld [vmem:[%s4641_s0 + $0x118] sm:$0xff] }
  0x12   :  { %v62_v43 = vld [vmem:[%s4641_s0 + $0xa8] sm:$0xff]  ;;  %v87_v45 = vld [vmem:[%s4641_s0 + $0x170] sm:$0xff]  ;;  %v88_v49 = vld [vmem:[%s4641_s0 + $0x178] sm:$0xff] }
  0x13   :  { %v51_v46 = vld [vmem:[%s4641_s0 + $0x50] sm:$0xff]  ;;  %v52_v50 = vld [vmem:[%s4641_s0 + $0x58] sm:$0xff]  ;;  %v3535_v52 = vld [vmem:[%s4646_s5 + $0x20] ss:$0 sm:$0xff] }
  0x14   :  { %v63_v47 = vld [vmem:[%s4641_s0 + $0xb0] sm:$0xff]  ;;  %v64_v51 = vld [vmem:[%s4641_s0 + $0xb8] sm:$0xff]  ;;  %s3665_s0 = smov 0  }
  0x16   :  { %2480 = vmatmul.msk.f32.gmra.mxu2 %vm90_vm0, %v67_v12  ;;  %2492 = vmatmul.msk.f32.gmra.mxu3 %vm90_vm0, %v79_v13 }
  0x18   :  { %2456 = vmatmul.msk.f32.gmra.mxu0 %vm90_vm0, %v43_v14  ;;  %2468 = vmatmul.msk.f32.gmra.mxu1 %vm90_vm0, %v55_v15 }
  0x1e   :  { %2481 = vmatmul.msk.f32.gmra.mxu2 %vm90_vm0, %v68_v16  ;;  %2493 = vmatmul.msk.f32.gmra.mxu3 %vm90_vm0, %v80_v17 }
  0x20   :  { %2457 = vmatmul.msk.f32.gmra.mxu0 %vm90_vm0, %v44_v18  ;;  %2469 = vmatmul.msk.f32.gmra.mxu1 %vm90_vm0, %v56_v19 }
  0x26   :  { %2482 = vmatmul.msk.f32.gmra.mxu2 %vm90_vm0, %v69_v20  ;;  %2494 = vmatmul.msk.f32.gmra.mxu3 %vm90_vm0, %v81_v21 }
  0x28   :  { %2458 = vmatmul.msk.f32.gmra.mxu0 %vm90_vm0, %v45_v22  ;;  %2470 = vmatmul.msk.f32.gmra.mxu1 %vm90_vm0, %v57_v23 }
  0x2e   :  { %2483 = vmatmul.msk.f32.gmra.mxu2 %vm90_vm0, %v70_v24  ;;  %2495 = vmatmul.msk.f32.gmra.mxu3 %vm90_vm0, %v82_v25 }
  0x30   :  { %2459 = vmatmul.msk.f32.gmra.mxu0 %vm90_vm0, %v46_v26  ;;  %2471 = vmatmul.msk.f32.gmra.mxu1 %vm90_vm0, %v58_v27 }
  0x36   :  { %2484 = vmatmul.msk.f32.gmra.mxu2 %vm90_vm0, %v71_v28  ;;  %2496 = vmatmul.msk.f32.gmra.mxu3 %vm90_vm0, %v83_v29 }
  0x38   :  { %2460 = vmatmul.msk.f32.gmra.mxu0 %vm90_vm0, %v47_v30  ;;  %2472 = vmatmul.msk.f32.gmra.mxu1 %vm90_vm0, %v59_v31 }
  0x3e   :  { %2485 = vmatmul.msk.f32.gmra.mxu2 %vm90_vm0, %v72_v32  ;;  %2497 = vmatmul.msk.f32.gmra.mxu3 %vm90_vm0, %v84_v33 }
  0x40   :  { %2461 = vmatmul.msk.f32.gmra.mxu0 %vm90_vm0, %v48_v34  ;;  %2473 = vmatmul.msk.f32.gmra.mxu1 %vm90_vm0, %v60_v35 }
  0x46   :  { %2486 = vmatmul.msk.f32.gmra.mxu2 %vm90_vm0, %v73_v36  ;;  %2498 = vmatmul.msk.f32.gmra.mxu3 %vm90_vm0, %v85_v37 }
  0x48   :  { %2462 = vmatmul.msk.f32.gmra.mxu0 %vm90_vm0, %v49_v38  ;;  %2474 = vmatmul.msk.f32.gmra.mxu1 %vm90_vm0, %v61_v39 }
  0x4e   :  { %2487 = vmatmul.msk.f32.gmra.mxu2 %vm90_vm0, %v74_v40  ;;  %2499 = vmatmul.msk.f32.gmra.mxu3 %vm90_vm0, %v86_v41 }
  0x50   :  { %2463 = vmatmul.msk.f32.gmra.mxu0 %vm90_vm0, %v50_v42  ;;  %2475 = vmatmul.msk.f32.gmra.mxu1 %vm90_vm0, %v62_v43 }
  0x56   :  { %2488 = vmatmul.msk.f32.gmra.mxu2 %vm90_vm0, %v75_v44  ;;  %2500 = vmatmul.msk.f32.gmra.mxu3 %vm90_vm0, %v87_v45 }
  0x58   :  { %2464 = vmatmul.msk.f32.gmra.mxu0 %vm90_vm0, %v51_v46  ;;  %2476 = vmatmul.msk.f32.gmra.mxu1 %vm90_vm0, %v63_v47 }
  0x5e   :  { %2489 = vmatmul.msk.f32.gmra.mxu2 %vm90_vm0, %v76_v48  ;;  %2501 = vmatmul.msk.f32.gmra.mxu3 %vm90_vm0, %v88_v49 }
  0x60   :  { %2465 = vmatmul.msk.f32.gmra.mxu0 %vm90_vm0, %v52_v50  ;;  %2477 = vmatmul.msk.f32.gmra.mxu1 %vm90_vm0, %v64_v51 }
  0x85   :  { %v252_v53 = vpop.f32.mrf.mxu0  ;;  %v288_v54 = vpop.f32.mrf.mxu1 }
  0x86   :  { %v253_v55 = vadd.f32 %v3535_v52, %v252_v53  ;;  %v289_v56 = vadd.f32 %v3535_v52, %v288_v54 }
  0x88   :  { %397 = vst.msk [vmem:[#allocation2] sm:$0xff] %vm396_vm1, %v253_v55 }
  0x89   :  { %409 = vst.msk [vmem:[#allocation2 + $0x60] sm:$0xff] %vm396_vm1, %v289_v56  ;;  %v324_v57 = vpop.f32.mrf.mxu2  ;;  %v360_v58 = vpop.f32.mrf.mxu3 }
  0x8a   :  { %v325_v59 = vadd.f32 %v3535_v52, %v324_v57  ;;  %v361_v60 = vadd.f32 %v3535_v52, %v360_v58 }
  0x8c   :  { %421 = vst.msk [vmem:[#allocation2 + $0xc0] sm:$0xff] %vm396_vm1, %v325_v59 }
  0x8d   :  { %433 = vst.msk [vmem:[#allocation2 + $0x120] sm:$0xff] %vm396_vm1, %v361_v60  ;;  %v255_v61 = vpop.f32.mrf.mxu0  ;;  %v291_v62 = vpop.f32.mrf.mxu1 }
  0x8e   :  { %v256_v63 = vadd.f32 %v3535_v52, %v255_v61  ;;  %v292_v0 = vadd.f32 %v3535_v52, %v291_v62 }
  0x90   :  { %398 = vst.msk [vmem:[#allocation2 + $0x8] sm:$0xff] %vm396_vm1, %v256_v63 }
  0x91   :  { %410 = vst.msk [vmem:[#allocation2 + $0x68] sm:$0xff] %vm396_vm1, %v292_v0  ;;  %v327_v1 = vpop.f32.mrf.mxu2  ;;  %v363_v2 = vpop.f32.mrf.mxu3 }
  0x92   :  { %v328_v3 = vadd.f32 %v3535_v52, %v327_v1  ;;  %v364_v6 = vadd.f32 %v3535_v52, %v363_v2 }
  0x94   :  { %422 = vst.msk [vmem:[#allocation2 + $0xc8] sm:$0xff] %vm396_vm1, %v328_v3 }
  0x95   :  { %434 = vst.msk [vmem:[#allocation2 + $0x128] sm:$0xff] %vm396_vm1, %v364_v6  ;;  %v258_v7 = vpop.f32.mrf.mxu0  ;;  %v294_v8 = vpop.f32.mrf.mxu1 }
  0x96   :  { %v259_v9 = vadd.f32 %v3535_v52, %v258_v7  ;;  %v295_v10 = vadd.f32 %v3535_v52, %v294_v8 }
  0x98   :  { %399 = vst.msk [vmem:[#allocation2 + $0x10] sm:$0xff] %vm396_vm1, %v259_v9 }
  0x99   :  { %411 = vst.msk [vmem:[#allocation2 + $0x70] sm:$0xff] %vm396_vm1, %v295_v10  ;;  %v330_v11 = vpop.f32.mrf.mxu2  ;;  %v366_v12 = vpop.f32.mrf.mxu3 }
  0x9a   :  { %v331_v13 = vadd.f32 %v3535_v52, %v330_v11  ;;  %v367_v14 = vadd.f32 %v3535_v52, %v366_v12 }
  0x9c   :  { %423 = vst.msk [vmem:[#allocation2 + $0xd0] sm:$0xff] %vm396_vm1, %v331_v13 }
  0x9d   :  { %435 = vst.msk [vmem:[#allocation2 + $0x130] sm:$0xff] %vm396_vm1, %v367_v14  ;;  %v261_v15 = vpop.f32.mrf.mxu0  ;;  %v297_v16 = vpop.f32.mrf.mxu1 }
  0x9e   :  { %v262_v17 = vadd.f32 %v3535_v52, %v261_v15  ;;  %v298_v18 = vadd.f32 %v3535_v52, %v297_v16 }
  0xa0   :  { %400 = vst.msk [vmem:[#allocation2 + $0x18] sm:$0xff] %vm396_vm1, %v262_v17 }
  0xa1   :  { %412 = vst.msk [vmem:[#allocation2 + $0x78] sm:$0xff] %vm396_vm1, %v298_v18  ;;  %v333_v19 = vpop.f32.mrf.mxu2  ;;  %v369_v20 = vpop.f32.mrf.mxu3 }
  0xa2   :  { %v334_v21 = vadd.f32 %v3535_v52, %v333_v19  ;;  %v370_v22 = vadd.f32 %v3535_v52, %v369_v20 }
  0xa4   :  { %424 = vst.msk [vmem:[#allocation2 + $0xd8] sm:$0xff] %vm396_vm1, %v334_v21 }
  0xa5   :  { %436 = vst.msk [vmem:[#allocation2 + $0x138] sm:$0xff] %vm396_vm1, %v370_v22  ;;  %v264_v23 = vpop.f32.mrf.mxu0  ;;  %v300_v24 = vpop.f32.mrf.mxu1 }
  0xa6   :  { %v265_v25 = vadd.f32 %v3535_v52, %v264_v23  ;;  %v301_v26 = vadd.f32 %v3535_v52, %v300_v24 }
  0xa8   :  { %401 = vst.msk [vmem:[#allocation2 + $0x20] sm:$0xff] %vm396_vm1, %v265_v25 }
  0xa9   :  { %413 = vst.msk [vmem:[#allocation2 + $0x80] sm:$0xff] %vm396_vm1, %v301_v26  ;;  %v336_v27 = vpop.f32.mrf.mxu2  ;;  %v372_v28 = vpop.f32.mrf.mxu3  ;;  %v3633_v26 = vmov 0.0  }
  0xaa   :  { %v337_v29 = vadd.f32 %v3535_v52, %v336_v27  ;;  %v373_v30 = vadd.f32 %v3535_v52, %v372_v28  ;;  %v3635_v27 = vmov 0.0   ;;  %v3637_v28 = vmov 0.0  }
  0xac   :  { %425 = vst.msk [vmem:[#allocation2 + $0xe0] sm:$0xff] %vm396_vm1, %v337_v29  ;;  %v3639_v29 = vmov 0.0  }
  0xad   :  { %437 = vst.msk [vmem:[#allocation2 + $0x140] sm:$0xff] %vm396_vm1, %v373_v30  ;;  %v267_v31 = vpop.f32.mrf.mxu0  ;;  %v303_v32 = vpop.f32.mrf.mxu1  ;;  %v3641_v30 = vmov 0.0  }
  0xae   :  { %v268_v33 = vadd.f32 %v3535_v52, %v267_v31  ;;  %v304_v34 = vadd.f32 %v3535_v52, %v303_v32  ;;  %v3643_v31 = vmov 0.0   ;;  %v3645_v32 = vmov 0.0  }
  0xb0   :  { %402 = vst.msk [vmem:[#allocation2 + $0x28] sm:$0xff] %vm396_vm1, %v268_v33  ;;  %v3647_v33 = vmov 0.0  }
  0xb1   :  { %414 = vst.msk [vmem:[#allocation2 + $0x88] sm:$0xff] %vm396_vm1, %v304_v34  ;;  %v339_v35 = vpop.f32.mrf.mxu2  ;;  %v375_v36 = vpop.f32.mrf.mxu3  ;;  %v3651_v34 = vmov 0.0  }
  0xb2   :  { %v340_v37 = vadd.f32 %v3535_v52, %v339_v35  ;;  %v376_v38 = vadd.f32 %v3535_v52, %v375_v36  ;;  %v3653_v35 = vmov 0.0   ;;  %v3655_v36 = vmov 0.0  }
  0xb4   :  { %426 = vst.msk [vmem:[#allocation2 + $0xe8] sm:$0xff] %vm396_vm1, %v340_v37  ;;  %v3657_v37 = vmov 0.0  }
  0xb5   :  { %438 = vst.msk [vmem:[#allocation2 + $0x148] sm:$0xff] %vm396_vm1, %v376_v38  ;;  %v270_v39 = vpop.f32.mrf.mxu0  ;;  %v306_v40 = vpop.f32.mrf.mxu1  ;;  %v3659_v38 = vmov 0.0  }
  0xb6   :  { %v271_v41 = vadd.f32 %v3535_v52, %v270_v39  ;;  %v307_v42 = vadd.f32 %v3535_v52, %v306_v40  ;;  %v3661_v39 = vmov 0.0   ;;  %v3663_v40 = vmov 0.0  }
  0xb8   :  { %403 = vst.msk [vmem:[#allocation2 + $0x30] sm:$0xff] %vm396_vm1, %v271_v41 }
  0xb9   :  { %415 = vst.msk [vmem:[#allocation2 + $0x90] sm:$0xff] %vm396_vm1, %v307_v42  ;;  %v342_v43 = vpop.f32.mrf.mxu2  ;;  %v378_v44 = vpop.f32.mrf.mxu3 }
  0xba   :  { %v343_v45 = vadd.f32 %v3535_v52, %v342_v43  ;;  %v379_v46 = vadd.f32 %v3535_v52, %v378_v44 }
  0xbc   :  { %427 = vst.msk [vmem:[#allocation2 + $0xf0] sm:$0xff] %vm396_vm1, %v343_v45 }
  0xbd   :  { %439 = vst.msk [vmem:[#allocation2 + $0x150] sm:$0xff] %vm396_vm1, %v379_v46  ;;  %v273_v47 = vpop.f32.mrf.mxu0  ;;  %v309_v48 = vpop.f32.mrf.mxu1 }
  0xbe   :  { %v274_v49 = vadd.f32 %v3535_v52, %v273_v47  ;;  %v310_v50 = vadd.f32 %v3535_v52, %v309_v48 }
  0xc0   :  { %404 = vst.msk [vmem:[#allocation2 + $0x38] sm:$0xff] %vm396_vm1, %v274_v49 }
  0xc1   :  { %416 = vst.msk [vmem:[#allocation2 + $0x98] sm:$0xff] %vm396_vm1, %v310_v50  ;;  %v345_v51 = vpop.f32.mrf.mxu2  ;;  %v381_v53 = vpop.f32.mrf.mxu3 }
  0xc2   :  { %v346_v54 = vadd.f32 %v3535_v52, %v345_v51  ;;  %v382_v55 = vadd.f32 %v3535_v52, %v381_v53 }
  0xc4   :  { %428 = vst.msk [vmem:[#allocation2 + $0xf8] sm:$0xff] %vm396_vm1, %v346_v54 }
  0xc5   :  { %440 = vst.msk [vmem:[#allocation2 + $0x158] sm:$0xff] %vm396_vm1, %v382_v55  ;;  %v276_v56 = vpop.f32.mrf.mxu0  ;;  %v312_v57 = vpop.f32.mrf.mxu1 }
  0xc6   :  { %v277_v58 = vadd.f32 %v3535_v52, %v276_v56  ;;  %v313_v59 = vadd.f32 %v3535_v52, %v312_v57 }
  0xc8   :  { %405 = vst.msk [vmem:[#allocation2 + $0x40] sm:$0xff] %vm396_vm1, %v277_v58 }
  0xc9   :  { %417 = vst.msk [vmem:[#allocation2 + $0xa0] sm:$0xff] %vm396_vm1, %v313_v59  ;;  %v348_v60 = vpop.f32.mrf.mxu2  ;;  %v384_v61 = vpop.f32.mrf.mxu3 }
  0xca   :  { %v349_v62 = vadd.f32 %v3535_v52, %v348_v60  ;;  %v385_v63 = vadd.f32 %v3535_v52, %v384_v61 }
  0xcc   :  { %429 = vst.msk [vmem:[#allocation2 + $0x100] sm:$0xff] %vm396_vm1, %v349_v62 }
  0xcd   :  { %441 = vst.msk [vmem:[#allocation2 + $0x160] sm:$0xff] %vm396_vm1, %v385_v63  ;;  %v279_v0 = vpop.f32.mrf.mxu0  ;;  %v315_v1 = vpop.f32.mrf.mxu1 }
  0xce   :  { %v280_v2 = vadd.f32 %v3535_v52, %v279_v0  ;;  %v316_v3 = vadd.f32 %v3535_v52, %v315_v1 }
  0xd0   :  { %406 = vst.msk [vmem:[#allocation2 + $0x48] sm:$0xff] %vm396_vm1, %v280_v2 }
  0xd1   :  { %418 = vst.msk [vmem:[#allocation2 + $0xa8] sm:$0xff] %vm396_vm1, %v316_v3  ;;  %v351_v6 = vpop.f32.mrf.mxu2  ;;  %v387_v7 = vpop.f32.mrf.mxu3 }
  0xd2   :  { %v352_v8 = vadd.f32 %v3535_v52, %v351_v6  ;;  %v388_v9 = vadd.f32 %v3535_v52, %v387_v7 }
  0xd4   :  { %430 = vst.msk [vmem:[#allocation2 + $0x108] sm:$0xff] %vm396_vm1, %v352_v8 }
  0xd5   :  { %442 = vst.msk [vmem:[#allocation2 + $0x168] sm:$0xff] %vm396_vm1, %v388_v9  ;;  %v282_v10 = vpop.f32.mrf.mxu0  ;;  %v318_v11 = vpop.f32.mrf.mxu1 }
  0xd6   :  { %v283_v12 = vadd.f32 %v3535_v52, %v282_v10  ;;  %v319_v13 = vadd.f32 %v3535_v52, %v318_v11 }
  0xd8   :  { %407 = vst.msk [vmem:[#allocation2 + $0x50] sm:$0xff] %vm396_vm1, %v283_v12 }
  0xd9   :  { %419 = vst.msk [vmem:[#allocation2 + $0xb0] sm:$0xff] %vm396_vm1, %v319_v13  ;;  %v354_v14 = vpop.f32.mrf.mxu2  ;;  %v390_v15 = vpop.f32.mrf.mxu3 }
  0xda   :  { %v355_v16 = vadd.f32 %v3535_v52, %v354_v14  ;;  %v391_v17 = vadd.f32 %v3535_v52, %v390_v15 }
  0xdc   :  { %431 = vst.msk [vmem:[#allocation2 + $0x110] sm:$0xff] %vm396_vm1, %v355_v16 }
  0xdd   :  { %443 = vst.msk [vmem:[#allocation2 + $0x170] sm:$0xff] %vm396_vm1, %v391_v17  ;;  %v285_v18 = vpop.f32.mrf.mxu0  ;;  %v321_v19 = vpop.f32.mrf.mxu1 }
  0xde   :  { %v286_v20 = vadd.f32 %v3535_v52, %v285_v18  ;;  %v322_v21 = vadd.f32 %v3535_v52, %v321_v19 }
  0xe0   :  { %408 = vst.msk [vmem:[#allocation2 + $0x58] sm:$0xff] %vm396_vm1, %v286_v20 }
  0xe1   :  { %420 = vst.msk [vmem:[#allocation2 + $0xb8] sm:$0xff] %vm396_vm1, %v322_v21  ;;  %v357_v22 = vpop.f32.mrf.mxu2  ;;  %v393_v23 = vpop.f32.mrf.mxu3 }
  0xe2   :  { %v358_v24 = vadd.f32 %v3535_v52, %v357_v22  ;;  %v394_v25 = vadd.f32 %v3535_v52, %v393_v23  ;;  %v3649_v52 = vmov 0.0  }
  0xe4   :  { %432 = vst.msk [vmem:[#allocation2 + $0x118] sm:$0xff] %vm396_vm1, %v358_v24 }
  0xe5   :  { %444 = vst.msk [vmem:[#allocation2 + $0x178] sm:$0xff] %vm396_vm1, %v394_v25 }
  0xe6 LB: > { %531 = vmatpush.msra.mxu0 %v3344_v5  ;;  %2568 = vmatpush.msra.mxu2 %v3344_v5  ;;  %s3247_s5 = smov 80   ;;  %s2502_s19 = sshll.u32 %s3201_s0, 6  ;;  %s3201_s0 = sphi %s3665_s0, %s450_s0   ;;  %v3197_v40 = vphi %v3663_v40, %v4667_v40   ;;  %v3193_v39 = vphi %v3661_v39, %v4666_v39   ;;  %v3189_v38 = vphi %v3659_v38, %v4665_v38   ;;  %v3185_v37 = vphi %v3657_v37, %v4664_v37   ;;  %v3181_v36 = vphi %v3655_v36, %v4663_v36   ;;  %v3177_v35 = vphi %v3653_v35, %v4662_v35   ;;  %v3173_v34 = vphi %v3651_v34, %v4661_v34   ;;  %v3169_v52 = vphi %v3649_v52, %v4660_v52   ;;  %v3165_v33 = vphi %v3647_v33, %v3946_v33   ;;  %v3161_v32 = vphi %v3645_v32, %v3962_v32   ;;  %v3157_v31 = vphi %v3643_v31, %v3940_v31   ;;  %v3153_v30 = vphi %v3641_v30, %v3958_v30   ;;  %v3149_v29 = vphi %v3639_v29, %v3955_v29   ;;  %v3145_v28 = vphi %v3637_v28, %v956_v28   ;;  %v3141_v27 = vphi %v3635_v27, %v957_v27   ;;  %v3137_v26 = vphi %v3633_v26, %v958_v26  }
  0xe7   : > { %2567 = vmatpush.msra.mxu1 %v3344_v5  ;;  %2569 = vmatpush.msra.mxu3 %v3344_v5  ;;  %s3745_s20 = scalar_lea.vmem [#allocation2], %s2502_s19  ;;  %s3248_s21 = smov 96  }
  0xe8   : > { %485 = vrot.lane.b32.xlu1 %v3197_v40, %s3247_s5  ;;  %493 = vrot.lane.b32.xlu0 %v3181_v36, %s3247_s5  ;;  %s3249_s22 = smov 16   ;;  %s3876_s25 = scalar_lea.vmem %s4642_s1, %s2502_s19 }
  0xe9   : > { %532 = vmatpush.msra.mxu0 %v3339_v4  ;;  %2571 = vmatpush.msra.mxu2 %v3339_v4  ;;  %s3251_s26 = smov 32   ;;  %s450_s0 = sadd.s32 1, %s3201_s0  }
  0xea   : > { %495 = vrot.lane.b32.xlu2 %v3177_v35, %s3247_s5  ;;  %2570 = vmatpush.msra.mxu1 %v3339_v4  ;;  %p4005_p0 = scmp.ge.s32.totalorder %s450_s0, 6  }
  0xeb   : > { %2572 = vmatpush.msra.mxu3 %v3339_v4  ;;  %s3252_s30 = smov (%p4005_p0), 80   ;;  %v962_v4 = vld [vmem:[%s4647_s6 + $0x18] sm:$0xff] (%p4005_p0)  ;;  %v961_v5 = vld [vmem:[%s4647_s6 + $0x10] sm:$0xff] (%p4005_p0)  ;;  %s3253_s18 = smov (%p4005_p0), 64  }
  0xec   : > { %v469_v49 = vld [vmem:[%s3745_s20] sm:$0xff]  ;;  %v471_v55 = vld [vmem:[%s3745_s20 + $0x10] sm:$0xff]  ;;  %v474_v60 = vld [vmem:[%s3745_s20 + $0x28] sm:$0xff]  ;;  %s4171_s24 = smov (%p4005_p0), 0  }
  0xed   : > { %v473_v53 = vld [vmem:[%s3745_s20 + $0x20] sm:$0xff]  ;;  %v472_v1 = vld [vmem:[%s3745_s20 + $0x18] sm:$0xff]  ;;  %v470_v6 = vld [vmem:[%s3745_s20 + $0x8] sm:$0xff] }
  0xee   : > { %v475_v11 = vld [vmem:[%s3745_s20 + $0x30] sm:$0xff]  ;;  %v476_v12 = vld [vmem:[%s3745_s20 + $0x38] sm:$0xff] }
  0xf0   : > { %489 = vrot.lane.b32.xlu1 %v3189_v38, %s3247_s5  ;;  %497 = vrot.lane.b32.xlu0 %v3173_v34, %s3247_s5 }
  0xf2   : > { %499 = vrot.lane.b32.xlu2 %v3169_v52, %s3247_s5 }
  0xf8   : > { %491 = vrot.lane.b32.xlu1 %v3185_v37, %s3247_s5  ;;  %487 = vrot.lane.b32.xlu0 %v3193_v39, %s3247_s5 }
 0x144   : > { %v496_v43 = vpop.permute.xlu2 %495 }
 0x14c   : > { %v500_v46 = vpop.permute.xlu2 %499 }
 0x15a   : > { %v486_v41 = vpop.permute.xlu1 %485  ;;  %v494_v42 = vpop.permute.xlu0 %493 }
 0x15b   : > { %2503 = vmatmul.msk.f32.vlgmr.msra.gmra.mxu0 %vm90_vm0, %v486_v41  ;;  %2507 = vmatmul.msk.f32.vlgmr.msra.gmra.mxu2 %vm90_vm0, %v494_v42 }
 0x162   : > { %v490_v44 = vpop.permute.xlu1 %489  ;;  %v498_v45 = vpop.permute.xlu0 %497 }
 0x163   : > { %2505 = vmatmul.msk.f32.vlgmr.msra.gmra.mxu1 %vm90_vm0, %v490_v44  ;;  %2508 = vmatmul.msk.f32.gmra.mxu2 %vm90_vm0, %v496_v43 }
 0x164   : > { %2509 = vmatmul.msk.f32.vlgmr.msra.gmra.mxu3 %vm90_vm0, %v498_v45 }
 0x16a   : > { %v492_v47 = vpop.permute.xlu1 %491  ;;  %v488_v48 = vpop.permute.xlu0 %487 }
 0x16b   : > { %2504 = vmatmul.msk.f32.gmra.mxu0 %vm90_vm0, %v488_v48  ;;  %2506 = vmatmul.msk.f32.gmra.mxu1 %vm90_vm0, %v492_v47 }
 0x16c   : > { %2510 = vmatmul.msk.f32.gmra.mxu3 %vm90_vm0, %v500_v46 }
 0x1d8   : > { %v534_v50 = vpop.f32.mrf.mxu0 }
 0x1d9   : > { %v558_v51 = vadd.f32 %v534_v50, %v469_v49 }
 0x1db   : > { %2837 = vtanh.f32 %v558_v51  ;;  %v2511_v20 = vmul.f32 -1.442695, %v558_v51 }
 0x1de   : > { %v546_v54 = vpop.f32.mrf.mxu2 }
 0x1df   : > { %v562_v56 = vadd.f32 %v546_v54, %v473_v53 }
 0x1e0   : > { %v540_v57 = vpop.f32.mrf.mxu1 }
 0x1e1   : > { %v2838_v58 = vpop.eup %2837  ;;  %2839 = vtanh.f32 %v562_v56  ;;  %v560_v59 = vadd.f32 %v540_v57, %v471_v55  ;;  %v2515_v42 = vmul.f32 -1.442695, %v562_v56 }
 0x1e2   : > { %742 = vrot.lane.b32.xlu2 %v2838_v58, %s3248_s21 }
 0x1e3   : > { %2841 = vtanh.f32 %v560_v59  ;;  %v2513_v45 = vmul.f32 -1.442695, %v560_v59 }
 0x1e6   : > { %v549_v61 = vpop.f32.mrf.mxu2 }
 0x1e7   : > { %v2840_v62 = vpop.eup %2839  ;;  %v563_v63 = vadd.f32 %v549_v61, %v474_v60  ;;  %v552_v0 = vpop.f32.mrf.mxu3 }
 0x1e8   : > { %750 = vrot.lane.b32.xlu0 %v2840_v62, %s3248_s21  ;;  %v543_v2 = vpop.f32.mrf.mxu1  ;;  %v537_v7 = vpop.f32.mrf.mxu0  ;;  %v564_v14 = vadd.f32 %v552_v0, %v475_v11 }
 0x1e9   : > { %v2842_v3 = vpop.eup %2841  ;;  %2843 = vtanh.f32 %v563_v63  ;;  %v561_v8 = vadd.f32 %v543_v2, %v472_v1  ;;  %v559_v9 = vadd.f32 %v537_v7, %v470_v6  ;;  %v2516_v54 = vmul.f32 -1.442695, %v563_v63 }
 0x1ea   : > { %746 = vrot.lane.b32.xlu1 %v2842_v3, %s3248_s21  ;;  %v2517_v41 = vmul.f32 -1.442695, %v564_v14  ;;  %v3250_v3 = vmov 0  }
 0x1eb   : > { %2845 = vtanh.f32 %v561_v8  ;;  %v2514_v23 = vmul.f32 -1.442695, %v561_v8  ;;  %v2512_v1 = vmul.f32 -1.442695, %v559_v9  ;;  %2835 = vset.pattern.permute.xlu0 %v3250_v3  ;;  %2836 = vset.pattern.permute.xlu1 %v3250_v3 }
 0x1ec   : > { %2847 = vtanh.f32 %v559_v9  ;;  %2834 = vset.pattern.permute.xlu2 %v3250_v3 }
 0x1ed   : > { %2849 = vtanh.f32 %v564_v14 }
 0x1ef   : > { %v2844_v10 = vpop.eup %2843  ;;  %v555_v13 = vpop.f32.mrf.mxu3 }
 0x1f0   : > { %v3759_v16 = vadd.f32 %v555_v13, %v476_v12 }
 0x1f1   : > { %v2846_v15 = vpop.eup %2845 }
 0x1f2   : > { %752 = vrot.lane.b32.xlu1 %v2844_v10, %s3248_s21  ;;  %748 = vrot.lane.b32.xlu2 %v2846_v15, %s3248_s21  ;;  %v2848_v17 = vpop.eup %2847  ;;  %2851 = vtanh.f32 %v3759_v16  ;;  %v2518_v12 = vmul.f32 -1.442695, %v3759_v16 }
 0x1f3   : > { %744 = vrot.lane.b32.xlu0 %v2848_v17, %s3248_s21  ;;  %v2850_v18 = vpop.eup %2849  ;;  %2853 = vpow2.f32 %v2511_v20 }
 0x1f8   : > { %v2852_v19 = vpop.eup %2851 }
 0x1f9   : > { %v2854_v21 = vpop.eup %2853 }
 0x1fa   : > { %754 = vrot.lane.b32.xlu2 %v2850_v18, %s3248_s21  ;;  %v590_v22 = vadd.f32 1.0, %v2854_v21 }
 0x1fb   : > { %756 = vrot.lane.b32.xlu0 %v2852_v19, %s3248_s21 }
 0x1fc   : > { %2855 = vrcp.f32 %v590_v22  ;;  %v609_v50 = vand.u32 2147483648, %v590_v22  ;;  %vm603_vm3 = vweird.f32 %v590_v22  ;;  %v607_v53 = vand.u32 2147483647, %v590_v22 }
 0x1fd   : > { %2857 = vpow2.f32 %v2514_v23 }
 0x1fe   : > { %2859 = vpow2.f32 %v2517_v41  ;;  %v610_v59 = vor.u32 1.1754944e-38, %v609_v50  ;;  %vm608_vm5 = vcmp.eq.f32.partialorder %v607_v53, 8.507059e+37 }
 0x1ff   : > { %2861 = vpow2.f32 %v2515_v42 }
 0x200   : > { %2863 = vpow2.f32 %v2513_v45 }
 0x202   : > { %v2856_v24 = vpop.eup %2855 }
 0x203   : > { %v599_v25 = vmul.f32 %v2856_v24, %v590_v22  ;;  %v2858_v44 = vpop.eup %2857  ;;  %vm604_vm2 = vweird.f32 %v2856_v24 }
 0x204   : > { %v3766_v46 = vadd.f32 1.0, %v2858_v44  ;;  %v2860_v49 = vpop.eup %2859  ;;  %vm605_vm4 = vmor %vm603_vm3, %vm604_vm2 }
 0x205   : > { %v600_v43 = vsub.f32 1.0, %v599_v25  ;;  %v2862_v51 = vpop.eup %2861  ;;  %v3769_v56 = vadd.f32 1.0, %v2860_v49 }
 0x206   : > { %2865 = vrcp.f32 %v3766_v46  ;;  %v2864_v55 = vpop.eup %2863  ;;  %v3771_v58 = vadd.f32 1.0, %v2862_v51  ;;  %v654_v16 = vand.u32 2147483648, %v3766_v46  ;;  %vm648_vm7 = vweird.f32 %v3766_v46 }
 0x207   : > { %v601_v47 = vmul.f32 %v2856_v24, %v600_v43  ;;  %v3773_v61 = vadd.f32 1.0, %v2864_v55  ;;  %2867 = vpow2.f32 %v2516_v54  ;;  %v652_v23 = vand.u32 2147483647, %v3766_v46 }
 0x208   : > { %2869 = vrcp.f32 %v3769_v56  ;;  %v655_v43 = vor.u32 1.1754944e-38, %v654_v16  ;;  %vm693_vm10 = vweird.f32 %v3769_v56  ;;  %vm663_vm11 = vweird.f32 %v3771_v58 }
 0x209   : > { %v602_v48 = vadd.f32 %v2856_v24, %v601_v47  ;;  %2871 = vrcp.f32 %v3771_v58  ;;  %vm653_vm9 = vcmp.eq.f32.partialorder %v652_v23, 8.507059e+37  ;;  %v699_v54 = vand.u32 2147483648, %v3769_v56 }
 0x20a   : > { %2873 = vrcp.f32 %v3773_v61  ;;  %vm633_vm15 = vweird.f32 %v3773_v61 }
 0x20b   : > { %v606_v57 = vsel %vm605_vm4, %v2856_v24, %v602_v48  ;;  %2875 = vpow2.f32 %v2512_v1 }
 0x20c   : > { %v2866_v60 = vpop.eup %2865  ;;  %v3775_v62 = vsel %vm608_vm5, %v610_v59, %v606_v57  ;;  %v697_v57 = vand.u32 2147483647, %v3769_v56  ;;  %v669_v59 = vand.u32 2147483648, %v3771_v58 }
 0x20d   : > { %v644_v2 = vmul.f32 %v2866_v60, %v3766_v46  ;;  %v2868_v6 = vpop.eup %2867  ;;  %vm649_vm6 = vweird.f32 %v2866_v60 }
 0x20e   : > { %v3783_v8 = vpop.eup %2869  ;;  %v3787_v11 = vadd.f32 1.0, %v2868_v6  ;;  %vm650_vm8 = vmor %vm648_vm7, %vm649_vm6  ;;  %v700_v6 = vor.u32 1.1754944e-38, %v699_v54  ;;  %vm698_vm4 = vcmp.eq.f32.partialorder %v697_v57, 8.507059e+37 }
 0x20f   : > { %v645_v7 = vsub.f32 1.0, %v644_v2  ;;  %v3785_v10 = vpop.eup %2871  ;;  %v689_v14 = vmul.f32 %v3783_v8, %v3769_v56  ;;  %vm694_vm12 = vweird.f32 %v3783_v8  ;;  %v867_v2 = vld [vmem:[%s3876_s25 + $0x20] sm:$0xff] }
 0x210   : > { %v3789_v9 = vpop.eup %2873  ;;  %v659_v15 = vmul.f32 %v3785_v10, %v3771_v58  ;;  %2877 = vrcp.f32 %v3787_v11  ;;  %vm664_vm13 = vweird.f32 %v3785_v10  ;;  %vm3831_vm14 = vmor %vm693_vm10, %vm694_vm12 }
 0x211   : > { %v646_v13 = vmul.f32 %v2866_v60, %v645_v7  ;;  %v2876_v17 = vpop.eup %2875  ;;  %v629_v18 = vmul.f32 %v3789_v9, %v3773_v61  ;;  %2879 = vpow2.f32 %v2518_v12  ;;  %v690_v20 = vsub.f32 1.0, %v689_v14  ;;  %vm3842_vm2 = vmor %vm663_vm11, %vm664_vm13 }
 0x212   : > { %v3799_v21 = vadd.f32 1.0, %v2876_v17  ;;  %v660_v22 = vsub.f32 1.0, %v659_v15  ;;  %vm634_vm3 = vweird.f32 %v3789_v9  ;;  %v637_v12 = vand.u32 2147483647, %v3773_v61 }
 0x213   : > { %v647_v19 = vadd.f32 %v2866_v60, %v646_v13  ;;  %v630_v24 = vsub.f32 1.0, %v629_v18  ;;  %v691_v41 = vmul.f32 %v3783_v8, %v690_v20  ;;  %vm635_vm6 = vmor %vm633_vm15, %vm634_vm3 }
 0x214   : > { %2881 = vrcp.f32 %v3799_v21  ;;  %v661_v44 = vmul.f32 %v3785_v10, %v660_v22  ;;  %vm638_vm7 = vcmp.eq.f32.partialorder %v637_v12, 8.507059e+37  ;;  %vm618_vm12 = vweird.f32 %v3799_v21 }
 0x215   : > { %v651_v25 = vsel %vm650_vm8, %v2866_v60, %v647_v19  ;;  %v631_v46 = vmul.f32 %v3789_v9, %v630_v24  ;;  %v692_v50 = vadd.f32 %v3783_v8, %v691_v41  ;;  %vm678_vm8 = vweird.f32 %v3787_v11 }
 0x216   : > { %v3805_v42 = vpop.eup %2877  ;;  %v3809_v47 = vsel %vm653_vm9, %v655_v43, %v651_v25  ;;  %v662_v55 = vadd.f32 %v3785_v10, %v661_v44  ;;  %v682_v43 = vand.u32 2147483647, %v3787_v11  ;;  %v684_v44 = vand.u32 2147483648, %v3787_v11 }
 0x217   : > { %v2880_v45 = vpop.eup %2879  ;;  %v674_v51 = vmul.f32 %v3805_v42, %v3787_v11  ;;  %v696_v1 = vsel %vm3831_vm14, %v3783_v8, %v692_v50  ;;  %v632_v56 = vadd.f32 %v3789_v9, %v631_v46  ;;  %v639_v8 = vand.u32 2147483648, %v3773_v61  ;;  %v865_v46 = vld [vmem:[%s3876_s25 + $0x10] sm:$0xff] }
 0x218   : > { %v3819_v53 = vadd.f32 1.0, %v2880_v45  ;;  %v666_v7 = vsel %vm3842_vm2, %v3785_v10, %v662_v55  ;;  %v3856_v14 = vsel %vm698_vm4, %v700_v6, %v696_v1  ;;  %vm679_vm9 = vweird.f32 %v3805_v42 }
 0x219   : > { %v675_v3 = vsub.f32 1.0, %v674_v51  ;;  %v636_v19 = vsel %vm635_vm6, %v3789_v9, %v632_v56  ;;  %v640_v22 = vor.u32 1.1754944e-38, %v639_v8  ;;  %vm680_vm10 = vmor %vm678_vm8, %vm679_vm9  ;;  %vm683_vm11 = vcmp.eq.f32.partialorder %v682_v43, 8.507059e+37 }
 0x21a   : > { %v3827_v60 = vpop.eup %2881  ;;  %2883 = vrcp.f32 %v3819_v53  ;;  %v685_v50 = vor.u32 1.1754944e-38, %v684_v44  ;;  %v624_v57 = vand.u32 2147483648, %v3799_v21  ;;  %vm708_vm2 = vweird.f32 %v3819_v53 }
 0x21b   : > { %v614_v13 = vmul.f32 %v3827_v60, %v3799_v21  ;;  %v676_v20 = vmul.f32 %v3805_v42, %v675_v3  ;;  %v3867_v61 = vsel %vm638_vm7, %v640_v22, %v636_v19  ;;  %vm619_vm13 = vweird.f32 %v3827_v60  ;;  %v866_v19 = vld [vmem:[%s3876_s25 + $0x18] sm:$0xff] }
 0x21c   : > { %vm620_vm14 = vmor %vm618_vm12, %vm619_vm13  ;;  %v625_v1 = vor.u32 1.1754944e-38, %v624_v57  ;;  %v712_v8 = vand.u32 2147483647, %v3819_v53  ;;  %v728_v57 = vmul.f32 %v3157_v31, %v3867_v61  ;;  %vm1082_vm6 = vcmask (%p4005_p0), 1043456  }
 0x21d   : > { %v615_v23 = vsub.f32 1.0, %v614_v13  ;;  %v677_v9 = vadd.f32 %v3805_v42, %v676_v20  ;;  %v726_v20 = vmul.f32 %v3165_v33, %v3775_v62  ;;  %vm1057_vm7 = vcmask (%p4005_p0), 359424  }
 0x21f   : > { %v616_v45 = vmul.f32 %v3827_v60, %v615_v23 }
 0x220   : > { %v2884_v24 = vpop.eup %2883 }
 0x221   : > { %v617_v51 = vadd.f32 %v3827_v60, %v616_v45  ;;  %vm709_vm3 = vweird.f32 %v2884_v24 }
 0x222   : > { %vm710_vm4 = vmor %vm708_vm2, %vm709_vm3 }
 0x23c   : > { %v743_v0 = vpop.permute.xlu2 %742 }
 0x23d   : > { %v766_v63 = vmul.f32 %v743_v0, %v3775_v62  ;;  %v621_v0 = vsel %vm620_vm14, %v3827_v60, %v617_v51  ;;  %v864_v60 = vld [vmem:[%s3876_s25 + $0x8] sm:$0xff] }
 0x23f   : > { %782 = vrot.lane.b32.xlu1 %v766_v63, %s3249_s22  ;;  %v667_v63 = vand.u32 2147483647, %v3771_v58  ;;  %v670_v58 = vor.u32 1.1754944e-38, %v669_v59 }
 0x241   : > { %vm668_vm5 = vcmp.eq.f32.partialorder %v667_v63, 8.507059e+37 }
 0x242   : > { %v3861_v10 = vsel %vm668_vm5, %v670_v58, %v666_v7  ;;  %vm713_vm5 = vcmp.eq.f32.partialorder %v712_v8, 8.507059e+37 }
 0x243   : > { %v730_v22 = vmul.f32 %v3149_v29, %v3861_v10 }
 0x24c   : > { %v749_v48 = vpop.permute.xlu2 %748 }
 0x24d   : > { %v769_v49 = vmul.f32 %v749_v48, %v3809_v47  ;;  %v704_v48 = vmul.f32 %v2884_v24, %v3819_v53 }
 0x24f   : > { %788 = vrot.lane.b32.xlu1 %v769_v49, %s3249_s22  ;;  %v681_v49 = vsel %vm680_vm10, %v3805_v42, %v677_v9  ;;  %v705_v11 = vsub.f32 1.0, %v704_v48  ;;  %v622_v42 = vand.u32 2147483647, %v3799_v21  ;;  %v714_v21 = vand.u32 2147483648, %v3819_v53 }
 0x250   : > { %v3891_v55 = vsel %vm683_vm11, %v685_v50, %v681_v49  ;;  %v732_v48 = vmul.f32 %v3141_v27, %v3856_v14 }
 0x251   : > { %v706_v63 = vmul.f32 %v2884_v24, %v705_v11  ;;  %vm623_vm15 = vcmp.eq.f32.partialorder %v622_v42, 8.507059e+37  ;;  %v715_v12 = vor.u32 1.1754944e-38, %v714_v21  ;;  %v729_v42 = vmul.f32 %v3153_v30, %v3809_v47 }
 0x252   : > { %v3899_v56 = vsel %vm623_vm15, %v625_v1, %v621_v0 }
 0x253   : > { %v707_v7 = vadd.f32 %v2884_v24, %v706_v63  ;;  %v727_v43 = vmul.f32 %v3161_v32, %v3899_v56 }
 0x254   : > { %v755_v15 = vpop.permute.xlu2 %754 }
 0x255   : > { %v772_v17 = vmul.f32 %v755_v15, %v3856_v14  ;;  %v711_v58 = vsel %vm710_vm4, %v2884_v24, %v707_v7 }
 0x256   : > { %v3907_v15 = vsel %vm713_vm5, %v715_v12, %v711_v58  ;;  %v731_v58 = vmul.f32 %v3145_v28, %v3891_v55 }
 0x257   : > { %794 = vrot.lane.b32.xlu1 %v772_v17, %s3249_s22  ;;  %v733_v50 = vmul.f32 %v3137_v26, %v3907_v15 }
 0x25a   : > { %v751_v18 = vpop.permute.xlu0 %750 }
 0x25b   : > { %v770_v16 = vmul.f32 %v751_v18, %v3861_v10  ;;  %v863_v18 = vld [vmem:[%s3876_s25] sm:$0xff] }
 0x25c   : > { %v747_v25 = vpop.permute.xlu1 %746 }
 0x25d   : > { %790 = vrot.lane.b32.xlu2 %v770_v16, %s3249_s22  ;;  %v768_v41 = vmul.f32 %v747_v25, %v3867_v61 }
 0x25f   : > { %786 = vrot.lane.b32.xlu0 %v768_v41, %s3249_s22  ;;  %891 = vperm.xlu1 %2836, %v865_v46  }
 0x264   : > { %v753_v54 = vpop.permute.xlu1 %752 }
 0x265   : > { %v771_v59 = vmul.f32 %v753_v54, %v3891_v55  ;;  %v745_v3 = vpop.permute.xlu0 %744 }
 0x266   : > { %v767_v6 = vmul.f32 %v745_v3, %v3899_v56 }
 0x267   : > { %792 = vrot.lane.b32.xlu0 %v771_v59, %s3249_s22  ;;  %901 = vperm.xlu1 %2836, %v867_v2  }
 0x268   : > { %784 = vrot.lane.b32.xlu2 %v767_v6, %s3249_s22 }
 0x26d   : > { %v757_v13 = vpop.permute.xlu0 %756 }
 0x26e   : > { %v773_v17 = vmul.f32 %v757_v13, %v3907_v15 }
 0x26f   : > { %886 = vperm.xlu0 %2835, %v864_v60  }
 0x270   : > { %796 = vrot.lane.b32.xlu2 %v773_v17, %s3249_s22 }
 0x278   : > { %881 = vperm.xlu2 %2834, %v863_v18  }
 0x280   : > { %896 = vperm.xlu2 %2834, %v866_v19  }
 0x2b1   : > { %v783_v53 = vpop.permute.xlu1 %782 }
 0x2b2   : > { %v806_v16 = vadd.f32 %v783_v53, %v726_v20 }
 0x2b4   : > { %2885 = vtanh.f32 %v806_v16  ;;  %v935_v6 = vsub.f32 %v806_v16, %v3165_v33 }
 0x2b7   : > { %v791_v23 = vpop.permute.xlu2 %790 }
 0x2b8   : > { %v810_v24 = vadd.f32 %v791_v23, %v730_v22  ;;  %v870_v22 = vld [vmem:[%s3876_s25 + $0x38] sm:$0xff] }
 0x2ba   : > { %v2886_v25 = vpop.eup %2885  ;;  %2887 = vtanh.f32 %v810_v24  ;;  %v939_v18 = vsub.f32 %v810_v24, %v3149_v29 }
 0x2bb   : > { %830 = vrot.lane.b32.xlu0 %v2886_v25, %s3251_s26 }
 0x2c0   : > { %v2888_v41 = vpop.eup %2887 }
 0x2c1   : > { %838 = vrot.lane.b32.xlu1 %v2888_v41, %s3251_s26  ;;  %v789_v9 = vpop.permute.xlu1 %788 }
 0x2c2   : > { %v785_v44 = vpop.permute.xlu2 %784  ;;  %v809_v63 = vadd.f32 %v789_v9, %v729_v42 }
 0x2c3   : > { %v807_v45 = vadd.f32 %v785_v44, %v727_v43  ;;  %v869_v44 = vld [vmem:[%s3876_s25 + $0x30] sm:$0xff] }
 0x2c4   : > { %v938_v53 = vsub.f32 %v809_v63, %v3153_v30 }
 0x2c5   : > { %2889 = vtanh.f32 %v807_v45  ;;  %v936_v25 = vsub.f32 %v807_v45, %v3161_v32 }
 0x2c9   : > { %v795_v46 = vpop.permute.xlu1 %794 }
 0x2ca   : > { %v3923_v49 = vadd.f32 %v795_v46, %v732_v48  ;;  %v797_v51 = vpop.permute.xlu2 %796  ;;  %v868_v48 = vld [vmem:[%s3876_s25 + $0x28] sm:$0xff] }
 0x2cb   : > { %v2890_v11 = vpop.eup %2889  ;;  %v3928_v54 = vadd.f32 %v797_v51, %v733_v50 }
 0x2cc   : > { %2891 = vtanh.f32 %v3923_v49  ;;  %832 = vrot.lane.b32.xlu1 %v2890_v11, %s3251_s26 }
 0x2cd   : > { %2893 = vtanh.f32 %v3928_v54 }
 0x2d1   : > { %v787_v59 = vpop.permute.xlu0 %786  ;;  %v892_v2 = vpop.permute.xlu1 %891 }
 0x2d2   : > { %v808_v0 = vadd.f32 %v787_v59, %v728_v57  ;;  %v2892_v3 = vpop.eup %2891  ;;  %v882_v21 = vpop.permute.xlu2 %881 }
 0x2d3   : > { %842 = vrot.lane.b32.xlu0 %v2892_v3, %s3251_s26  ;;  %v2894_v60 = vpop.eup %2893  ;;  %v943_v8 = vmul.f32 %v935_v6, %v882_v21 }
 0x2d4   : > { %2895 = vtanh.f32 %v808_v0  ;;  %v937_v1 = vsub.f32 %v808_v0, %v3157_v31  ;;  %844 = vrot.lane.b32.xlu1 %v2894_v60, %s3251_s26 }
 0x2d5   : > { %2897 = vtanh.f32 %v809_v63  ;;  %v3946_v33 = vadd.f32 %v3165_v33, %v943_v8  }
 0x2d6   : > { %v945_v7 = vmul.f32 %v937_v1, %v892_v2  ;;  %v970_v33 = vld [vmem:[%s4643_s2 + $0x10] sm:$0xff] (%p4005_p0) }
 0x2d8   : > { %v3940_v31 = vadd.f32 %v3157_v31, %v945_v7  }
 0x2d9   : > { %v793_v12 = vpop.permute.xlu0 %792  ;;  %v902_v19 = vpop.permute.xlu1 %901  ;;  %v969_v31 = vld [vmem:[%s4643_s2 + $0x8] sm:$0xff] (%p4005_p0) }
 0x2da   : > { %v2896_v13 = vpop.eup %2895  ;;  %v811_v17 = vadd.f32 %v793_v12, %v731_v58  ;;  %v947_v16 = vmul.f32 %v939_v18, %v902_v19  ;;  %v897_v23 = vpop.permute.xlu2 %896 }
 0x2db   : > { %834 = vrot.lane.b32.xlu2 %v2896_v13, %s3251_s26  ;;  %v2898_v20 = vpop.eup %2897  ;;  %v946_v41 = vmul.f32 %v938_v53, %v897_v23 }
 0x2dc   : > { %2899 = vtanh.f32 %v811_v17  ;;  %836 = vrot.lane.b32.xlu0 %v2898_v20, %s3251_s26  ;;  %v3955_v29 = vadd.f32 %v3149_v29, %v947_v16   ;;  %916 = vperm.xlu1 %2836, %v870_v22   ;;  %v942_v16 = vsub.f32 %v3928_v54, %v3137_v26 }
 0x2dd   : > { %v3958_v30 = vadd.f32 %v3153_v30, %v946_v41   ;;  %v968_v29 = vld [vmem:[%s4643_s2] sm:$0xff] (%p4005_p0) }
 0x2de   :  { %v972_v30 = vld [vmem:[%s4643_s2 + $0x20] sm:$0xff] (%p4005_p0) }
 0x2e1   : > { %v887_v24 = vpop.permute.xlu0 %886 }
 0x2e2   : > { %v2900_v9 = vpop.eup %2899  ;;  %v944_v43 = vmul.f32 %v936_v25, %v887_v24 }
 0x2e3   : > { %840 = vrot.lane.b32.xlu2 %v2900_v9, %s3251_s26 }
 0x2e4   : > { %v3962_v32 = vadd.f32 %v3161_v32, %v944_v43   ;;  %911 = vperm.xlu0 %2835, %v869_v44  }
 0x2e5   :  { %v973_v32 = vld [vmem:[%s4643_s2 + $0x28] sm:$0xff] (%p4005_p0) }
 0x2eb   : > { %906 = vperm.xlu2 %2834, %v868_v48  }
 0x32d   : > { %v831_v45 = vpop.permute.xlu0 %830 }
 0x32e   : > { %v854_v46 = vmul.f32 %v831_v45, %v3775_v62  ;;  %v966_v45 = vld [vmem:[%s4647_s6 + $0x38] sm:$0xff] (%p4005_p0) }
 0x32f   :  { %1030 = vmatpush.msra.mxu0 (%p4005_p0), %v966_v45  ;;  %2573 = vmatpush.msra.mxu3 (%p4005_p0), %v966_v45 }
 0x330   : > { %v871_v50 = vsub.f32 %v854_v46, %v3197_v40 }
 0x332   : > { %v919_v51 = vmul.f32 %v882_v21, %v871_v50  ;;  %v975_v50 = vld [vmem:[%s4643_s2 + $0x38] sm:$0xff] (%p4005_p0) }
 0x333   : > { %v839_v11 = vpop.permute.xlu1 %838 }
 0x334   : > { %v3969_v40 = vadd.f32 %v3197_v40, %v919_v51   ;;  %v858_v59 = vmul.f32 %v839_v11, %v3861_v10 }
 0x335   : > { %v835_v0 = vpop.permute.xlu2 %834 }
 0x336   : > { %v4656_v57 = vmov %v3969_v40  ;;  %v875_v42 = vsub.f32 %v858_v59, %v3181_v36  ;;  %v856_v63 = vmul.f32 %v835_v0, %v3867_v61  ;;  %v940_v61 = vsub.f32 %v811_v17, %v3145_v28 }
 0x337   :  { %984 = vrot.lane.b32.xlu0 (%p4005_p0), %v4656_v57, %s3252_s30 }
 0x338   : > { %v923_v1 = vmul.f32 %v902_v19, %v875_v42  ;;  %v873_v3 = vsub.f32 %v856_v63, %v3189_v38 }
 0x33a   : > { %v3976_v36 = vadd.f32 %v3181_v36, %v923_v1   ;;  %v921_v6 = vmul.f32 %v892_v2, %v873_v3  ;;  %v2901_v3 = vld [vmem:[%s4647_s6 + $0x40] ss:$0 sm:$0xff] (%p4005_p0) }
 0x33c   : > { %v4657_v62 = vmov %v3976_v36  ;;  %v3979_v38 = vadd.f32 %v3189_v38, %v921_v6  }
 0x33d   : > { %v841_v21 = vpop.permute.xlu2 %840 }
 0x33e   : > { %v4658_v7 = vmov %v3979_v38  ;;  %v859_v40 = vmul.f32 %v841_v21, %v3891_v55  ;;  %v833_v60 = vpop.permute.xlu1 %832 }
 0x33f   : > { %v855_v10 = vmul.f32 %v833_v60, %v3899_v56 }
 0x340   : > { %v876_v8 = vsub.f32 %v859_v40, %v3177_v35  ;;  %v4667_v40 = vmov %v4656_v57 }
 0x341   : > { %v872_v12 = vsub.f32 %v855_v10, %v3193_v39 }
 0x343   : > { %v920_v36 = vmul.f32 %v887_v24, %v872_v12 }
 0x345   : > { %v907_v58 = vpop.permute.xlu2 %906  ;;  %v843_v38 = vpop.permute.xlu0 %842  ;;  %v928_v55 = vadd.f32 %v3193_v39, %v920_v36   ;;  %v4663_v36 = vmov %v4657_v62 }
 0x346   : > { %v924_v13 = vmul.f32 %v907_v58, %v876_v8  ;;  %v948_v18 = vmul.f32 %v940_v61, %v907_v58  ;;  %v845_v19 = vpop.permute.xlu1 %844  ;;  %v860_v25 = vmul.f32 %v843_v38, %v3856_v14  ;;  %v4665_v38 = vmov %v4658_v7 }
 0x347   : > { %v861_v56 = vmul.f32 %v845_v19, %v3907_v15  ;;  %986 = vrot.lane.b32.xlu0 (%p4005_p0), %v928_v55, %s3252_s30 }
 0x348   : > { %v932_v2 = vadd.f32 %v3177_v35, %v924_v13   ;;  %v956_v28 = vadd.f32 %v3145_v28, %v948_v18   ;;  %v877_v39 = vsub.f32 %v860_v25, %v3173_v34 }
 0x349   : > { %v878_v17 = vsub.f32 %v861_v56, %v3169_v52  ;;  %v959_v28 = vld [vmem:[%s4647_s6] sm:$0xff] (%p4005_p0) }
 0x34a   :  { %994 = vrot.lane.b32.xlu1 (%p4005_p0), %v932_v2, %s3252_s30 }
 0x34e   : > { %v837_v20 = vpop.permute.xlu0 %836  ;;  %v917_v22 = vpop.permute.xlu1 %916 }
 0x34f   : > { %v857_v53 = vmul.f32 %v837_v20, %v3809_v47  ;;  %v926_v41 = vmul.f32 %v917_v22, %v878_v17  ;;  %v950_v24 = vmul.f32 %v942_v16, %v917_v22  ;;  %v941_v47 = vsub.f32 %v3923_v49, %v3141_v27  ;;  %v964_v49 = vld [vmem:[%s4647_s6 + $0x28] sm:$0xf] (%p4005_p0) }
 0x350   :  { %2527 = vmatpush.msk.msra.mxu1 (%p4005_p0), %vm1082_vm6, %v964_v49  ;;  %2575 = vmatpush.msk.msra.mxu2 (%p4005_p0), %vm1082_vm6, %v964_v49  ;;  %v4161_v49 = vld [vmem:[%s4648_s7 + $0x18] sm:$0xff] (%p4005_p0) }
 0x351   : > { %v874_v35 = vsub.f32 %v857_v53, %v3185_v37  ;;  %v934_v43 = vadd.f32 %v3169_v52, %v926_v41   ;;  %v958_v26 = vadd.f32 %v3137_v26, %v950_v24  }
 0x352   :  { %v960_v26 = vld [vmem:[%s4647_s6 + $0x8] sm:$0xff] (%p4005_p0)  ;;  %988 = vrot.lane.b32.xlu1 (%p4005_p0), %v4658_v7, %s3252_s30 }
 0x353   : > { %v922_v9 = vmul.f32 %v897_v23, %v874_v35  ;;  %v4660_v52 = vmov %v934_v43  ;;  %v4662_v35 = vmov %v932_v2  ;;  %v963_v23 = vld [vmem:[%s4647_s6 + $0x20] sm:$0xff] (%p4005_p0)  ;;  %998 = vrot.lane.b32.xlu0 (%p4005_p0), %v934_v43, %s3252_s30 }
 0x354   :  { %1097 = vmatpush.msra.mxu1 (%p4005_p0), %v963_v23  ;;  %2576 = vmatpush.msra.mxu2 (%p4005_p0), %v963_v23  ;;  %v974_v52 = vld [vmem:[%s4643_s2 + $0x30] sm:$0xff] (%p4005_p0) }
 0x355   : > { %v930_v15 = vadd.f32 %v3185_v37, %v922_v9  }
 0x356   : > { %v912_v54 = vpop.permute.xlu0 %911  ;;  %1098 = vmatpush.msra.mxu1 (%p4005_p0), %v962_v4  ;;  %2577 = vmatpush.msra.mxu2 (%p4005_p0), %v962_v4 }
 0x357   : > { %v925_v44 = vmul.f32 %v912_v54, %v877_v39  ;;  %v949_v48 = vmul.f32 %v941_v47, %v912_v54  ;;  %v4664_v37 = vmov %v930_v15  ;;  %v4666_v39 = vmov %v928_v55  ;;  %449 = sbr.rel (!%p4005_p0) target bundleno = 230 (0xe6), region = 99 }
 0x358   :  { %1099 = vmatpush.msra.mxu1 (%p4005_p0), %v961_v5  ;;  %2578 = vmatpush.msra.mxu2 (%p4005_p0), %v961_v5 }
 0x359   : > { %v933_v14 = vadd.f32 %v3173_v34, %v925_v44   ;;  %v957_v27 = vadd.f32 %v3141_v27, %v949_v48   ;;  %v4145_v44 = vld [vmem:[%s4648_s7] sm:$0xff] (%p4005_p0)  ;;  %v4150_v48 = vld [vmem:[%s4648_s7 + $0x8] sm:$0xff] (%p4005_p0) }
 0x35a   :  { %1100 = vmatpush.msra.mxu1 (%p4005_p0), %v960_v26  ;;  %2579 = vmatpush.msra.mxu2 (%p4005_p0), %v960_v26  ;;  %v965_v27 = vld [vmem:[%s4647_s6 + $0x30] sm:$0xff] (%p4005_p0)  ;;  %v4167_v26 = vmov (%p4005_p0), 0.0  }
 0x35b   : > { %v4661_v34 = vmov %v933_v14  ;;  %996 = vrot.lane.b32.xlu2 (%p4005_p0), %v933_v14, %s3252_s30  ;;  %992 = vrot.lane.b32.xlu1 (%p4005_p0), %v4657_v62, %s3252_s30  ;;  %v4155_v14 = vld [vmem:[%s4648_s7 + $0x10] sm:$0xff] (%p4005_p0) }
 0x35c   :  { %1031 = vmatpush.msra.mxu0 %v965_v27  ;;  %1101 = vmatpush.msra.mxu1 %v959_v28  ;;  %v971_v34 = vld [vmem:[%s4643_s2 + $0x18] sm:$0xff] }
 0x35d   :  { %2580 = vmatpush.msra.mxu2 %v959_v28  ;;  %2528 = vmatmul.msk.f32.vlgmr.msra.gmra.mxu1 %vm1057_vm7, %v968_v29 }
 0x35e   :  { %2532 = vmatmul.msk.f32.vlgmr.msra.gmra.mxu2 %vm1057_vm7, %v972_v30  ;;  %2574 = vmatpush.msra.mxu3 %v965_v27  ;;  %v4169_v27 = vmov 0.0  }
 0x363   :  { %990 = vrot.lane.b32.xlu2 %v930_v15, %s3252_s30 }
 0x365   :  { %2529 = vmatmul.msk.f32.gmra.mxu1 %vm1057_vm7, %v969_v31 }
 0x366   :  { %2533 = vmatmul.msk.f32.gmra.mxu2 %vm1057_vm7, %v973_v32 }
 0x36d   :  { %2530 = vmatmul.msk.f32.gmra.mxu1 %vm1057_vm7, %v970_v33 }
 0x36e   :  { %2534 = vmatmul.msk.f32.gmra.mxu2 %vm1057_vm7, %v974_v52 }
 0x375   :  { %2531 = vmatmul.msk.f32.gmra.mxu1 %vm1057_vm7, %v971_v34 }
 0x376   :  { %2535 = vmatmul.msk.f32.gmra.mxu2 %vm1057_vm7, %v975_v50 }
 0x3a9   :  { %v985_v37 = vpop.permute.xlu0 %984 }
 0x3aa   :  { %2519 = vmatmul.msk.f32.vlgmr.msra.gmra.mxu0 %vm90_vm0, %v985_v37 }
 0x3b5   :  { %v997_v51 = vpop.permute.xlu2 %996 }
 0x3b9   :  { %v987_v11 = vpop.permute.xlu0 %986 }
 0x3ba   :  { %2520 = vmatmul.msk.f32.gmra.mxu0 %vm90_vm0, %v987_v11 }
 0x3bc   :  { %v995_v46 = vpop.permute.xlu1 %994 }
 0x3bd   :  { %2524 = vmatmul.msk.f32.vlgmr.msra.gmra.mxu3 %vm90_vm0, %v995_v46  ;;  %v991_v42 = vpop.permute.xlu2 %990 }
 0x3c4   :  { %v989_v57 = vpop.permute.xlu1 %988 }
 0x3c5   :  { %2525 = vmatmul.msk.f32.gmra.mxu3 %vm90_vm0, %v997_v51  ;;  %v999_v59 = vpop.permute.xlu0 %998  ;;  %2521 = vmatmul.msk.f32.gmra.mxu0 %vm90_vm0, %v989_v57 }
 0x3cd   :  { %2526 = vmatmul.msk.f32.gmra.mxu3 %vm90_vm0, %v999_v59  ;;  %2522 = vmatmul.msk.f32.gmra.mxu0 %vm90_vm0, %v991_v42  ;;  %v993_v0 = vpop.permute.xlu1 %992 }
 0x3d5   :  { %2523 = vmatmul.msk.f32.gmra.mxu0 %vm90_vm0, %v993_v0 }
 0x3da   :  { %v1103_v63 = vpop.f32.mrf.mxu1 }
 0x3e1   :  { %v1115_v1 = vpop.f32.mrf.mxu2 }
 0x3e2   :  { %v1106_v7 = vpop.f32.mrf.mxu1 }
 0x3e9   :  { %v1118_v21 = vpop.f32.mrf.mxu2 }
 0x3ea   :  { %v1109_v13 = vpop.f32.mrf.mxu1 }
 0x3f1   :  { %v1121_v18 = vpop.f32.mrf.mxu2 }
 0x3f2   :  { %v1112_v53 = vpop.f32.mrf.mxu1 }
 0x3f9   :  { %v1124_v20 = vpop.f32.mrf.mxu2 }
 0x427   :  { %v1033_v62 = vpop.f32.mrf.mxu0 }
 0x428   :  { %v1104_v6 = vadd.f32 %v1103_v63, %v1033_v62 }
 0x42a   :  { %v1128_v40 = vadd.f32 %v2901_v3, %v1104_v6 }
 0x42c   :  { %1136 = vst.msk [vmem:[#allocation3] sm:$0xff] %vm396_vm1, %v1128_v40  ;;  %1152 = vrot.lane.b32.xlu2 %v1128_v40, %s3253_s18 }
 0x437   :  { %v1036_v8 = vpop.f32.mrf.mxu0 }
 0x438   :  { %v1107_v61 = vadd.f32 %v1106_v7, %v1036_v8 }
 0x43a   :  { %v1129_v12 = vadd.f32 %v2901_v3, %v1107_v61 }
 0x43c   :  { %1137 = vst.msk [vmem:[#allocation3 + $0x8] sm:$0xff] %vm396_vm1, %v1129_v12  ;;  %1154 = vrot.lane.b32.xlu0 %v1129_v12, %s3253_s18 }
 0x440   :  { %v1048_v60 = vpop.f32.mrf.mxu3 }
 0x441   :  { %v1119_v10 = vadd.f32 %v1118_v21, %v1048_v60 }
 0x442   :  { %v1039_v38 = vpop.f32.mrf.mxu0 }
 0x443   :  { %v1133_v58 = vadd.f32 %v2901_v3, %v1119_v10  ;;  %v1110_v55 = vadd.f32 %v1109_v13, %v1039_v38 }
 0x445   :  { %1141 = vst.msk [vmem:[#allocation3 + $0x28] sm:$0xff] %vm396_vm1, %v1133_v58  ;;  %v1130_v56 = vadd.f32 %v2901_v3, %v1110_v55 }
 0x447   :  { %1138 = vst.msk [vmem:[#allocation3 + $0x10] sm:$0xff] %vm396_vm1, %v1130_v56  ;;  %1156 = vrot.lane.b32.xlu1 %v1130_v56, %s3253_s18 }
 0x448   :  { %v1051_v36 = vpop.f32.mrf.mxu3 }
 0x449   :  { %v1122_v2 = vadd.f32 %v1121_v18, %v1051_v36 }
 0x44a   :  { %v1042_v22 = vpop.f32.mrf.mxu0 }
 0x44b   :  { %v1134_v19 = vadd.f32 %v2901_v3, %v1122_v2  ;;  %v1113_v25 = vadd.f32 %v1112_v53, %v1042_v22 }
 0x44d   :  { %1142 = vst.msk [vmem:[#allocation3 + $0x30] sm:$0xff] %vm396_vm1, %v1134_v19  ;;  %v1131_v41 = vadd.f32 %v2901_v3, %v1113_v25 }
 0x44f   :  { %1139 = vst.msk [vmem:[#allocation3 + $0x18] sm:$0xff] %vm396_vm1, %v1131_v41  ;;  %1162 = vrot.lane.b32.xlu1 %v1133_v58, %s3253_s18  ;;  %1158 = vrot.lane.b32.xlu2 %v1131_v41, %s3253_s18 }
 0x450   :  { %v1054_v17 = vpop.f32.mrf.mxu3 }
 0x451   :  { %v1125_v16 = vadd.f32 %v1124_v20, %v1054_v17 }
 0x452   :  { %v1045_v24 = vpop.f32.mrf.mxu0 }
 0x453   :  { %v1135_v35 = vadd.f32 %v2901_v3, %v1125_v16  ;;  %v1116_v9 = vadd.f32 %v1115_v1, %v1045_v24 }
 0x455   :  { %1143 = vst.msk [vmem:[#allocation3 + $0x38] sm:$0xff] %vm396_vm1, %v1135_v35  ;;  %v1132_v43 = vadd.f32 %v2901_v3, %v1116_v9 }
 0x457   :  { %1140 = vst.msk [vmem:[#allocation3 + $0x20] sm:$0xff] %vm396_vm1, %v1132_v43  ;;  %1160 = vrot.lane.b32.xlu0 %v1132_v43, %s3253_s18  ;;  %1164 = vrot.lane.b32.xlu2 %v1134_v19, %s3253_s18 }
 0x45f   :  { %1166 = vrot.lane.b32.xlu0 %v1135_v35, %s3253_s18 }
 0x486   :  { %v1153_v15 = vpop.permute.xlu2 %1152 }
 0x487   :  { %1176 = vst.msk [vmem:[#allocation4] sm:$0xff] %vm396_vm1, %v1153_v15 }
 0x4a9   :  { %v1159_v39 = vpop.permute.xlu2 %1158 }
 0x4aa   :  { %1179 = vst.msk [vmem:[#allocation4 + $0x18] sm:$0xff] %vm396_vm1, %v1159_v39 }
 0x4ae   :  { %v1155_v47 = vpop.permute.xlu0 %1154 }
 0x4af   :  { %1177 = vst.msk [vmem:[#allocation4 + $0x8] sm:$0xff] %vm396_vm1, %v1155_v47 }
 0x4b1   :  { %v1165_v54 = vpop.permute.xlu2 %1164 }
 0x4b2   :  { %1182 = vst.msk [vmem:[#allocation4 + $0x30] sm:$0xff] %vm396_vm1, %v1165_v54 }
 0x4b9   :  { %v1157_v23 = vpop.permute.xlu1 %1156 }
 0x4ba   :  { %1178 = vst.msk [vmem:[#allocation4 + $0x10] sm:$0xff] %vm396_vm1, %v1157_v23 }
 0x4c1   :  { %v1163_v45 = vpop.permute.xlu1 %1162 }
 0x4c2   :  { %1181 = vst.msk [vmem:[#allocation4 + $0x28] sm:$0xff] %vm396_vm1, %v1163_v45 }
 0x4c9   :  { %v1161_v4 = vpop.permute.xlu0 %1160 }
 0x4ca   :  { %1180 = vst.msk [vmem:[#allocation4 + $0x20] sm:$0xff] %vm396_vm1, %v1161_v4 }
 0x4d1   :  { %v1167_v5 = vpop.permute.xlu0 %1166 }
 0x4d2   :  { %1183 = vst.msk [vmem:[#allocation4 + $0x38] sm:$0xff] %vm396_vm1, %v1167_v5 }
 0x4d3 LB: > { %1218 = vmatpush.msra.mxu0 %v4150_v48  ;;  %s3254_s7 = smov 80   ;;  %s4186_s25 = sshll.u32 %s3213_s24, 3  ;;  %v3256_v46 = vmov 0   ;;  %s3213_s24 = sphi %s4171_s24, %s1193_s24   ;;  %v3209_v27 = vphi %v4169_v27, %v1271_v27   ;;  %v3205_v26 = vphi %v4167_v26, %v1274_v26  }
 0x4d4   : > { %1200 = vrot.lane.b32.xlu0 %v3209_v27, %s3254_s7  ;;  %s1197_s26 = scalar_lea.vmem [#allocation3], %s4186_s25  ;;  %s3255_s27 = smov 96   ;;  %2902 = vset.pattern.permute.xlu2 %v3256_v46 }
 0x4d5   : > { %1219 = vmatpush.msra.mxu0 %v4145_v44  ;;  %v1198_v29 = vld [vmem:[%s1197_s26] sm:$0xff]  ;;  %s1262_s30 = scalar_lea.vmem %s4644_s3, %s4186_s25  ;;  %2903 = vset.pattern.permute.xlu0 %v3256_v46  ;;  %s3257_s11 = smov 16  }
 0x4d6   : > { %v1263_v37 = vld [vmem:[%s1262_s30] sm:$0xff]  ;;  %s3258_s12 = smov 32   ;;  %s1280_s13 = scalar_lea.vmem [#allocation5], %s4186_s25 }
 0x4d7   : > { %1267 = vperm.xlu2 %2902, %v1263_v37   ;;  %s1193_s24 = sadd.s32 1, %s3213_s24  }
 0x4d8   : > { %p1190_p1 = scmp.ge.s32.totalorder %s1193_s24, 8  }
 0x4d9   :  { %v4205_v38 = vmov (%p1190_p1), 0.0   ;;  %v4207_v55 = vmov (%p1190_p1), 0.0   ;;  %s4209_s14 = smov (%p1190_p1), 0  }
 0x531   : > { %v1268_v60 = vpop.permute.xlu2 %1267 }
 0x546   : > { %v1201_v28 = vpop.permute.xlu0 %1200 }
 0x547   : > { %2537 = vmatmul.msk.f32.vlgmr.msra.gmra.mxu0 %vm90_vm0, %v1201_v28 }
 0x5c4   : > { %v1221_v30 = vpop.f32.mrf.mxu0 }
 0x5c5   : > { %v1224_v31 = vadd.f32 %v1221_v30, %v1198_v29 }
 0x5c7   : > { %2904 = vtanh.f32 %v1224_v31  ;;  %v2538_v33 = vmul.f32 -1.442695, %v1224_v31 }
 0x5c9   : > { %2906 = vpow2.f32 %v2538_v33 }
 0x5cd   : > { %v2905_v32 = vpop.eup %2904 }
 0x5ce   : > { %1247 = vrot.lane.b32.xlu0 %v2905_v32, %s3255_s27 }
 0x5cf   : > { %v2907_v52 = vpop.eup %2906 }
 0x5d0   : > { %v1228_v34 = vadd.f32 1.0, %v2907_v52 }
 0x5d2   : > { %2908 = vrcp.f32 %v1228_v34  ;;  %v1240_v42 = vand.u32 2147483648, %v1228_v34  ;;  %vm1234_vm8 = vweird.f32 %v1228_v34  ;;  %v1238_v0 = vand.u32 2147483647, %v1228_v34 }
 0x5d4   : > { %v1241_v1 = vor.u32 1.1754944e-38, %v1240_v42  ;;  %vm1239_vm10 = vcmp.eq.f32.partialorder %v1238_v0, 8.507059e+37 }
 0x5d8   : > { %v2909_v50 = vpop.eup %2908 }
 0x5d9   : > { %v1230_v51 = vmul.f32 %v2909_v50, %v1228_v34  ;;  %vm1235_vm1 = vweird.f32 %v2909_v50 }
 0x5da   : > { %vm1236_vm9 = vmor %vm1234_vm8, %vm1235_vm1 }
 0x5db   : > { %v1231_v11 = vsub.f32 1.0, %v1230_v51 }
 0x5dd   : > { %v1232_v57 = vmul.f32 %v2909_v50, %v1231_v11 }
 0x5df   : > { %v1233_v59 = vadd.f32 %v2909_v50, %v1232_v57 }
 0x5e1   : > { %v1237_v63 = vsel %vm1236_vm9, %v2909_v50, %v1233_v59 }
 0x5e2   : > { %v1242_v62 = vsel %vm1239_vm10, %v1241_v1, %v1237_v63 }
 0x5e3   : > { %v1245_v7 = vmul.f32 %v3205_v26, %v1242_v62 }
 0x640   : > { %v1248_v3 = vpop.permute.xlu0 %1247 }
 0x641   : > { %v1250_v6 = vmul.f32 %v1248_v3, %v1242_v62 }
 0x643   : > { %1252 = vrot.lane.b32.xlu1 %v1250_v6, %s3257_s11 }
 0x6b5   : > { %v1253_v21 = vpop.permute.xlu1 %1252 }
 0x6b6   : > { %v1255_v40 = vadd.f32 %v1253_v21, %v1245_v7 }
 0x6b8   : > { %2910 = vtanh.f32 %v1255_v40  ;;  %v1272_v10 = vsub.f32 %v1255_v40, %v3205_v26 }
 0x6ba   : > { %v1273_v8 = vmul.f32 %v1272_v10, %v1268_v60 }
 0x6bc   : > { %v1274_v26 = vadd.f32 %v3205_v26, %v1273_v8  }
 0x6be   : > { %v2911_v61 = vpop.eup %2910 }
 0x6bf   : > { %1258 = vrot.lane.b32.xlu1 %v2911_v61, %s3258_s12 }
 0x731   : > { %v1259_v58 = vpop.permute.xlu1 %1258 }
 0x732   : > { %v1261_v12 = vmul.f32 %v1259_v58, %v1242_v62 }
 0x734   : > { %v1264_v13 = vsub.f32 %v1261_v12, %v3209_v27  ;;  %v1275_v18 = vmul.f32 %v1268_v60, %v1261_v12 }
 0x736   : > { %v1270_v36 = vmul.f32 %v1268_v60, %v1264_v13  ;;  %1277 = vrot.lane.b32.xlu2 %v1275_v18, %s3254_s7 }
 0x738   : > { %v1271_v27 = vadd.f32 %v3209_v27, %v1270_v36  }
 0x78d   :  { %1192 = sbr.rel (!%p1190_p1) target bundleno = 1235 (0x4d3), region = 110 }
 0x790   : > { %v1278_v2 = vpop.permute.xlu2 %1277 }
 0x791   : > { %1281 = vst.msk [vmem:[%s1280_s13] sm:$0xff] %vm90_vm0, %v1278_v2 }
 0x792 LB: > { %1313 = vmatpush.msra.mxu0 %v4161_v49  ;;  %s3259_s1 = smov 80   ;;  %s1290_s15 = ssub.s32 7, %s3225_s14  ;;  %v3261_v41 = vmov 0   ;;  %s3225_s14 = sphi %s4209_s14, %s1287_s14   ;;  %v3221_v55 = vphi %v4207_v55, %v1366_v55   ;;  %v3217_v38 = vphi %v4205_v38, %v1369_v38  }
 0x793   : > { %1295 = vrot.lane.b32.xlu0 %v3221_v55, %s3259_s1  ;;  %s4224_s16 = sshll.u32 %s1290_s15, 3  ;;  %s3260_s17 = smov 96   ;;  %2912 = vset.pattern.permute.xlu2 %v3261_v41 }
 0x794   : > { %1314 = vmatpush.msra.mxu0 %v4155_v14  ;;  %s1292_s2 = scalar_lea.vmem [#allocation4], %s4224_s16  ;;  %s1357_s0 = scalar_lea.vmem %s4644_s3, %s4224_s16  ;;  %2913 = vset.pattern.permute.xlu0 %v3261_v41 }
 0x795   : > { %v1293_v56 = vld [vmem:[%s1292_s2] sm:$0xff]  ;;  %s3262_s5 = smov 16   ;;  %s3263_s19 = smov 32  }
 0x796   : > { %v1358_v35 = vld [vmem:[%s1357_s0] sm:$0xff]  ;;  %s1375_s20 = scalar_lea.vmem [#allocation6], %s4224_s16  ;;  %s1287_s14 = sadd.s32 1, %s3225_s14  }
 0x797   : > { %1362 = vperm.xlu2 %2912, %v1358_v35   ;;  %p1284_p2 = scmp.ge.s32.totalorder %s1287_s14, 8  }
 0x798   :  { %v1380_v50 = vld [vmem:[%s4649_s8 + $0x18] sm:$0xff] (%p1284_p2)  ;;  %v1378_v51 = vld [vmem:[%s4649_s8 + $0x8] sm:$0xff] (%p1284_p2)  ;;  %v1379_v11 = vld [vmem:[%s4649_s8 + $0x10] sm:$0xff] (%p1284_p2)  ;;  %v3264_v14 = vmov (%p1284_p2), 0   ;;  %v1549_v2 = vlaneseq (%p1284_p2)  ;;  %v3265_v41 = vmov (%p1284_p2), 0.0  }
 0x799   :  { %1501 = vmatpush.msra.mxu1 (%p1284_p2), %v1378_v51  ;;  %v1377_v57 = vld [vmem:[%s4649_s8] sm:$0xff] (%p1284_p2)  ;;  %2922 = vset.pattern.permute.xlu0 (%p1284_p2), %v3264_v14  ;;  %v1383_v3 = vld [vmem:[#allocation5 + $0x8] sm:$0xff] (%p1284_p2)  ;;  %v1384_v21 = vld [vmem:[#allocation5 + $0x10] sm:$0xff] (%p1284_p2) }
 0x79a   :  { %v1382_v42 = vld [vmem:[#allocation5] sm:$0xff] (%p1284_p2)  ;;  %2581 = vmatpush.msra.mxu2 (%p1284_p2), %v1380_v50  ;;  %2583 = vmatpush.msra.mxu3 (%p1284_p2), %v1378_v51  ;;  %v1387_v6 = vld [vmem:[#allocation5 + $0x28] sm:$0xff] (%p1284_p2)  ;;  %v1388_v60 = vld [vmem:[#allocation5 + $0x30] sm:$0xff] (%p1284_p2) }
 0x79b   :  { %v1552_v49 = vld [vmem:[%s4645_s4] sm:$0xff] (%p1284_p2)  ;;  %1502 = vmatpush.msra.mxu1 (%p1284_p2), %v1377_v57  ;;  %v1389_v8 = vld [vmem:[#allocation5 + $0x38] sm:$0xff] (%p1284_p2) }
 0x79c   :  { %2550 = vmatmul.msk.f32.vlgmr.msra.gmra.mxu1 (%p1284_p2), %vm90_vm0, %v1382_v42  ;;  %v1386_v63 = vld [vmem:[#allocation5 + $0x20] sm:$0xff] (%p1284_p2)  ;;  %2582 = vmatpush.msra.mxu2 (%p1284_p2), %v1379_v11  ;;  %v1385_v58 = vld [vmem:[#allocation5 + $0x18] sm:$0xff] (%p1284_p2) }
 0x79d   :  { %2584 = vmatpush.msra.mxu3 (%p1284_p2), %v1377_v57  ;;  %v2923_v12 = vld [vmem:[%s4649_s8 + $0x20] ss:$0 sm:$0xff] (%p1284_p2)  ;;  %v4306_v57 = vld [vmem:[%s4650_s9 + $0x18] sm:$0x1] (%p1284_p2) }
 0x79e   :  { %2554 = vmatmul.msk.f32.vlgmr.msra.gmra.mxu3 (%p1284_p2), %vm90_vm0, %v1386_v63  ;;  %v4296_v51 = vld [vmem:[%s4650_s9] sm:$0xff] (%p1284_p2) }
 0x7a4   :  { %2551 = vmatmul.msk.f32.gmra.mxu1 (%p1284_p2), %vm90_vm0, %v1383_v3 }
 0x7a6   :  { %2555 = vmatmul.msk.f32.gmra.mxu3 (%p1284_p2), %vm90_vm0, %v1387_v6 }
 0x7ac   :  { %2552 = vmatmul.msk.f32.gmra.mxu1 (%p1284_p2), %vm90_vm0, %v1384_v21 }
 0x7ae   :  { %2556 = vmatmul.msk.f32.gmra.mxu3 (%p1284_p2), %vm90_vm0, %v1388_v60 }
 0x7b4   :  { %2553 = vmatmul.msk.f32.gmra.mxu1 (%p1284_p2), %vm90_vm0, %v1385_v58 }
 0x7b6   :  { %2557 = vmatmul.msk.f32.gmra.mxu3 (%p1284_p2), %vm90_vm0, %v1389_v8 }
 0x7f1   : > { %v1363_v28 = vpop.permute.xlu2 %1362 }
 0x805   : > { %v1296_v19 = vpop.permute.xlu0 %1295 }
 0x806   : > { %2540 = vmatmul.msk.f32.vlgmr.msra.gmra.mxu0 %vm90_vm0, %v1296_v19 }
 0x807   :  { %1436 = vmatpush.msra.mxu0 (%p1284_p2), %v1380_v50 }
 0x809   :  { %1437 = vmatpush.msra.mxu0 (%p1284_p2), %v1379_v11  ;;  %v4301_v11 = vld [vmem:[%s4650_s9 + $0x8] sm:$0xff] (%p1284_p2) }
 0x819   :  { %v1504_v18 = vpop.f32.mrf.mxu1 (%p1284_p2) }
 0x883   : > { %v1316_v20 = vpop.f32.mrf.mxu0 }
 0x884   : > { %v1319_v53 = vadd.f32 %v1316_v20, %v1293_v56  ;;  %v1507_v20 = vpop.f32.mrf.mxu1 (%p1284_p2) }
 0x886   : > { %2914 = vtanh.f32 %v1319_v53  ;;  %v2541_v16 = vmul.f32 -1.442695, %v1319_v53  ;;  %v2924_v53 = vld [vmem:[%s4650_s9 + $0x10] ss:$0 sm:$0xff] (%p1284_p2) }
 0x888   : > { %2916 = vpow2.f32 %v2541_v16 }
 0x88c   : > { %v2915_v17 = vpop.eup %2914 }
 0x88d   : > { %1342 = vrot.lane.b32.xlu0 %v2915_v17, %s3260_s17  ;;  %s4316_s17 = smov (%p1284_p2), 1  }
 0x88e   : > { %v2917_v22 = vpop.eup %2916 }
 0x88f   : > { %v1323_v25 = vadd.f32 1.0, %v2917_v22  ;;  %v1516_v22 = vpop.f32.mrf.mxu3 (%p1284_p2) }
 0x891   : > { %2918 = vrcp.f32 %v1323_v25  ;;  %v1335_v47 = vand.u32 2147483648, %v1323_v25  ;;  %vm1329_vm12 = vweird.f32 %v1323_v25  ;;  %v1333_v54 = vand.u32 2147483647, %v1323_v25 }
 0x893   : > { %v1336_v48 = vor.u32 1.1754944e-38, %v1335_v47  ;;  %vm1334_vm14 = vcmp.eq.f32.partialorder %v1333_v54, 8.507059e+37  ;;  %v1510_v54 = vpop.f32.mrf.mxu1 (%p1284_p2) }
 0x895   :  { %1554 = vperm.xlu0 (%p1284_p2), %2922, %v1552_v49  }
 0x897   : > { %v2919_v24 = vpop.eup %2918 }
 0x898   : > { %v1325_v9 = vmul.f32 %v2919_v24, %v1323_v25  ;;  %vm1330_vm11 = vweird.f32 %v2919_v24 }
 0x899   : > { %vm1331_vm13 = vmor %vm1329_vm12, %vm1330_vm11 }
 0x89a   : > { %v1326_v43 = vsub.f32 1.0, %v1325_v9 }
 0x89c   : > { %v1327_v15 = vmul.f32 %v2919_v24, %v1326_v43 }
 0x89e   : > { %v1328_v39 = vadd.f32 %v2919_v24, %v1327_v15 }
 0x8a0   : > { %v1332_v44 = vsel %vm1331_vm13, %v2919_v24, %v1328_v39 }
 0x8a1   : > { %v1337_v45 = vsel %vm1334_vm14, %v1336_v48, %v1332_v44 }
 0x8a2   : > { %v1340_v5 = vmul.f32 %v3217_v38, %v1337_v45 }
 0x8ff   : > { %v1343_v23 = vpop.permute.xlu0 %1342 }
 0x900   : > { %v1345_v4 = vmul.f32 %v1343_v23, %v1337_v45 }
 0x902   : > { %1347 = vrot.lane.b32.xlu1 %v1345_v4, %s3262_s5 }
 0x907   :  { %v1555_v19 = vpop.permute.xlu0 (%p1284_p2), %1554 }
 0x974   : > { %v1348_v26 = vpop.permute.xlu1 %1347 }
 0x975   : > { %v1350_v27 = vadd.f32 %v1348_v26, %v1340_v5 }
 0x977   : > { %2920 = vtanh.f32 %v1350_v27  ;;  %v1367_v29 = vsub.f32 %v1350_v27, %v3217_v38 }
 0x979   : > { %v1368_v30 = vmul.f32 %v1367_v29, %v1363_v28 }
 0x97b   : > { %v1369_v38 = vadd.f32 %v3217_v38, %v1368_v30  }
 0x97d   : > { %v2921_v31 = vpop.eup %2920 }
 0x97e   : > { %1353 = vrot.lane.b32.xlu1 %v2921_v31, %s3263_s19 }
 0x9f0   : > { %v1354_v32 = vpop.permute.xlu1 %1353 }
 0x9f1   : > { %v1356_v33 = vmul.f32 %v1354_v32, %v1337_v45  ;;  %v1519_v45 = vpop.f32.mrf.mxu3 (%p1284_p2) }
 0x9f3   : > { %v1359_v52 = vsub.f32 %v1356_v33, %v3221_v55  ;;  %v1370_v34 = vmul.f32 %v1363_v28, %v1356_v33 }
 0x9f5   : > { %v1365_v37 = vmul.f32 %v1363_v28, %v1359_v52  ;;  %1372 = vrot.lane.b32.xlu2 %v1370_v34, %s3259_s1 }
 0x9f7   : > { %v1366_v55 = vadd.f32 %v3221_v55, %v1365_v37   ;;  %v1513_v37 = vpop.f32.mrf.mxu1 (%p1284_p2) }
 0x9f8   :  { %v4279_v55 = vand.u32 (%p1284_p2), 127, %v1549_v2 }
 0x9f9   :  { %v1522_v28 = vpop.f32.mrf.mxu3 (%p1284_p2) }
 0x9fa   :  { %vm1556_vm15 = vcmp.eq.s32.totalorder (%p1284_p2), %v4279_v55, %v1555_v19 }
 0x9fb   :  { %v2558_v24 = vsel (%p1284_p2), %vm1556_vm15, 1.0, %v3265_v41  }
 0x9fc   :  { %v4668_v42 = vmov (%p1284_p2), %v2558_v24 }
 0xa01   :  { %v1525_v32 = vpop.f32.mrf.mxu3 (%p1284_p2) }
 0xa4c   :  { %1286 = sbr.rel (!%p1284_p2) target bundleno = 1938 (0x792), region = 121 }
 0xa4f   : > { %v1373_v46 = vpop.permute.xlu2 %1372 }
 0xa50   : > { %1376 = vst.msk [vmem:[%s1375_s20] sm:$0xff] %vm90_vm0, %v1373_v46 }
 0xa57   :  { %v1390_v59 = vld [vmem:[#allocation6] sm:$0xff]  ;;  %v1391_v1 = vld [vmem:[#allocation6 + $0x8] sm:$0xff]  ;;  %v1392_v7 = vld [vmem:[#allocation6 + $0x10] sm:$0xff] }
 0xa58   :  { %2542 = vmatmul.msk.f32.vlgmr.msra.gmra.mxu0 %vm90_vm0, %v1390_v59  ;;  %v1394_v0 = vld [vmem:[#allocation6 + $0x20] sm:$0xff]  ;;  %v1395_v62 = vld [vmem:[#allocation6 + $0x28] sm:$0xff]  ;;  %v1396_v40 = vld [vmem:[#allocation6 + $0x30] sm:$0xff] }
 0xa59   :  { %2546 = vmatmul.msk.f32.vlgmr.msra.gmra.mxu2 %vm90_vm0, %v1394_v0  ;;  %v1397_v10 = vld [vmem:[#allocation6 + $0x38] sm:$0xff] }
 0xa5a   :  { %v1393_v61 = vld [vmem:[#allocation6 + $0x18] sm:$0xff] }
 0xa60   :  { %2543 = vmatmul.msk.f32.gmra.mxu0 %vm90_vm0, %v1391_v1 }
 0xa61   :  { %2547 = vmatmul.msk.f32.gmra.mxu2 %vm90_vm0, %v1395_v62 }
 0xa68   :  { %2544 = vmatmul.msk.f32.gmra.mxu0 %vm90_vm0, %v1392_v7 }
 0xa69   :  { %2548 = vmatmul.msk.f32.gmra.mxu2 %vm90_vm0, %v1396_v40 }
 0xa70   :  { %2545 = vmatmul.msk.f32.gmra.mxu0 %vm90_vm0, %v1393_v61 }
 0xa71   :  { %2549 = vmatmul.msk.f32.gmra.mxu2 %vm90_vm0, %v1397_v10 }
 0xad5   :  { %v1439_v13 = vpop.f32.mrf.mxu0 }
 0xad6   :  { %v1505_v36 = vadd.f32 %v1504_v18, %v1439_v13 }
 0xad8   :  { %v1529_v38 = vadd.f32 %v2923_v12, %v1505_v36 }
 0xada   :  { %1537 = vst.msk [vmem:[#allocation7] sm:$0xff] %vm90_vm0, %v1529_v38 }
 0xadc   :  { %v1451_v17 = vpop.f32.mrf.mxu2 }
 0xadd   :  { %v1442_v56 = vpop.f32.mrf.mxu0  ;;  %v1517_v25 = vadd.f32 %v1516_v22, %v1451_v17 }
 0xade   :  { %v1508_v16 = vadd.f32 %v1507_v20, %v1442_v56 }
 0xadf   :  { %v1533_v15 = vadd.f32 %v2923_v12, %v1517_v25 }
 0xae0   :  { %v1530_v35 = vadd.f32 %v2923_v12, %v1508_v16 }
 0xae1   :  { %v1551_v9 = vld [vmem:[#allocation7] sm:$0xff]  ;;  %1541 = vst.msk [vmem:[#allocation7 + $0x20] sm:$0xff] %vm90_vm0, %v1533_v15 }
 0xae2   :  { %v1560_v43 = vadd.f32 %v2924_v53, %v1551_v9   ;;  %1538 = vst.msk [vmem:[#allocation7 + $0x8] sm:$0xff] %vm90_vm0, %v1530_v35 }
 0xae4   :  { %v1561_v39 = vmul.f32 %v2558_v24, %v1560_v43  ;;  %v1454_v48 = vpop.f32.mrf.mxu2 }
 0xae5   :  { %v1445_v47 = vpop.f32.mrf.mxu0  ;;  %v1520_v4 = vadd.f32 %v1519_v45, %v1454_v48 }
 0xae6   :  { %v1562_v44 = vsel %vm90_vm0, %v1561_v39, 0.0  ;;  %v1511_v23 = vadd.f32 %v1510_v54, %v1445_v47 }
 0xae7   :  { %1563 = vadd.xlane.f32.xlu0 %v1562_v44  ;;  %v1534_v26 = vadd.f32 %v2923_v12, %v1520_v4 }
 0xae8   :  { %v1531_v5 = vadd.f32 %v2923_v12, %v1511_v23 }
 0xae9   :  { %1542 = vst.msk [vmem:[#allocation7 + $0x28] sm:$0xff] %vm90_vm0, %v1534_v26 }
 0xaea   :  { %1539 = vst.msk [vmem:[#allocation7 + $0x10] sm:$0xff] %vm90_vm0, %v1531_v5 }
 0xaec   :  { %v1457_v27 = vpop.f32.mrf.mxu2 }
 0xaed   :  { %v1523_v29 = vadd.f32 %v1522_v28, %v1457_v27  ;;  %v1448_v34 = vpop.f32.mrf.mxu0 }
 0xaee   :  { %v1514_v46 = vadd.f32 %v1513_v37, %v1448_v34 }
 0xaef   :  { %v1535_v30 = vadd.f32 %v2923_v12, %v1523_v29 }
 0xaf0   :  { %v1532_v50 = vadd.f32 %v2923_v12, %v1514_v46 }
 0xaf1   :  { %1543 = vst.msk [vmem:[#allocation7 + $0x30] sm:$0xff] %vm90_vm0, %v1535_v30 }
 0xaf2   :  { %1540 = vst.msk [vmem:[#allocation7 + $0x18] sm:$0xff] %vm90_vm0, %v1532_v50 }
 0xaf4   :  { %v1460_v31 = vpop.f32.mrf.mxu2 }
 0xaf5   :  { %v1526_v33 = vadd.f32 %v1525_v32, %v1460_v31 }
 0xaf7   :  { %v1536_v52 = vadd.f32 %v2923_v12, %v1526_v33 }
 0xaf9   :  { %1544 = vst.msk [vmem:[#allocation7 + $0x38] sm:$0xff] %vm90_vm0, %v1536_v52 }
 0xb5a   :  { %v1564_v59 = vpop.xlane.xlu0 %1563  }
 0xb5b LB: > { %v4332_v14 = vshrl.u32 %v1549_v2, 7  ;;  %v3266_v49 = vmov 0   ;;  %s4337_s9 = sshll.u32 %s3245_s17, 3  ;;  %v1601_v63 = vperm.slane %v3229_v42, 1  ;;  %v1614_v1 = vperm.slane %v3229_v42, 2  ;;  %s1570_s17 = sadd.s32 1, %s3245_s17   ;;  %s3245_s17 = sphi %s4316_s17, %s1570_s17   ;;  %v3241_v43 = vphi %v1560_v43, %v4674_v43   ;;  %v3237_v59 = vphi %v1564_v59, %v4673_v59   ;;  %v3233_v24 = vphi %v2558_v24, %v4672_v24   ;;  %v3229_v42 = vphi %v4668_v42, %v4671_v42  }
 0xb5c   : > { %2925 = vset.pattern.permute.xlu0 %v3266_v49  ;;  %s1580_s0 = scalar_lea.vmem %s4645_s4, %s4337_s9  ;;  %v1588_v62 = vperm.slane %v3229_v42, 0  ;;  %v1666_v6 = vperm.slane %v3229_v42, 6  ;;  %v1863_v7 = vperm.slane %v3241_v43, 0  ;;  %v1627_v21 = vperm.slane %v3229_v42, 3  ;;  %s1578_s5 = scalar_lea.vmem [#allocation7], %s4337_s9 }
 0xb5d   : > { %2927 = vset.pattern.permute.xlu1 %v4332_v14  ;;  %2928 = vset.pattern.permute.xlu2 %v4332_v14  ;;  %v1581_v0 = vld [vmem:[%s1580_s0] sm:$0xff]  ;;  %v4346_v3 = vadd.s32 8, %v4332_v14  ;;  %v1928_v40 = vperm.slane %v3241_v43, 5  ;;  %v1640_v60 = vperm.slane %v3229_v42, 4  ;;  %v1653_v10 = vperm.slane %v3229_v42, 5  ;;  %s1576_s21 = scalar_lea.vmem %s4644_s3, %s4337_s9  ;;  %p1567_p3 = scmp.ge.s32.totalorder %s1570_s17, 8  }
 0xb5e   : > { %1583 = vperm.xlu0 %2925, %v1581_v0   ;;  %v1876_v8 = vperm.slane %v3241_v43, 1  ;;  %v1679_v61 = vperm.slane %v3229_v42, 7  ;;  %v1902_v58 = vperm.slane %v3241_v43, 3  ;;  %v1941_v12 = vperm.slane %v3241_v43, 6  ;;  %v4377_v25 = vld [vmem:[%s1578_s5] sm:$0xff]  ;;  %s3268_s23 = smov (%p1567_p3), [#allocation8]  }
 0xb5f   : > { %v1889_v13 = vperm.slane %v3241_v43, 2  ;;  %v1915_v18 = vperm.slane %v3241_v43, 4  ;;  %v1785_v35 = vrot.slane %v4377_v25, 5  ;;  %vm1837_vm3 = vcmask 1041409   ;;  %s2329_s24 = sshll.u32 (%p1567_p3), %s3268_s23, 4  ;;  %s2331_s26 = sshll.u32 (%p1567_p3), %s4651_s10, 4  ;;  %s2330_s24 = int_to_ptr.vmem [resolvable:$true] %s2329_s24  ;;  %s2332_s26 = int_to_ptr.hbm [resolvable:$true] %s2331_s26 }
 0xb60   : > { %vm1840_vm4 = vcmask 1042434   ;;  %vm1843_vm5 = vcmask 1043459   ;;  %vm1846_vm6 = vcmask 1044484   ;;  %vm1849_vm7 = vcmask 1045509  }
 0xb61   : > { %v4383_v9 = vperm.slane %v1785_v35, 0  ;;  %vm1852_vm1 = vcmask 1046534   ;;  %vm1855_vm8 = vcmask 1047559   ;;  %vm2310_vm9 = vcmask (%p1567_p3), 7168  }
 0xb65   : > { %1606 = vperm.xlu1 %2927, %v1601_v63   ;;  %1619 = vperm.xlu2 %2928, %v1614_v1  }
 0xb66   : > { %2926 = vset.pattern.permute.xlu0 %v4332_v14 }
 0xb6d   : > { %2929 = vset.pattern.permute.xlu1 %v4346_v3  ;;  %2930 = vset.pattern.permute.xlu2 %v4346_v3 }
 0xb6e   : > { %1593 = vperm.xlu0 %2926, %v1588_v62  }
 0xb75   : > { %1599 = vperm.xlu1 %2929, %v1588_v62   ;;  %1612 = vperm.xlu2 %2930, %v1601_v63  }
 0xb76   : > { %1671 = vperm.xlu0 %2926, %v1666_v6  }
 0xb7d   : > { %1625 = vperm.xlu1 %2929, %v1614_v1   ;;  %2931 = vset.pattern.permute.xlu2 %v4332_v14 }
 0xb7e   : > { %1868 = vperm.xlu0 %2926, %v1863_v7  }
 0xb85   : > { %2932 = vset.pattern.permute.xlu1 %v4332_v14  ;;  %1632 = vperm.xlu2 %2931, %v1627_v21  }
 0xb86   : > { %1933 = vperm.xlu0 %2926, %v1928_v40  }
 0xb8d   : > { %1645 = vperm.xlu1 %2932, %v1640_v60   ;;  %2933 = vset.pattern.permute.xlu2 %v4346_v3 }
 0xb8e   : > { %2940 = vset.pattern.permute.xlu0 %v4346_v3 }
 0xb95   : > { %1658 = vperm.xlu1 %2932, %v1653_v10   ;;  %1651 = vperm.xlu2 %2933, %v1640_v60  }
 0xb96   : > { %1638 = vperm.xlu0 %2940, %v1627_v21  }
 0xb9d   : > { %2934 = vset.pattern.permute.xlu1 %v4346_v3  ;;  %1664 = vperm.xlu2 %2933, %v1653_v10  }
 0xb9e   : > { %1887 = vperm.xlu0 %2940, %v1876_v8  }
 0xba5   : > { %1677 = vperm.xlu1 %2934, %v1666_v6   ;;  %2935 = vset.pattern.permute.xlu2 %v4332_v14 }
 0xba6   : > { %1874 = vperm.xlu0 %2940, %v1863_v7  }
 0xbad   : > { %1690 = vperm.xlu1 %2934, %v1679_v61   ;;  %1684 = vperm.xlu2 %2935, %v1679_v61  }
 0xbae   : > { %1913 = vperm.xlu0 %2940, %v1902_v58  }
 0xbb5   : > { %2936 = vset.pattern.permute.xlu1 %v4332_v14  ;;  %2939 = vset.pattern.permute.xlu2 %v4346_v3 }
 0xbb6   : > { %1952 = vperm.xlu0 %2940, %v1941_v12  }
 0xbbd   : > { %1881 = vperm.xlu1 %2936, %v1876_v8   ;;  %1926 = vperm.xlu2 %2939, %v1915_v18  }
 0xbbe   : > { %2944 = vset.pattern.permute.xlu0 %v3266_v49 }
 0xbbf   : > { %v1620_v38 = vpop.permute.xlu2 %1619 }
 0xbc0   : > { %v1696_v4 = vmul.f32 %v1620_v38, %v4296_v51 }
 0xbc2   : > { %v1726_v31 = vsel %vm90_vm0, %v1696_v4, 0.0 }
 0xbc5   : > { %1894 = vperm.xlu1 %2936, %v1889_v13  }
 0xbcd   : > { %2937 = vset.pattern.permute.xlu1 %v4346_v3 }
 0xbcf   : > { %v1613_v20 = vpop.permute.xlu2 %1612 }
 0xbd0   : > { %v4369_v36 = vpop.permute.xlu0 %1583  ;;  %v1695_v54 = vmul.f32 %v1613_v20, %v4301_v11 }
 0xbd1   : > { %vm1585_vm2 = vcmp.eq.s32.totalorder %v4279_v55, %v4369_v36 }
 0xbd2   : > { %v1718_v5 = vsel %vm90_vm0, %v1695_v54, 0.0 }
 0xbd5   : > { %1900 = vperm.xlu1 %2937, %v1889_v13  }
 0xbd7   : > { %v1607_v56 = vpop.permute.xlu1 %1606 }
 0xbd8   : > { %v1694_v44 = vmul.f32 %v1607_v56, %v4296_v51 }
 0xbda   : > { %v1717_v26 = vsel %vm90_vm0, %v1694_v44, 0.0 }
 0xbdb   : > { %v1719_v30 = vadd.f32 %v1718_v5, %v1717_v26  ;;  %v1983_v26 = vperm.slane %v4377_v25, 0 }
 0xbdd   : > { %2938 = vset.pattern.permute.xlu1 %v4332_v14  ;;  %v1720_v42 = vrot.slane %v1719_v30, 4 }
 0xbdf   : > { %v1633_v16 = vpop.permute.xlu2 %1632  ;;  %v1721_v8 = vadd.f32 %v1720_v42, %v1719_v30 }
 0xbe0   : > { %v1594_v19 = vpop.permute.xlu0 %1593 }
 0xbe1   : > { %v1692_v27 = vmul.f32 %v1594_v19, %v4296_v51 }
 0xbe3   : > { %v1708_v34 = vsel %vm90_vm0, %v1692_v27, 0.0 }
 0xbe5   : > { %1907 = vperm.xlu1 %2938, %v1902_v58  }
 0xbe7   : > { %v1600_v17 = vpop.permute.xlu1 %1599 }
 0xbe8   : > { %v4372_v53 = vpop.permute.xlu0 %1671  ;;  %v1693_v28 = vmul.f32 %v1600_v17, %v4301_v11  ;;  %v1722_v17 = vrot.slane %v1721_v8, 2 }
 0xbea   : > { %v1709_v37 = vsel %vm90_vm0, %v1693_v28, 0.0 }
 0xbeb   : > { %v1710_v1 = vadd.f32 %v1709_v37, %v1708_v34 }
 0xbed   : > { %1920 = vperm.xlu1 %2938, %v1915_v18   ;;  %v1711_v61 = vrot.slane %v1710_v1, 4 }
 0xbef   : > { %v1626_v41 = vpop.permute.xlu1 %1625  ;;  %v1652_v47 = vpop.permute.xlu2 %1651 }
 0xbf0   : > { %v4374_v22 = vpop.permute.xlu0 %1868  ;;  %v1697_v23 = vmul.f32 %v1626_v41, %v4301_v11  ;;  %v1701_v32 = vmul.f32 %v1652_v47, %v4301_v11  ;;  %v1954_v41 = vperm.slane %v3241_v43, 7 }
 0xbf1   : > { %v1967_v27 = vadd.f32 %v4374_v22, %v4296_v51 }
 0xbf2   : > { %v1727_v29 = vsel %vm90_vm0, %v1697_v23, 0.0  ;;  %v1745_v62 = vsel %vm90_vm0, %v1701_v32, 0.0 }
 0xbf3   : > { %v1728_v46 = vadd.f32 %v1727_v29, %v1726_v31  ;;  %v4434_v22 = vadd.f32 %v1983_v26, %v1967_v27 }
 0xbf5   : > { %2941 = vset.pattern.permute.xlu1 %v4346_v3  ;;  %v1698_v3 = vmul.f32 %v1633_v16, %v4296_v51  ;;  %v1712_v16 = vadd.f32 %v1711_v61, %v1710_v1 }
 0xbf7   : > { %v1665_v52 = vpop.permute.xlu2 %1664  ;;  %v1735_v58 = vsel %vm90_vm0, %v1698_v3, 0.0  ;;  %v1713_v4 = vrot.slane %v1712_v16, 2  ;;  %v4438_v3 = vld [vmem:[%s1576_s21] sm:$0xff] }
 0xbf8   : > { %v1934_v15 = vpop.permute.xlu0 %1933  ;;  %v1703_v0 = vmul.f32 %v1665_v52, %v4301_v11 }
 0xbf9   : > { %v1977_v39 = vadd.f32 %v1934_v15, %v4296_v51 }
 0xbfa   : > { %v1754_v60 = vsel %vm90_vm0, %v1703_v0, 0.0 }
 0xbfb   : > { %v4389_v48 = vadd.f32 %v4383_v9, %v1977_v39 }
 0xbfd   : > { %1939 = vperm.xlu1 %2941, %v1928_v40  }
 0xbff   : > { %v1646_v45 = vpop.permute.xlu1 %1645 }
 0xc00   : > { %v1700_v33 = vmul.f32 %v1646_v45, %v4296_v51  ;;  %v1723_v45 = vadd.f32 %v1722_v17, %v1721_v8  ;;  %v1782_v8 = vrot.slane %v4377_v25, 2 }
 0xc02   : > { %v1744_v6 = vsel %vm90_vm0, %v1700_v33, 0.0  ;;  %v1724_v33 = vrot.slane %v1723_v45, 1 }
 0xc03   : > { %v1746_v40 = vadd.f32 %v1745_v62, %v1744_v6  ;;  %v3267_v62 = vmov 0.0  }
 0xc04   : > { %v4440_v6 = vsel %vm1585_vm2, 1.0, %v3267_v62  }
 0xc05   : > { %2942 = vset.pattern.permute.xlu1 %v4332_v14  ;;  %v1729_v14 = vrot.slane %v1728_v46, 4  ;;  %v1747_v56 = vrot.slane %v1746_v40, 4 }
 0xc07   : > { %v1659_v50 = vpop.permute.xlu1 %1658  ;;  %v1730_v18 = vadd.f32 %v1729_v14, %v1728_v46  ;;  %v1748_v44 = vadd.f32 %v1747_v56, %v1746_v40  ;;  %v1685_v52 = vpop.permute.xlu2 %1684  ;;  %v1781_v14 = vrot.slane %v4377_v25, 1 }
 0xc08   : > { %v1702_v63 = vmul.f32 %v1659_v50, %v4296_v51  ;;  %v1639_v7 = vpop.permute.xlu0 %1638 }
 0xc09   : > { %v1699_v21 = vmul.f32 %v1639_v7, %v4301_v11  ;;  %v1731_v15 = vrot.slane %v1730_v18, 2  ;;  %v1749_v31 = vrot.slane %v1748_v44, 2  ;;  %v1706_v7 = vmul.f32 %v1685_v52, %v4296_v51 }
 0xc0a   : > { %v1753_v10 = vsel %vm90_vm0, %v1702_v63, 0.0 }
 0xc0b   : > { %v1736_v13 = vsel %vm90_vm0, %v1699_v21, 0.0  ;;  %v1755_v19 = vadd.f32 %v1754_v60, %v1753_v10  ;;  %v1732_v5 = vadd.f32 %v1731_v15, %v1730_v18  ;;  %v1750_v36 = vadd.f32 %v1749_v31, %v1748_v44 }
 0xc0c   : > { %v1737_v38 = vadd.f32 %v1736_v13, %v1735_v58  ;;  %v1725_v21 = vadd.f32 %v1724_v33, %v1723_v45  ;;  %v2015_v58 = vsel %vm90_vm0, %v4434_v22, -inf  ;;  %v1783_v13 = vrot.slane %v4377_v25, 3 }
 0xc0d   : > { %1946 = vperm.xlu1 %2942, %v1941_v12   ;;  %v1756_v54 = vrot.slane %v1755_v19, 4  ;;  %v1704_v12 = vmul.f32 %v4372_v53, %v4296_v51  ;;  %v1714_v53 = vadd.f32 %v1713_v4, %v1712_v16  ;;  %v1733_v37 = vrot.slane %v1732_v5, 1 }
 0xc0e   : > { %v1738_v20 = vrot.slane %v1737_v38, 4  ;;  %v1751_v17 = vrot.slane %v1750_v36, 1  ;;  %v1797_v44 = vadd.f32 %v1781_v14, %v1725_v21  ;;  %v1805_v4 = vrot.slane %v4440_v6, 1 }
 0xc0f   : > { %v1757_v28 = vadd.f32 %v1756_v54, %v1755_v19  ;;  %v1762_v34 = vsel %vm90_vm0, %v1704_v12, 0.0  ;;  %v1715_v40 = vrot.slane %v1714_v53, 1  ;;  %v1734_v61 = vadd.f32 %v1733_v37, %v1732_v5 }
 0xc10   : > { %v1739_v39 = vadd.f32 %v1738_v20, %v1737_v38  ;;  %v4417_v47 = vpop.permute.xlu0 %1887  ;;  %v1806_v54 = vrot.slane %v4440_v6, 2  ;;  %v1752_v31 = vadd.f32 %v1751_v17, %v1750_v36  ;;  %v1807_v33 = vrot.slane %v4440_v6, 3 }
 0xc11   : > { %v1758_v42 = vrot.slane %v1757_v28, 2  ;;  %v1798_v45 = vadd.f32 %v1782_v8, %v1734_v61  ;;  %v1821_v52 = vmul.f32 %v1805_v4, %v1797_v44  ;;  %v1970_v17 = vadd.f32 %v4417_v47, %v4301_v11 }
 0xc12   : > { %v1740_v23 = vrot.slane %v1739_v39, 2 }
 0xc13   : > { %v1759_v18 = vadd.f32 %v1758_v42, %v1757_v28  ;;  %v1836_v61 = vrot.slane %v1821_v52, 7 }
 0xc14   : > { %v1741_v29 = vadd.f32 %v1740_v23, %v1739_v39  ;;  %v1716_v39 = vadd.f32 %v1715_v40, %v1714_v53  ;;  %v1809_v40 = vrot.slane %v4440_v6, 5 }
 0xc15   : > { %1959 = vperm.xlu1 %2942, %v1954_v41  }
 0xc16   : > { %v1742_v0 = vrot.slane %v1741_v29, 1  ;;  %v1796_v53 = vadd.f32 %v1716_v39, %v4377_v25 }
 0xc17   : > { %v1678_v30 = vpop.permute.xlu1 %1677 }
 0xc18   : > { %v1705_v32 = vmul.f32 %v1678_v30, %v4301_v11  ;;  %v1875_v50 = vpop.permute.xlu0 %1874  ;;  %v1743_v38 = vadd.f32 %v1742_v0, %v1741_v29  ;;  %v1784_v30 = vrot.slane %v4377_v25, 4  ;;  %v1786_v0 = vrot.slane %v4377_v25, 6 }
 0xc19   : > { %v1968_v1 = vadd.f32 %v1875_v50, %v4301_v11  ;;  %v1808_v50 = vrot.slane %v4440_v6, 4 }
 0xc1a   : > { %v1763_v46 = vsel %vm90_vm0, %v1705_v32, 0.0  ;;  %v1799_v29 = vadd.f32 %v1783_v13, %v1743_v38  ;;  %v1800_v36 = vadd.f32 %v1784_v30, %v1752_v31 }
 0xc1b   : > { %v1764_v63 = vadd.f32 %v1763_v46, %v1762_v34  ;;  %v4444_v10 = vadd.f32 %v1983_v26, %v1968_v1  ;;  %v1760_v26 = vrot.slane %v1759_v18, 1  ;;  %v1822_v46 = vmul.f32 %v1806_v54, %v1798_v45 }
 0xc1c   : > { %v1810_v54 = vrot.slane %v4440_v6, 6 }
 0xc1d   : > { %v1765_v60 = vrot.slane %v1764_v63, 4  ;;  %2943 = vset.pattern.permute.xlu1 %v3266_v49  ;;  %v2016_v56 = vsel %vm90_vm0, %v4444_v10, -inf  ;;  %v1771_v49 = vsel %vm90_vm0, %v1706_v7, 0.0  ;;  %v1823_v7 = vmul.f32 %v1807_v33, %v1799_v29 }
 0xc1e   : > { %2257 = vperm.xlu1 %2943, %v4438_v3   ;;  %v2017_v16 = vmax.f32 %v2015_v58, %v2016_v56  ;;  %v1839_v38 = vrot.slane %v1822_v46, 6 }
 0xc1f   : > { %v1766_v19 = vadd.f32 %v1765_v60, %v1764_v63  ;;  %v1691_v20 = vpop.permute.xlu1 %1690  ;;  %v1761_v63 = vadd.f32 %v1760_v26, %v1759_v18  ;;  %v1820_v60 = vmul.f32 %v4440_v6, %v1796_v53  ;;  %v1811_v53 = vrot.slane %v4440_v6, 7 }
 0xc20   : > { %v1707_v15 = vmul.f32 %v1691_v20, %v4301_v11  ;;  %v2018_v12 = vrot.slane %v2017_v16, 4 }
 0xc21   : > { %v1767_v23 = vrot.slane %v1766_v19, 2  ;;  %v1801_v20 = vadd.f32 %v1785_v35, %v1761_v63 }
 0xc22   : > { %v1772_v5 = vsel %vm90_vm0, %v1707_v15, 0.0  ;;  %v2019_v32 = vmax.f32 %v2017_v16, %v2018_v12  ;;  %v1824_v15 = vmul.f32 %v1808_v50, %v1800_v36 }
 0xc23   : > { %v1768_v27 = vadd.f32 %v1767_v23, %v1766_v19  ;;  %v1773_v28 = vadd.f32 %v1772_v5, %v1771_v49  ;;  %v1984_v19 = vperm.slane %v1781_v14, 0  ;;  %v1842_v49 = vrot.slane %v1823_v7, 5 }
 0xc24   : > { %v2020_v42 = vrot.slane %v2019_v32, 2  ;;  %v1787_v14 = vrot.slane %v4377_v25, 7  ;;  %v1838_v23 = vsel %vm1837_vm3, %v1836_v61, %v1820_v60  ;;  %v1845_v33 = vrot.slane %v1824_v15, 4 }
 0xc25   : > { %v1769_v34 = vrot.slane %v1768_v27, 1  ;;  %v1774_v37 = vrot.slane %v1773_v28, 4  ;;  %v1841_v4 = vsel %vm1840_vm4, %v1839_v38, %v1838_v23  ;;  %v2002_v12 = vadd.f32 %v1984_v19, %v1970_v17 }
 0xc26   : > { %v2021_v21 = vmax.f32 %v2019_v32, %v2020_v42 }
 0xc27   : > { %v1770_v1 = vadd.f32 %v1769_v34, %v1768_v27  ;;  %v1775_v62 = vadd.f32 %v1774_v37, %v1773_v28  ;;  %v1825_v27 = vmul.f32 %v1809_v40, %v1801_v20  ;;  %v1844_v28 = vsel %vm1843_vm5, %v1842_v49, %v1841_v4 }
 0xc28   : > { %v2022_v56 = vrot.slane %v2021_v21, 1  ;;  %v1847_v52 = vsel %vm1846_vm6, %v1845_v33, %v1844_v28  ;;  %v2025_v50 = vsel %vm90_vm0, %v2002_v12, -inf }
 0xc29   : > { %v1776_v58 = vrot.slane %v1775_v62, 2  ;;  %v1802_v18 = vadd.f32 %v1786_v0, %v1770_v1  ;;  %v1848_v46 = vrot.slane %v1825_v27, 3 }
 0xc2a   : > { %v4478_v39 = vmax.f32 %v2021_v21, %v2022_v56 }
 0xc2b   : > { %v1777_v16 = vadd.f32 %v1776_v58, %v1775_v62  ;;  %v1826_v45 = vmul.f32 %v1810_v54, %v1802_v18  ;;  %v1850_v1 = vsel %vm1849_vm7, %v1848_v46, %v1847_v52  ;;  %v1985_v54 = vperm.slane %v1782_v8, 0  ;;  %v1914_v46 = vpop.permute.xlu0 %1913 }
 0xc2c   : > { %v2087_v35 = vsub.f32 %v4434_v22, %v4478_v39  ;;  %v2088_v47 = vsub.f32 %v4444_v10, %v4478_v39 }
 0xc2d   : > { %v1778_v44 = vrot.slane %v1777_v16, 1  ;;  %v1851_v34 = vrot.slane %v1826_v45, 2 }
 0xc2e   : > { %v2103_v29 = vmul.f32 1.442695, %v2087_v35  ;;  %v2105_v31 = vmul.f32 1.442695, %v2088_v47 }
 0xc2f   : > { %v1779_v5 = vadd.f32 %v1778_v44, %v1777_v16  ;;  %v1882_v26 = vpop.permute.xlu1 %1881  ;;  %v1853_v7 = vsel %vm1852_vm1, %v1851_v34, %v1850_v1  ;;  %v1986_v1 = vperm.slane %v1783_v13, 0  ;;  %v1987_v13 = vperm.slane %v1784_v30, 0 }
 0xc30   : > { %v1969_v32 = vadd.f32 %v1882_v26, %v4296_v51  ;;  %2945 = vpow2.f32 %v2103_v29 }
 0xc31   : > { %v1803_v22 = vadd.f32 %v1787_v14, %v1779_v5  ;;  %2947 = vpow2.f32 %v2105_v31 }
 0xc32   : > { %v2001_v10 = vadd.f32 %v1984_v19, %v1969_v32 }
 0xc33   : > { %v1827_v37 = vmul.f32 %v1811_v53, %v1803_v22 }
 0xc34   : > { %v2024_v42 = vsel %vm90_vm0, %v2001_v10, -inf }
 0xc35   : > { %v2026_v63 = vmax.f32 %v2024_v42, %v2025_v50  ;;  %v1854_v62 = vrot.slane %v1827_v37, 1 }
 0xc36   : > { %v2946_v40 = vpop.eup %2945 }
 0xc37   : > { %v2027_v36 = vrot.slane %v2026_v63, 4  ;;  %v1856_v21 = vsel %vm1855_vm8, %v1854_v62, %v1853_v7  ;;  %v2948_v61 = vpop.eup %2947  ;;  %v2135_v38 = vsel %vm90_vm0, %v2946_v40, 0.0  ;;  %v1895_v17 = vpop.permute.xlu1 %1894  ;;  %v1974_v62 = vadd.f32 %v1914_v46, %v4301_v11 }
 0xc38   : > { %v1858_v60 = vsel %vm90_vm0, %v1856_v21, 0.0  ;;  %v2136_v19 = vsel %vm90_vm0, %v2948_v61, 0.0  ;;  %v1971_v44 = vadd.f32 %v1895_v17, %v4296_v51 }
 0xc39   : > { %v2028_v58 = vmax.f32 %v2026_v63, %v2027_v36  ;;  %1859 = vadd.xlane.f32.xlu2 %v1858_v60  ;;  %v2137_v18 = vadd.f32 %v2136_v19, %v2135_v38  ;;  %v2006_v38 = vadd.f32 %v1986_v1, %v1974_v62 }
 0xc3a   : > { %v2003_v5 = vadd.f32 %v1985_v54, %v1971_v44 }
 0xc3b   : > { %v2029_v56 = vrot.slane %v2028_v58, 2  ;;  %v2138_v49 = vrot.slane %v2137_v18, 4 }
 0xc3c   : > { %v2033_v29 = vsel %vm90_vm0, %v2003_v5, -inf }
 0xc3d   : > { %v2030_v20 = vmax.f32 %v2028_v58, %v2029_v56  ;;  %v2139_v47 = vadd.f32 %v2138_v49, %v2137_v18  ;;  %v1927_v58 = vpop.permute.xlu2 %1926 }
 0xc3e   : > { %v1976_v17 = vadd.f32 %v1927_v58, %v4301_v11 }
 0xc3f   : > { %v2031_v16 = vrot.slane %v2030_v20, 1  ;;  %v2140_v28 = vrot.slane %v2139_v47, 2 }
 0xc41   : > { %v4502_v15 = vmax.f32 %v2030_v20, %v2031_v16  ;;  %v2141_v33 = vadd.f32 %v2140_v28, %v2139_v47 }
 0xc43   : > { %v2089_v23 = vsub.f32 %v2001_v10, %v4502_v15  ;;  %v2090_v35 = vsub.f32 %v2002_v12, %v4502_v15  ;;  %v2142_v37 = vrot.slane %v2141_v33, 1 }
 0xc45   : > { %v2107_v45 = vmul.f32 1.442695, %v2089_v23  ;;  %v2109_v4 = vmul.f32 1.442695, %v2090_v35  ;;  %v2143_v36 = vadd.f32 %v2142_v37, %v2141_v33 }
 0xc47   : > { %2949 = vpow2.f32 %v2107_v45  ;;  %v1901_v26 = vpop.permute.xlu1 %1900 }
 0xc48   : > { %2951 = vpow2.f32 %v2109_v4  ;;  %v1972_v27 = vadd.f32 %v1901_v26, %v4301_v11  ;;  %v2008_v4 = vadd.f32 %v1987_v13, %v1976_v17 }
 0xc49   : > { %2953 = vlog2.f32 %v2143_v36 }
 0xc4a   : > { %v2004_v31 = vadd.f32 %v1985_v54, %v1972_v27  ;;  %v2043_v54 = vsel %vm90_vm0, %v2006_v38, -inf }
 0xc4c   : > { %v2034_v8 = vsel %vm90_vm0, %v2004_v31, -inf }
 0xc4d   : > { %v2950_v32 = vpop.eup %2949  ;;  %v2035_v22 = vmax.f32 %v2033_v29, %v2034_v8 }
 0xc4e   : > { %v2952_v53 = vpop.eup %2951  ;;  %v2144_v12 = vsel %vm90_vm0, %v2950_v32, 0.0 }
 0xc4f   : > { %v2145_v10 = vsel %vm90_vm0, %v2952_v53, 0.0  ;;  %v2036_v52 = vrot.slane %v2035_v22, 4  ;;  %v2954_v26 = vpop.eup %2953 }
 0xc50   : > { %v2146_v34 = vadd.f32 %v2145_v10, %v2144_v12  ;;  %v2208_v29 = vmul.f32 0.6931472, %v2954_v26  ;;  %v2232_v12 = vrot.slane %v3241_v43, 1 }
 0xc51   : > { %v2037_v50 = vmax.f32 %v2035_v22, %v2036_v52  ;;  %1965 = vperm.xlu2 %2939, %v1954_v41  }
 0xc52   : > { %v2147_v42 = vrot.slane %v2146_v34, 4  ;;  %v2223_v46 = vadd.f32 %v2208_v29, %v4478_v39 }
 0xc53   : > { %v2038_v63 = vrot.slane %v2037_v50, 2 }
 0xc54   : > { %v2148_v7 = vadd.f32 %v2147_v42, %v2146_v34 }
 0xc55   : > { %v2039_v21 = vmax.f32 %v2037_v50, %v2038_v63 }
 0xc56   : > { %v2149_v40 = vrot.slane %v2148_v7, 2 }
 0xc57   : > { %v2040_v60 = vrot.slane %v2039_v21, 1  ;;  %v1908_v61 = vpop.permute.xlu1 %1907 }
 0xc58   : > { %v2150_v19 = vadd.f32 %v2149_v40, %v2148_v7  ;;  %v1973_v56 = vadd.f32 %v1908_v61, %v4296_v51 }
 0xc59   : > { %v4520_v41 = vmax.f32 %v2039_v21, %v2040_v60  ;;  %v2247_v60 = vsub.f32 %v2223_v46, %v3241_v43 }
 0xc5a   : > { %v2151_v18 = vrot.slane %v2150_v19, 1  ;;  %v2005_v20 = vadd.f32 %v1986_v1, %v1973_v56 }
 0xc5b   : > { %v2091_v16 = vsub.f32 %v2003_v5, %v4520_v41  ;;  %v2092_v49 = vsub.f32 %v2004_v31, %v4520_v41  ;;  %v2052_v31 = vsel %vm90_vm0, %v2008_v4, -inf }
 0xc5c   : > { %v2152_v44 = vadd.f32 %v2151_v18, %v2150_v19  ;;  %v2042_v23 = vsel %vm90_vm0, %v2005_v20, -inf }
 0xc5d   : > { %v2111_v35 = vmul.f32 1.442695, %v2091_v16  ;;  %v2113_v47 = vmul.f32 1.442695, %v2092_v49  ;;  %v2044_v45 = vmax.f32 %v2042_v23, %v2043_v54 }
 0xc5e   : > { %2955 = vlog2.f32 %v2152_v44 }
 0xc5f   : > { %2957 = vpow2.f32 %v2111_v35  ;;  %v2045_v27 = vrot.slane %v2044_v45, 4  ;;  %v1921_v30 = vpop.permute.xlu1 %1920 }
 0xc60   : > { %2959 = vpow2.f32 %v2113_v47  ;;  %v1975_v28 = vadd.f32 %v1921_v30, %v4296_v51 }
 0xc61   : > { %v2046_v5 = vmax.f32 %v2044_v45, %v2045_v27  ;;  %v2060_v27 = vsel %vm90_vm0, %v4389_v48, -inf }
 0xc62   : > { %v2007_v8 = vadd.f32 %v1987_v13, %v1975_v28 }
 0xc63   : > { %v2047_v32 = vrot.slane %v2046_v5, 2 }
 0xc64   : > { %v2956_v33 = vpop.eup %2955  ;;  %v2051_v22 = vsel %vm90_vm0, %v2007_v8, -inf }
 0xc65   : > { %v2958_v53 = vpop.eup %2957  ;;  %v2210_v10 = vmul.f32 0.6931472, %v2956_v33  ;;  %v2048_v52 = vmax.f32 %v2046_v5, %v2047_v32  ;;  %v2053_v34 = vmax.f32 %v2051_v22, %v2052_v31 }
 0xc66   : > { %v2960_v37 = vpop.eup %2959  ;;  %v2153_v50 = vsel %vm90_vm0, %v2958_v53, 0.0 }
 0xc67   : > { %v2224_v42 = vadd.f32 %v2210_v10, %v4502_v15  ;;  %v2154_v63 = vsel %vm90_vm0, %v2960_v37, 0.0  ;;  %v2049_v1 = vrot.slane %v2048_v52, 1  ;;  %v2054_v62 = vrot.slane %v2053_v34, 4 }
 0xc68   : > { %v2155_v7 = vadd.f32 %v2154_v63, %v2153_v50  ;;  %v1989_v37 = vperm.slane %v1786_v0, 0  ;;  %v2233_v63 = vrot.slane %v3241_v43, 2 }
 0xc69   : > { %v2248_v36 = vsub.f32 %v2224_v42, %v2232_v12  ;;  %v4537_v21 = vmax.f32 %v2048_v52, %v2049_v1  ;;  %v2055_v40 = vmax.f32 %v2053_v34, %v2054_v62 }
 0xc6a   : > { %v2156_v61 = vrot.slane %v2155_v7, 4 }
 0xc6b   : > { %v2268_v58 = vrot.slane %v2248_v36, 7  ;;  %v2093_v19 = vsub.f32 %v2005_v20, %v4537_v21  ;;  %v2094_v39 = vsub.f32 %v2006_v38, %v4537_v21  ;;  %v2056_v56 = vrot.slane %v2055_v40, 2 }
 0xc6c   : > { %v2157_v18 = vadd.f32 %v2156_v61, %v2155_v7 }
 0xc6d   : > { %v4543_v15 = vsel %vm1837_vm3, %v2268_v58, %v2247_v60  ;;  %v2115_v13 = vmul.f32 1.442695, %v2093_v19  ;;  %v2117_v17 = vmul.f32 1.442695, %v2094_v39  ;;  %v2057_v16 = vmax.f32 %v2055_v40, %v2056_v56 }
 0xc6e   : > { %v2158_v49 = vrot.slane %v2157_v18, 2 }
 0xc6f   : > { %2961 = vpow2.f32 %v2115_v13  ;;  %v2058_v54 = vrot.slane %v2057_v16, 1  ;;  %v1940_v44 = vpop.permute.xlu1 %1939 }
 0xc70   : > { %v2159_v23 = vadd.f32 %v2158_v49, %v2157_v18  ;;  %2963 = vpow2.f32 %v2117_v17  ;;  %v1978_v35 = vadd.f32 %v1940_v44, %v4301_v11 }
 0xc71   : > { %v4546_v47 = vmax.f32 %v2057_v16, %v2058_v54 }
 0xc72   : > { %v2160_v20 = vrot.slane %v2159_v23, 1  ;;  %v2010_v38 = vadd.f32 %v4383_v9, %v1978_v35 }
 0xc73   : > { %v2095_v45 = vsub.f32 %v2007_v8, %v4546_v47  ;;  %v2096_v26 = vsub.f32 %v2008_v4, %v4546_v47  ;;  %v1953_v4 = vpop.permute.xlu0 %1952 }
 0xc74   : > { %v2161_v30 = vadd.f32 %v2160_v20, %v2159_v23  ;;  %v2061_v28 = vsel %vm90_vm0, %v2010_v38, -inf  ;;  %v1980_v46 = vadd.f32 %v1953_v4, %v4301_v11  ;;  %v2234_v4 = vrot.slane %v3241_v43, 3 }
 0xc75   : > { %v2962_v5 = vpop.eup %2961  ;;  %v2119_v29 = vmul.f32 1.442695, %v2095_v45  ;;  %v2121_v31 = vmul.f32 1.442695, %v2096_v26  ;;  %v2062_v32 = vmax.f32 %v2060_v27, %v2061_v28 }
 0xc76   : > { %v2964_v33 = vpop.eup %2963  ;;  %2965 = vlog2.f32 %v2161_v30  ;;  %v2162_v22 = vsel %vm90_vm0, %v2962_v5, 0.0  ;;  %v2012_v39 = vadd.f32 %v1989_v37, %v1980_v46 }
 0xc77   : > { %v2163_v9 = vsel %vm90_vm0, %v2964_v33, 0.0  ;;  %2967 = vpow2.f32 %v2119_v29  ;;  %v2063_v8 = vrot.slane %v2062_v32, 4 }
 0xc78   : > { %v2164_v53 = vadd.f32 %v2163_v9, %v2162_v22  ;;  %2969 = vpow2.f32 %v2121_v31  ;;  %v2070_v35 = vsel %vm90_vm0, %v2012_v39, -inf }
 0xc79   : > { %v2064_v12 = vmax.f32 %v2062_v32, %v2063_v8 }
 0xc7a   : > { %v2165_v10 = vrot.slane %v2164_v53, 4 }
 0xc7b   : > { %v2065_v52 = vrot.slane %v2064_v12, 2 }
 0xc7c   : > { %v2966_v34 = vpop.eup %2965  ;;  %v2166_v50 = vadd.f32 %v2165_v10, %v2164_v53 }
 0xc7d   : > { %v2968_v42 = vpop.eup %2967  ;;  %v2212_v1 = vmul.f32 0.6931472, %v2966_v34  ;;  %v2066_v62 = vmax.f32 %v2064_v12, %v2065_v52 }
 0xc7e   : > { %v2970_v7 = vpop.eup %2969  ;;  %v2167_v36 = vrot.slane %v2166_v50, 2  ;;  %v2171_v40 = vsel %vm90_vm0, %v2968_v42, 0.0 }
 0xc7f   : > { %v2225_v60 = vadd.f32 %v2212_v1, %v4520_v41  ;;  %v2172_v61 = vsel %vm90_vm0, %v2970_v7, 0.0  ;;  %v2067_v58 = vrot.slane %v2066_v62, 1  ;;  %v1947_v19 = vpop.permute.xlu1 %1946 }
 0xc80   : > { %v2168_v0 = vadd.f32 %v2167_v36, %v2166_v50  ;;  %v2173_v56 = vadd.f32 %v2172_v61, %v2171_v40  ;;  %v1979_v18 = vadd.f32 %v1947_v19, %v4296_v51  ;;  %v2285_v50 = vsub.f32 %v4440_v6, %v3233_v24 }
 0xc81   : > { %v2249_v13 = vsub.f32 %v2225_v60, %v2233_v63  ;;  %v4564_v17 = vmax.f32 %v2066_v62, %v2067_v58  ;;  %v2235_v19 = vrot.slane %v3241_v43, 4 }
 0xc82   : > { %v2169_v16 = vrot.slane %v2168_v0, 1  ;;  %v2174_v49 = vrot.slane %v2173_v56, 4  ;;  %v2011_v54 = vadd.f32 %v1989_v37, %v1979_v18 }
 0xc83   : > { %v2270_v44 = vrot.slane %v2249_v13, 6  ;;  %v2097_v23 = vsub.f32 %v4389_v48, %v4564_v17  ;;  %v2098_v41 = vsub.f32 %v2010_v38, %v4564_v17 }
 0xc84   : > { %v2170_v20 = vadd.f32 %v2169_v16, %v2168_v0  ;;  %v2175_v45 = vadd.f32 %v2174_v49, %v2173_v56  ;;  %v2069_v26 = vsel %vm90_vm0, %v2011_v54, -inf }
 0xc85   : > { %v2271_v27 = vsel %vm1840_vm4, %v2270_v44, %v4543_v15  ;;  %v2123_v30 = vmul.f32 1.442695, %v2097_v23  ;;  %v2125_v28 = vmul.f32 1.442695, %v2098_v41  ;;  %v2071_v5 = vmax.f32 %v2069_v26, %v2070_v35 }
 0xc86   : > { %2971 = vlog2.f32 %v2170_v20  ;;  %v2176_v29 = vrot.slane %v2175_v45, 2 }
 0xc87   : > { %2973 = vpow2.f32 %v2123_v30  ;;  %v2072_v31 = vrot.slane %v2071_v5, 4  ;;  %v4573_v32 = vpop.permute.xlu1 %1959 }
 0xc88   : > { %v2177_v48 = vadd.f32 %v2176_v29, %v2175_v45  ;;  %2975 = vpow2.f32 %v2125_v28  ;;  %v2236_v29 = vrot.slane %v3241_v43, 5 }
 0xc89   : > { %v2073_v38 = vmax.f32 %v2071_v5, %v2072_v31 }
 0xc8a   : > { %v2178_v33 = vrot.slane %v2177_v48, 1 }
 0xc8b   : > { %v2074_v22 = vrot.slane %v2073_v38, 2 }
 0xc8c   : > { %v2972_v9 = vpop.eup %2971  ;;  %v2179_v8 = vadd.f32 %v2178_v33, %v2177_v48 }
 0xc8d   : > { %v2974_v53 = vpop.eup %2973  ;;  %v2214_v15 = vmul.f32 0.6931472, %v2972_v9  ;;  %v2075_v12 = vmax.f32 %v2073_v38, %v2074_v22 }
 0xc8e   : > { %v2976_v10 = vpop.eup %2975  ;;  %2977 = vlog2.f32 %v2179_v8  ;;  %v2180_v52 = vsel %vm90_vm0, %v2974_v53, 0.0 }
 0xc8f   : > { %v2226_v34 = vadd.f32 %v2214_v15, %v4537_v21  ;;  %v2181_v37 = vsel %vm90_vm0, %v2976_v10, 0.0  ;;  %v2076_v46 = vrot.slane %v2075_v12, 1 }
 0xc90   : > { %v2182_v42 = vadd.f32 %v2181_v37, %v2180_v52  ;;  %v4581_v63 = vpop.permute.xlu1 %2257  ;;  %v1990_v52 = vperm.slane %v1787_v14, 0 }
 0xc91   : > { %v2250_v1 = vsub.f32 %v2226_v34, %v2234_v4  ;;  %v2077_v62 = vmax.f32 %v2075_v12, %v2076_v46  ;;  %v2286_v7 = vmul.f32 %v2285_v50, %v4581_v63  ;;  %v2237_v46 = vrot.slane %v3241_v43, 6 }
 0xc92   : > { %v2183_v36 = vrot.slane %v2182_v42, 4 }
 0xc93   : > { %v2272_v40 = vrot.slane %v2250_v1, 5  ;;  %v2099_v60 = vsub.f32 %v2011_v54, %v2077_v62  ;;  %v2100_v61 = vsub.f32 %v2012_v39, %v2077_v62  ;;  %v4585_v24 = vadd.f32 %v3233_v24, %v2286_v7  }
 0xc94   : > { %v2978_v58 = vpop.eup %2977  ;;  %v2184_v0 = vadd.f32 %v2183_v36, %v2182_v42 }
 0xc95   : > { %v4669_v21 = vmov %v4585_v24  ;;  %v2273_v56 = vsel %vm1843_vm5, %v2272_v40, %v2271_v27  ;;  %v2216_v18 = vmul.f32 0.6931472, %v2978_v58  ;;  %v2127_v13 = vmul.f32 1.442695, %v2099_v60 }
 0xc96   : > { %v2129_v16 = vmul.f32 1.442695, %v2100_v61  ;;  %v2185_v49 = vrot.slane %v2184_v0, 2 }
 0xc97   : > { %v2227_v44 = vadd.f32 %v2216_v18, %v4546_v47  ;;  %2979 = vpow2.f32 %v2127_v13 }
 0xc98   : > { %v2186_v23 = vadd.f32 %v2185_v49, %v2184_v0  ;;  %2981 = vpow2.f32 %v2129_v16 }
 0xc99   : > { %v2251_v54 = vsub.f32 %v2227_v44, %v2235_v19 }
 0xc9a   : > { %v2187_v39 = vrot.slane %v2186_v23, 1 }
 0xc9b   : > { %v2274_v41 = vrot.slane %v2251_v54, 4 }
 0xc9c   : > { %v2188_v35 = vadd.f32 %v2187_v39, %v2186_v23 }
 0xc9d   : > { %v2980_v24 = vpop.eup %2979  ;;  %v2275_v20 = vsel %vm1846_vm6, %v2274_v41, %v2273_v56 }
 0xc9e   : > { %v2982_v45 = vpop.eup %2981  ;;  %2983 = vlog2.f32 %v2188_v35  ;;  %v2189_v26 = vsel %vm90_vm0, %v2980_v24, 0.0 }
 0xc9f   : > { %v2190_v27 = vsel %vm90_vm0, %v2982_v45, 0.0 }
 0xca0   : > { %v2191_v30 = vadd.f32 %v2190_v27, %v2189_v26 }
 0xca2   : > { %v2192_v28 = vrot.slane %v2191_v30, 4 }
 0xca4   : > { %v2984_v5 = vpop.eup %2983  ;;  %v2193_v47 = vadd.f32 %v2192_v28, %v2191_v30  ;;  %v2238_v30 = vrot.slane %v3241_v43, 7 }
 0xca5   : > { %v2218_v31 = vmul.f32 0.6931472, %v2984_v5 }
 0xca6   : > { %v2194_v48 = vrot.slane %v2193_v47, 2 }
 0xca7   : > { %v2228_v38 = vadd.f32 %v2218_v31, %v4564_v17  ;;  %v1981_v17 = vadd.f32 %v4573_v32, %v4296_v51 }
 0xca8   : > { %v2195_v33 = vadd.f32 %v2194_v48, %v2193_v47 }
 0xca9   : > { %v2252_v22 = vsub.f32 %v2228_v38, %v2236_v29  ;;  %v2013_v42 = vadd.f32 %v1990_v52, %v1981_v17 }
 0xcaa   : > { %v2196_v9 = vrot.slane %v2195_v33, 1 }
 0xcab   : > { %v2276_v8 = vrot.slane %v2252_v22, 3  ;;  %v2078_v40 = vsel %vm90_vm0, %v2013_v42, -inf }
 0xcac   : > { %v2197_v53 = vadd.f32 %v2196_v9, %v2195_v33  ;;  %v1860_v4 = vpop.xlane.xlu2 %1859 }
 0xcad   : > { %v2277_v15 = vsel %vm1849_vm7, %v2276_v8, %v2275_v20  ;;  %v1861_v12 = vmul.f32 %v1860_v4, %v4438_v3 }
 0xcae   : > { %2985 = vlog2.f32 %v2197_v53 }
 0xcaf   : > { %v4598_v59 = vadd.f32 %v3237_v59, %v1861_v12  }
 0xcb1   : > { %v4670_v10 = vmov %v4598_v59 }
 0xcb4   : > { %v2986_v34 = vpop.eup %2985  ;;  %v1966_v37 = vpop.permute.xlu2 %1965 }
 0xcb5   : > { %v2220_v50 = vmul.f32 0.6931472, %v2986_v34  ;;  %v1982_v1 = vadd.f32 %v1966_v37, %v4301_v11 }
 0xcb7   : > { %v2229_v7 = vadd.f32 %v2220_v50, %v2077_v62  ;;  %v2014_v3 = vadd.f32 %v1990_v52, %v1982_v1 }
 0xcb9   : > { %v2253_v36 = vsub.f32 %v2229_v7, %v2237_v46  ;;  %v2079_v59 = vsel %vm90_vm0, %v2014_v3, -inf }
 0xcba   : > { %v2080_v25 = vmax.f32 %v2078_v40, %v2079_v59  ;;  %v4673_v59 = vmov %v4670_v10 }
 0xcbb   : > { %v2278_v14 = vrot.slane %v2253_v36, 2 }
 0xcbc   : > { %v2081_v60 = vrot.slane %v2080_v25, 4 }
 0xcbd   : > { %v2279_v32 = vsel %vm1852_vm1, %v2278_v14, %v2277_v15 }
 0xcbe   : > { %v2082_v61 = vmax.f32 %v2080_v25, %v2081_v60 }
 0xcc0   : > { %v2083_v58 = vrot.slane %v2082_v61, 2 }
 0xcc2   : > { %v2084_v19 = vmax.f32 %v2082_v61, %v2083_v58 }
 0xcc4   : > { %v2085_v0 = vrot.slane %v2084_v19, 1 }
 0xcc6   : > { %v2086_v56 = vmax.f32 %v2084_v19, %v2085_v0 }
 0xcc8   : > { %v2101_v18 = vsub.f32 %v2013_v42, %v2086_v56  ;;  %v2102_v13 = vsub.f32 %v2014_v3, %v2086_v56  ;;  %v4671_v42 = vmov %v4440_v6 }
 0xcca   : > { %v2131_v16 = vmul.f32 1.442695, %v2101_v18  ;;  %v2133_v62 = vmul.f32 1.442695, %v2102_v13 }
 0xccc   : > { %2987 = vpow2.f32 %v2131_v16 }
 0xccd   : > { %2989 = vpow2.f32 %v2133_v62 }
 0xcd2   : > { %v2988_v49 = vpop.eup %2987 }
 0xcd3   : > { %v2990_v44 = vpop.eup %2989  ;;  %v2198_v23 = vsel %vm90_vm0, %v2988_v49, 0.0 }
 0xcd4   : > { %v2199_v54 = vsel %vm90_vm0, %v2990_v44, 0.0 }
 0xcd5   : > { %v2200_v39 = vadd.f32 %v2199_v54, %v2198_v23 }
 0xcd7   : > { %v2201_v41 = vrot.slane %v2200_v39, 4 }
 0xcd9   : > { %v2202_v35 = vadd.f32 %v2201_v41, %v2200_v39 }
 0xcdb   : > { %v2203_v24 = vrot.slane %v2202_v35, 2 }
 0xcdd   : > { %v2204_v20 = vadd.f32 %v2203_v24, %v2202_v35  ;;  %v4672_v24 = vmov %v4669_v21 }
 0xcdf   : > { %v2205_v45 = vrot.slane %v2204_v20, 1 }
 0xce1   : > { %v2206_v26 = vadd.f32 %v2205_v45, %v2204_v20 }
 0xce3   : > { %2991 = vlog2.f32 %v2206_v26 }
 0xce9   : > { %v2992_v27 = vpop.eup %2991 }
 0xcea   : > { %v2222_v28 = vmul.f32 0.6931472, %v2992_v27 }
 0xcec   : > { %v2230_v5 = vadd.f32 %v2222_v28, %v2086_v56 }
 0xcee   : > { %v2254_v47 = vsub.f32 %v2230_v5, %v2238_v30 }
 0xcf0   : > { %v2280_v29 = vrot.slane %v2254_v47, 1 }
 0xcf2   : > { %v2281_v31 = vsel %vm1855_vm8, %v2280_v29, %v2279_v32 }
 0xcf3   : > { %v2283_v48 = vmul.f32 %v2281_v31, %v4581_v63  ;;  %1569 = sbr.rel (!%p1567_p3) target bundleno = 2907 (0xb5b), region = 132  ;;  %v2288_v63 = vperm.slane (%p1567_p3), %v4306_v57, 0 }
 0xcf5   : > { %v2284_v38 = vadd.f32 %v3241_v43, %v2283_v48   ;;  %v2289_v22 = vmul.f32 (%p1567_p3), %v2288_v63, %v4669_v21  ;;  %v2307_v21 = vld [vmem:[%s4644_s3] sm:$0xff] (%p1567_p3) }
 0xcf7   : > { %v4674_v43 = vmov %v2284_v38  ;;  %v2290_v6 = vsel (%p1567_p3), %vm90_vm0, %v2289_v22, 0.0 }
 0xcf8   :  { %v2294_v43 = vadd.f32 %v2288_v63, %v2284_v38  ;;  %2291 = vadd.xlane.f32.xlu1 %v2290_v6 }
 0xcfa   :  { %v2295_v33 = vsel %vm90_vm0, %v2294_v43, -inf }
 0xcfb   :  { %2296 = vmax.xlane.f32.xlu0 %v2295_v33 }
 0xd6b   :  { %v2292_v2 = vpop.xlane.xlu1 %2291 }
 0xd6c   :  { %v2293_v11 = vadd.f32 %v2292_v2, %v4670_v10 }
 0xd6e   :  { %v2297_v9 = vpop.xlane.xlu0 %2296 }
 0xd6f   :  { %v2298_v8 = vsub.f32 %v2294_v43, %v2297_v9 }
 0xd71   :  { %v2299_v53 = vmul.f32 1.442695, %v2298_v8 }
 0xd73   :  { %2993 = vpow2.f32 %v2299_v53 }
 0xd79   :  { %v2994_v4 = vpop.eup %2993 }
 0xd7a   :  { %v2301_v15 = vsel %vm90_vm0, %v2994_v4, 0.0  ;;  %vm2322_vm0 = vcmask 0  }
 0xd7b   :  { %2302 = vadd.xlane.f32.xlu0 %v2301_v15 }
 0xdee   :  { %v2303_v12 = vpop.xlane.xlu0 %2302 }
 0xdef   :  { %2995 = vlog2.f32 %v2303_v12 }
 0xdf5   :  { %v2996_v55 = vpop.eup %2995 }
 0xdf6   :  { %v2305_v51 = vmul.f32 0.6931472, %v2996_v55 }
 0xdf8   :  { %v2306_v57 = vadd.f32 %v2305_v51, %v2297_v9 }
 0xdfa   :  { %v2308_v52 = vsub.f32 %v2293_v11, %v2306_v57 }
 0xdfc   :  { %v2309_v17 = vmul.f32 %v2308_v52, %v2307_v21 }
 0xdfe   :  { %v2311_v34 = vsel %vm2310_vm9, %v2309_v17, 0.0 }
 0xdff   :  { %2312 = vadd.xlane.f32.xlu1 %v2311_v34 }
 0xe72   :  { %v2313_v37 = vpop.xlane.xlu1 %2312 }
 0xe73   :  { %v2314_v46 = vrot.slane %v2313_v37, 4 }
 0xe75   :  { %v2315_v50 = vadd.f32 %v2314_v46, %v2313_v37 }
 0xe77   :  { %v2316_v42 = vrot.slane %v2315_v50, 2 }
 0xe79   :  { %v2317_v1 = vadd.f32 %v2316_v42, %v2315_v50 }
 0xe7b   :  { %v2318_v7 = vrot.slane %v2317_v1, 1 }
 0xe7d   :  { %v2319_v3 = vadd.f32 %v2318_v7, %v2317_v1 }
 0xe7f   :  { %2585 = vpush %v2319_v3 }
 0xeb0   :  { %s2586_s3 = spop %2585 }
 0xeb1   :  { %v2321_v10 = vstv %s2586_s3 }
 0xeb2   :  { %2323 = vst.msk [vmem:[#allocation8] sm:$0x1] %vm2322_vm0, %v2321_v10 }
 0xeb3   :  { %2334 = dma.vmem_to_hbm [thread:$0]  %s2330_s24, 16, %s2332_s26, [#allocation9]  }
 0xeb4   :  { %3133 = dma.done.wait [#allocation9], 16  }
 0xeb5   :  { %3134 = vsyncadd [#allocation9], 4294967280 }
 0xeb6   :  { %2339 = vsyncpa [#allocation9], 1 }

</bundles_post_ra>
